<compile_context>
chip_gen: v7x
topology: tpu7x:2x2x1
jax: 0.10.0
libtpu: 0.0.40
codegen_flags: <defaults>
</compile_context>

<pallas_src>
import functools
import math

import jax
import jax.numpy as jnp
from jax.experimental import pallas as pl
from jax.experimental.pallas import tpu as pltpu

COMPUTE_DTYPE = jnp.bfloat16           # MXU operand dtype; accumulation + LN/softmax stay f32.
VMEM_LIMIT_BYTES = 32 * 1024 * 1024    # explicit cap; safe on v5e/v6e (128 MiB) and v7x (64 MiB).
LN_EPS = 1e-5


def _round_up(n, m):
    return ((n + m - 1) // m) * m


def _padded_block_bytes(shape, dtype):
    """Rough VMEM footprint of one block after (sublane, lane) tile padding."""
    itemsize = jnp.dtype(dtype).itemsize
    s = list(shape)
    s[-1] = _round_up(s[-1], 128)
    if len(s) >= 2:
        s[-2] = _round_up(s[-2], 8 * (4 // itemsize))
    n = 1
    for d in s:
        n *= int(d)
    return n * itemsize


# ------------------------------ fused kernel ------------------------------

def _fused_forward_kernel(x_ref, wi_ref, posb_ref,
                          wq_ref, bq_ref, wk_ref, bk_ref, wv_ref, bv_ref,
                          wo_ref, bo_ref, ln1g_ref, ln1b_ref,
                          w1_ref, b1_ref, w2_ref, b2_ref, ln2g_ref, ln2b_ref,
                          clsw_ref, clsb_ref, o_ref, *, num_layers, num_heads, eps):
    """Entire TransformerWithHead forward for ONE batch element, fully VMEM-resident."""
    cdt = wi_ref.dtype

    # input projection + positional embedding (input_proj bias pre-folded into posb on host)
    h = jnp.dot(x_ref[0].astype(cdt), wi_ref[...],
                preferred_element_type=jnp.float32) + posb_ref[...]          # (L, D) f32
    # TODO(synk): dropout layers are identity (inference semantics); no RNG mask kernel emitted.

    for l in range(num_layers):                                              # static unroll
        hb = h.astype(cdt)

        # --- multi-head self-attention: stacked per-head weights, per-head MXU accumulation ---
        acc = jnp.zeros_like(h)                                              # (L, D) f32
        for i in range(num_heads):                                           # static unroll
            q = jnp.dot(hb, wq_ref[l, i], preferred_element_type=jnp.float32) + bq_ref[l, i]
            k = jnp.dot(hb, wk_ref[l, i], preferred_element_type=jnp.float32) + bk_ref[l, i]
            v = jnp.dot(hb, wv_ref[l, i], preferred_element_type=jnp.float32) + bv_ref[l, i]
            # q @ k^T without an explicit transpose: contract the last dim of both operands.
            s = jax.lax.dot_general(q.astype(cdt), k.astype(cdt),
                                    (((1,), (1,)), ((), ())),
                                    preferred_element_type=jnp.float32)      # (L, L) f32
            m = jnp.max(s, axis=-1, keepdims=True)
            p = jnp.exp(s - m)
            p = p * pl.reciprocal(jnp.sum(p, axis=-1, keepdims=True), approx=True)
            hv = jnp.dot(p.astype(cdt), v.astype(cdt),
                         preferred_element_type=jnp.float32)                 # (L, dh)
            acc = acc + jnp.dot(hv.astype(cdt), wo_ref[l, i],
                                preferred_element_type=jnp.float32)          # out_proj slab
        a = acc + bo_ref[l]

        # --- residual + LayerNorm 1 (post-LN, f32 statistics) ---
        z = h + a
        mu = jnp.mean(z, axis=-1, keepdims=True)
        var = jnp.mean(jnp.square(z - mu), axis=-1, keepdims=True)
        h1 = (z - mu) * jax.lax.rsqrt(var + eps) * ln1g_ref[l] + ln1b_ref[l]

        # --- feed-forward: linear1 + ReLU + linear2 ---
        ff = jnp.dot(h1.astype(cdt), w1_ref[l], preferred_element_type=jnp.float32) + b1_ref[l]
        ff = jnp.maximum(ff, 0.0)
        ff = jnp.dot(ff.astype(cdt), w2_ref[l], preferred_element_type=jnp.float32) + b2_ref[l]

        # --- residual + LayerNorm 2 ---
        z = h1 + ff
        mu = jnp.mean(z, axis=-1, keepdims=True)
        var = jnp.mean(jnp.square(z - mu), axis=-1, keepdims=True)
        h = (z - mu) * jax.lax.rsqrt(var + eps) * ln2g_ref[l] + ln2b_ref[l]

    # --- mean pool over sequence + classifier head (lane-padded, lane-dense output) ---
    pooled = jnp.mean(h, axis=0, keepdims=True)                              # (1, D) f32
    y = jnp.dot(pooled.astype(cdt), clsw_ref[...],
                preferred_element_type=jnp.float32) + clsb_ref[...]          # (1, Npad)
    o_ref[0] = y.astype(o_ref.dtype)


# ------------------------------ wrapper ------------------------------

def fused_forward(x_padded, posb, params):
    B, L, Kp = x_padded.shape
    D = params["input_proj_wT"].shape[1]
    nl, H, _, dh = params["wq"].shape
    F = params["w1"].shape[2]
    Np = params["cls_wT"].shape[1]

    weights = (params["input_proj_wT"], params["wq"], params["bq"], params["wk"], params["bk"],
               params["wv"], params["bv"], params["wo"], params["bo"],
               params["ln1_g"], params["ln1_b"], params["w1"], params["b1"],
               params["w2"], params["b2"], params["ln2_g"], params["ln2_b"],
               params["cls_wT"], params["cls_b"])

    # VMEM scaling guard (v7x has only 64 MiB physical VMEM): double-buffered blocks plus a rough
    # bound on live f32 intermediates.  If L or d_ff grow past this, tile the FF over F and use a
    # K-blocked online-softmax attention loop rather than raising VMEM_LIMIT_BYTES.
    vmem_est = 2 * _padded_block_bytes((1, L, Kp), x_padded.dtype)
    vmem_est += 2 * _padded_block_bytes((L, D), posb.dtype)
    vmem_est += sum(2 * _padded_block_bytes(w.shape, w.dtype) for w in weights)
    vmem_est += 2 * _padded_block_bytes((1, 1, Np), jnp.float32)
    vmem_est += 8 * _padded_block_bytes((L, max(Kp, 3 * D, F)), jnp.float32)
    assert vmem_est < VMEM_LIMIT_BYTES, (
        f"estimated VMEM footprint {vmem_est} B exceeds {VMEM_LIMIT_BYTES} B; "
        "tile the feed-forward and switch attention to a flash-style loop before raising the limit")

    const2 = lambda b: (0, 0)
    const3 = lambda b: (0, 0, 0)
    const4 = lambda b: (0, 0, 0, 0)
    kern = functools.partial(_fused_forward_kernel, num_layers=nl, num_heads=H, eps=LN_EPS)

    return pl.pallas_call(
        kern,
        out_shape=jax.ShapeDtypeStruct((B, 1, Np), jnp.float32),
        grid=(B,),
        in_specs=[
            pl.BlockSpec((1, L, Kp), lambda b: (b, 0, 0)),   # x (per-batch block)
            pl.BlockSpec((Kp, D), const2),                   # input_proj weight (bf16, (K,N))
            pl.BlockSpec((L, D), const2),                    # pos emb + input_proj bias (f32)
            pl.BlockSpec((nl, H, D, dh), const4),            # wq (1/sqrt(dh) folded)
            pl.BlockSpec((nl, H, 1, dh), const4),            # bq (1/sqrt(dh) folded)
            pl.BlockSpec((nl, H, D, dh), const4),            # wk
            pl.BlockSpec((nl, H, 1, dh), const4),            # bk
            pl.BlockSpec((nl, H, D, dh), const4),            # wv
            pl.BlockSpec((nl, H, 1, dh), const4),            # bv
            pl.BlockSpec((nl, H, dh, D), const4),            # wo (per-head out_proj slabs)
            pl.BlockSpec((nl, 1, D), const3),                # bo
            pl.BlockSpec((nl, 1, D), const3),                # ln1 gamma
            pl.BlockSpec((nl, 1, D), const3),                # ln1 beta
            pl.BlockSpec((nl, D, F), const3),                # w1
            pl.BlockSpec((nl, 1, F), const3),                # b1
            pl.BlockSpec((nl, F, D), const3),                # w2
            pl.BlockSpec((nl, 1, D), const3),                # b2
            pl.BlockSpec((nl, 1, D), const3),                # ln2 gamma
            pl.BlockSpec((nl, 1, D), const3),                # ln2 beta
            pl.BlockSpec((D, Np), const2),                   # classifier weight
            pl.BlockSpec((1, Np), const2),                   # classifier bias
        ],
        out_specs=pl.BlockSpec((1, 1, Np), lambda b: (b, 0, 0)),
        compiler_params=pltpu.CompilerParams(
            dimension_semantics=("parallel",),               # batch-parallel: uses both TCs on v7x
            vmem_limit_bytes=VMEM_LIMIT_BYTES),
    )(x_padded, params["input_proj_wT"], posb,
      params["wq"], params["bq"], params["wk"], params["bk"], params["wv"], params["bv"],
      params["wo"], params["bo"], params["ln1_g"], params["ln1_b"],
      params["w1"], params["b1"], params["w2"], params["b2"],
      params["ln2_g"], params["ln2_b"], params["cls_wT"], params["cls_b"])


def forward(params, x, *, num_labels):
    B, L, K = x.shape
    Kp = params["input_proj_wT"].shape[0]
    if Kp != K:
        x = jnp.pad(x, ((0, 0), (0, 0), (0, Kp - K)))        # lane-pad input features with zeros
    posb = params["pos_plus_b"][:L]                          # (L, D)
    logits = fused_forward(x, posb, params)                  # (B, 1, Npad)
    return logits[:, 0, :num_labels]                         # drop lane padding


# ------------------------------ params ------------------------------

def init_params(key, input_dim, d_model, num_heads, num_layers, num_labels, max_len, d_ff):
    """PyTorch-layout parameters (weights stored (out, in), y = x @ W.T + b)."""
    keys = jax.random.split(key, 3 + num_layers)
    p = {
        "input_proj_w": 0.05 * jax.random.normal(keys[0], (d_model, input_dim), jnp.float32),
        "input_proj_b": jnp.zeros((d_model,), jnp.float32),
        "pos_embedding": 0.05 * jax.random.normal(keys[1], (1, max_len, d_model), jnp.float32),
        "cls_w": 0.05 * jax.random.normal(keys[2], (num_labels, d_model), jnp.float32),
        "cls_b": jnp.zeros((num_labels,), jnp.float32),
        "layers": [],
    }
    for l in range(num_layers):
        lk = jax.random.split(keys[3 + l], 4)
        p["layers"].append({
            "in_proj_w": 0.05 * jax.random.normal(lk[0], (3 * d_model, d_model), jnp.float32),
            "in_proj_b": jnp.zeros((3 * d_model,), jnp.float32),
            "out_w": 0.05 * jax.random.normal(lk[1], (d_model, d_model), jnp.float32),
            "out_b": jnp.zeros((d_model,), jnp.float32),
            "ln1_g": jnp.ones((d_model,), jnp.float32),
            "ln1_b": jnp.zeros((d_model,), jnp.float32),
            "ln2_g": jnp.ones((d_model,), jnp.float32),
            "ln2_b": jnp.zeros((d_model,), jnp.float32),
            "lin1_w": 0.05 * jax.random.normal(lk[2], (d_ff, d_model), jnp.float32),
            "lin1_b": jnp.zeros((d_ff,), jnp.float32),
            "lin2_w": 0.05 * jax.random.normal(lk[3], (d_model, d_ff), jnp.float32),
            "lin2_b": jnp.zeros((d_model,), jnp.float32),
        })
    return p


def prepare_kernel_params(p, input_dim, num_labels, num_heads):
    """One-time host transforms: pre-transpose to (K, N), split QKV/out_proj per head and stack
    across layers, fold 1/sqrt(dh) into q, fold input_proj bias into the pos embedding, zero-pad
    lane-unfriendly dims to 128, cast matmul weights to bf16 (biases / LN stay f32)."""
    cdt = COMPUTE_DTYPE
    d_model = p["input_proj_w"].shape[0]
    dh = d_model // num_heads
    scale = 1.0 / math.sqrt(dh)
    kp_dim = _round_up(input_dim, 128)
    npad = _round_up(num_labels, 128)

    wT = jnp.zeros((kp_dim, d_model), jnp.float32).at[:input_dim].set(p["input_proj_w"].T)
    pos_plus_b = p["pos_embedding"][0] + p["input_proj_b"][None, :]          # (max_len, D)
    cls_wT = jnp.zeros((d_model, npad), jnp.float32).at[:, :num_labels].set(p["cls_w"].T)
    cls_b = jnp.zeros((npad,), jnp.float32).at[:num_labels].set(p["cls_b"])

    def per_head_in(w_slice, b_slice, s=1.0):
        # PyTorch (D_out, D_in) slice -> per-head (H, D_in, dh) and (H, 1, dh)
        w = (w_slice.T * s).reshape(d_model, num_heads, dh).transpose(1, 0, 2)
        b = (b_slice * s).reshape(num_heads, 1, dh)
        return w, b

    wq_l, bq_l, wk_l, bk_l, wv_l, bv_l, wo_l = [], [], [], [], [], [], []
    bo_l, g1_l, be1_l, w1_l, b1_l, w2_l, b2_l, g2_l, be2_l = [], [], [], [], [], [], [], [], []
    for lp in p["layers"]:
        ipw, ipb = lp["in_proj_w"], lp["in_proj_b"]
        wq, bq = per_head_in(ipw[:d_model], ipb[:d_model], scale)            # scale folded into q
        wk, bk = per_head_in(ipw[d_model:2 * d_model], ipb[d_model:2 * d_model])
        wv, bv = per_head_in(ipw[2 * d_model:], ipb[2 * d_model:])
        wq_l.append(wq); bq_l.append(bq); wk_l.append(wk); bk_l.append(bk)
        wv_l.append(wv); bv_l.append(bv)
        wo_l.append(lp["out_w"].T.reshape(num_heads, dh, d_model))           # per-head out_proj
        bo_l.append(lp["out_b"].reshape(1, d_model))
        g1_l.append(lp["ln1_g"].reshape(1, d_model)); be1_l.append(lp["ln1_b"].reshape(1, d_model))
        w1_l.append(lp["lin1_w"].T); b1_l.append(lp["lin1_b"].reshape(1, -1))
        w2_l.append(lp["lin2_w"].T); b2_l.append(lp["lin2_b"].reshape(1, d_model))
        g2_l.append(lp["ln2_g"].reshape(1, d_model)); be2_l.append(lp["ln2_b"].reshape(1, d_model))

    st = lambda xs, dt: jnp.stack(xs).astype(dt)
    return {
        "input_proj_wT": wT.astype(cdt),                    # (Kp, D)
        "pos_plus_b": pos_plus_b,                            # (max_len, D) f32
        "cls_wT": cls_wT.astype(cdt),                        # (D, Npad)
        "cls_b": cls_b.reshape(1, npad),
        "wq": st(wq_l, cdt), "bq": st(bq_l, jnp.float32),
        "wk": st(wk_l, cdt), "bk": st(bk_l, jnp.float32),
        "wv": st(wv_l, cdt), "bv": st(bv_l, jnp.float32),
        "wo": st(wo_l, cdt), "bo": st(bo_l, jnp.float32),
        "ln1_g": st(g1_l, jnp.float32), "ln1_b": st(be1_l, jnp.float32),
        "w1": st(w1_l, cdt), "b1": st(b1_l, jnp.float32),
        "w2": st(w2_l, cdt), "b2": st(b2_l, jnp.float32),
        "ln2_g": st(g2_l, jnp.float32), "ln2_b": st(be2_l, jnp.float32),
    }


# ------------------------------ pure-JAX reference ------------------------------

def forward_reference(p, x, num_heads):
    B, L, _ = x.shape
    d_model = p["input_proj_w"].shape[0]
    dh = d_model // num_heads

    def ln(z, g, b):
        return (z - z.mean(-1, keepdims=True)) / jnp.sqrt(z.var(-1, keepdims=True) + LN_EPS) * g + b

    h = x @ p["input_proj_w"].T + p["input_proj_b"] + p["pos_embedding"][:, :L, :]
    for lp in p["layers"]:
        qkv = h @ lp["in_proj_w"].T + lp["in_proj_b"]
        q, k, v = jnp.split(qkv, 3, axis=-1)
        sh = lambda t: t.reshape(B, L, num_heads, dh).transpose(0, 2, 1, 3)
        q, k, v = sh(q), sh(k), sh(v)
        s = jnp.einsum("bhqd,bhkd->bhqk", q, k) / math.sqrt(dh)
        attn = jax.nn.softmax(s, axis=-1)
        a = jnp.einsum("bhqk,bhkd->bhqd", attn, v).transpose(0, 2, 1, 3).reshape(B, L, d_model)
        a = a @ lp["out_w"].T + lp["out_b"]
        h = ln(h + a, lp["ln1_g"], lp["ln1_b"])
        ff = jnp.maximum(h @ lp["lin1_w"].T + lp["lin1_b"], 0.0) @ lp["lin2_w"].T + lp["lin2_b"]
        h = ln(h + ff, lp["ln2_g"], lp["ln2_b"])
    return h.mean(axis=1) @ p["cls_w"].T + p["cls_b"]


# ------------------------------ main ------------------------------

if __name__ == "__main__":
    # Small, module-consistent shapes (d_ff shrunk from PyTorch's default 2048 for speed).
    B, L = 2, 8
    input_dim, d_model, num_heads, num_layers = 18, 64, 4, 2
    num_labels, max_len, d_ff = 32, 16, 128

    key = jax.random.PRNGKey(0)
    kparam_key, kx = jax.random.split(key)
    torch_params = init_params(kparam_key, input_dim, d_model, num_heads, num_layers,
                               num_labels, max_len, d_ff)
    kparams = prepare_kernel_params(torch_params, input_dim, num_labels, num_heads)
    x = jax.random.normal(kx, (B, L, input_dim), jnp.float32)

    fwd = jax.jit(functools.partial(forward, num_labels=num_labels))
    logits = jax.block_until_ready(fwd(kparams, x))

    assert logits.shape == (B, num_labels), logits.shape
    assert bool(jnp.all(jnp.isfinite(logits)))

    # Tolerance check vs. f32 reference (bf16 matmuls + approx softmax recip => not bit-exact).
    ref = forward_reference(torch_params, x, num_heads)
    max_err = float(jnp.max(jnp.abs(logits - ref)))
    assert max_err < 5e-2, f"max |kernel - reference| = {max_err}"
    print("KERNEL_OK")
</pallas_src>

<mosaic_0001>
module attributes {stable_mosaic.version = 11 : i64} {
  func.func @_fused_forward_kernel(%arg0: i32, %arg1: memref<1x8x128xf32, #tpu.memory_space<vmem>>, %arg2: memref<128x64xbf16, #tpu.memory_space<vmem>>, %arg3: memref<8x64xf32, #tpu.memory_space<vmem>>, %arg4: memref<2x4x64x16xbf16, #tpu.memory_space<vmem>>, %arg5: memref<2x4x1x16xf32, #tpu.memory_space<vmem>>, %arg6: memref<2x4x64x16xbf16, #tpu.memory_space<vmem>>, %arg7: memref<2x4x1x16xf32, #tpu.memory_space<vmem>>, %arg8: memref<2x4x64x16xbf16, #tpu.memory_space<vmem>>, %arg9: memref<2x4x1x16xf32, #tpu.memory_space<vmem>>, %arg10: memref<2x4x16x64xbf16, #tpu.memory_space<vmem>>, %arg11: memref<2x1x64xf32, #tpu.memory_space<vmem>>, %arg12: memref<2x1x64xf32, #tpu.memory_space<vmem>>, %arg13: memref<2x1x64xf32, #tpu.memory_space<vmem>>, %arg14: memref<2x64x128xbf16, #tpu.memory_space<vmem>>, %arg15: memref<2x1x128xf32, #tpu.memory_space<vmem>>, %arg16: memref<2x128x64xbf16, #tpu.memory_space<vmem>>, %arg17: memref<2x1x64xf32, #tpu.memory_space<vmem>>, %arg18: memref<2x1x64xf32, #tpu.memory_space<vmem>>, %arg19: memref<2x1x64xf32, #tpu.memory_space<vmem>>, %arg20: memref<64x128xbf16, #tpu.memory_space<vmem>>, %arg21: memref<1x128xf32, #tpu.memory_space<vmem>>, %arg22: memref<1x1x128xf32, #tpu.memory_space<vmem>>) attributes {dimension_semantics = [#tpu.dimension_semantics<parallel>], iteration_bounds = array<i64: 2>, scalar_prefetch = 0 : i64, scratch_operands = 0 : i64, tpu.core_type = #tpu.core_type<tc>, window_params = [{transform_indices = @transform_0, window_bounds = array<i64: 1, 8, 128>}, {pipeline_mode = #tpu.pipeline_mode<synchronous>, transform_indices = @transform_1, window_bounds = array<i64: 128, 64>}, {pipeline_mode = #tpu.pipeline_mode<synchronous>, transform_indices = @transform_2, window_bounds = array<i64: 8, 64>}, {pipeline_mode = #tpu.pipeline_mode<synchronous>, transform_indices = @transform_3, window_bounds = array<i64: 2, 4, 64, 16>}, {pipeline_mode = #tpu.pipeline_mode<synchronous>, transform_indices = @transform_4, window_bounds = array<i64: 2, 4, 1, 16>}, {pipeline_mode = #tpu.pipeline_mode<synchronous>, transform_indices = @transform_5, window_bounds = array<i64: 2, 4, 64, 16>}, {pipeline_mode = #tpu.pipeline_mode<synchronous>, transform_indices = @transform_6, window_bounds = array<i64: 2, 4, 1, 16>}, {pipeline_mode = #tpu.pipeline_mode<synchronous>, transform_indices = @transform_7, window_bounds = array<i64: 2, 4, 64, 16>}, {pipeline_mode = #tpu.pipeline_mode<synchronous>, transform_indices = @transform_8, window_bounds = array<i64: 2, 4, 1, 16>}, {pipeline_mode = #tpu.pipeline_mode<synchronous>, transform_indices = @transform_9, window_bounds = array<i64: 2, 4, 16, 64>}, {pipeline_mode = #tpu.pipeline_mode<synchronous>, transform_indices = @transform_10, window_bounds = array<i64: 2, 1, 64>}, {pipeline_mode = #tpu.pipeline_mode<synchronous>, transform_indices = @transform_11, window_bounds = array<i64: 2, 1, 64>}, {pipeline_mode = #tpu.pipeline_mode<synchronous>, transform_indices = @transform_12, window_bounds = array<i64: 2, 1, 64>}, {pipeline_mode = #tpu.pipeline_mode<synchronous>, transform_indices = @transform_13, window_bounds = array<i64: 2, 64, 128>}, {pipeline_mode = #tpu.pipeline_mode<synchronous>, transform_indices = @transform_14, window_bounds = array<i64: 2, 1, 128>}, {pipeline_mode = #tpu.pipeline_mode<synchronous>, transform_indices = @transform_15, window_bounds = array<i64: 2, 128, 64>}, {pipeline_mode = #tpu.pipeline_mode<synchronous>, transform_indices = @transform_16, window_bounds = array<i64: 2, 1, 64>}, {pipeline_mode = #tpu.pipeline_mode<synchronous>, transform_indices = @transform_17, window_bounds = array<i64: 2, 1, 64>}, {pipeline_mode = #tpu.pipeline_mode<synchronous>, transform_indices = @transform_18, window_bounds = array<i64: 2, 1, 64>}, {pipeline_mode = #tpu.pipeline_mode<synchronous>, transform_indices = @transform_19, window_bounds = array<i64: 64, 128>}, {pipeline_mode = #tpu.pipeline_mode<synchronous>, transform_indices = @transform_20, window_bounds = array<i64: 1, 128>}, {transform_indices = @transform_21, window_bounds = array<i64: 1, 1, 128>}]} {
    %c0 = arith.constant 0 : index
    %c0_0 = arith.constant 0 : index
    %c0_1 = arith.constant 0 : index
    %0 = vector.load %arg1[%c0, %c0_0, %c0_1] : memref<1x8x128xf32, #tpu.memory_space<vmem>>, vector<1x8x128xf32>
    %1 = vector.shape_cast %0 : vector<1x8x128xf32> to vector<8x128xf32>
    %2 = arith.truncf %1 : vector<8x128xf32> to vector<8x128xbf16>
    %c0_2 = arith.constant 0 : index
    %c0_3 = arith.constant 0 : index
    %3 = vector.load %arg2[%c0_2, %c0_3] : memref<128x64xbf16, #tpu.memory_space<vmem>>, vector<128x64xbf16>
    %cst = arith.constant dense<0.000000e+00> : vector<8x64xf32>
    %4 = tpu.matmul %2, %3, %cst {dimension_numbers = #tpu.dot_dimension_numbers<[1], [0], [0], [1], [0, 0, 1, 1], [], []>} : vector<8x128xbf16>, vector<128x64xbf16>, vector<8x64xf32> -> vector<8x64xf32>
    %c0_4 = arith.constant 0 : index
    %c0_5 = arith.constant 0 : index
    %5 = vector.load %arg3[%c0_4, %c0_5] : memref<8x64xf32, #tpu.memory_space<vmem>>, vector<8x64xf32>
    %6 = arith.addf %4, %5 : vector<8x64xf32>
    %7 = arith.truncf %6 : vector<8x64xf32> to vector<8x64xbf16>
    %cst_6 = arith.constant 0.000000e+00 : f32
    %8 = vector.broadcast %cst_6 : f32 to vector<8x64xf32>
    %c0_7 = arith.constant 0 : index
    %c0_8 = arith.constant 0 : index
    %c0_9 = arith.constant 0 : index
    %c0_10 = arith.constant 0 : index
    %9 = vector.load %arg4[%c0_7, %c0_8, %c0_9, %c0_10] : memref<2x4x64x16xbf16, #tpu.memory_space<vmem>>, vector<1x1x64x16xbf16>
    %10 = vector.shape_cast %9 : vector<1x1x64x16xbf16> to vector<64x16xbf16>
    %cst_11 = arith.constant dense<0.000000e+00> : vector<8x16xf32>
    %11 = tpu.matmul %7, %10, %cst_11 {dimension_numbers = #tpu.dot_dimension_numbers<[1], [0], [0], [1], [0, 0, 1, 1], [], []>} : vector<8x64xbf16>, vector<64x16xbf16>, vector<8x16xf32> -> vector<8x16xf32>
    %c0_12 = arith.constant 0 : index
    %c0_13 = arith.constant 0 : index
    %c0_14 = arith.constant 0 : index
    %c0_15 = arith.constant 0 : index
    %12 = vector.load %arg5[%c0_12, %c0_13, %c0_14, %c0_15] : memref<2x4x1x16xf32, #tpu.memory_space<vmem>>, vector<1x1x1x16xf32>
    %13 = vector.shape_cast %12 : vector<1x1x1x16xf32> to vector<1x16xf32>
    %14 = vector.broadcast %13 : vector<1x16xf32> to vector<8x16xf32>
    %15 = arith.addf %11, %14 : vector<8x16xf32>
    %c0_16 = arith.constant 0 : index
    %c0_17 = arith.constant 0 : index
    %c0_18 = arith.constant 0 : index
    %c0_19 = arith.constant 0 : index
    %16 = vector.load %arg6[%c0_16, %c0_17, %c0_18, %c0_19] : memref<2x4x64x16xbf16, #tpu.memory_space<vmem>>, vector<1x1x64x16xbf16>
    %17 = vector.shape_cast %16 : vector<1x1x64x16xbf16> to vector<64x16xbf16>
    %cst_20 = arith.constant dense<0.000000e+00> : vector<8x16xf32>
    %18 = tpu.matmul %7, %17, %cst_20 {dimension_numbers = #tpu.dot_dimension_numbers<[1], [0], [0], [1], [0, 0, 1, 1], [], []>} : vector<8x64xbf16>, vector<64x16xbf16>, vector<8x16xf32> -> vector<8x16xf32>
    %c0_21 = arith.constant 0 : index
    %c0_22 = arith.constant 0 : index
    %c0_23 = arith.constant 0 : index
    %c0_24 = arith.constant 0 : index
    %19 = vector.load %arg7[%c0_21, %c0_22, %c0_23, %c0_24] : memref<2x4x1x16xf32, #tpu.memory_space<vmem>>, vector<1x1x1x16xf32>
    %20 = vector.shape_cast %19 : vector<1x1x1x16xf32> to vector<1x16xf32>
    %21 = vector.broadcast %20 : vector<1x16xf32> to vector<8x16xf32>
    %22 = arith.addf %18, %21 : vector<8x16xf32>
    %c0_25 = arith.constant 0 : index
    %c0_26 = arith.constant 0 : index
    %c0_27 = arith.constant 0 : index
    %c0_28 = arith.constant 0 : index
    %23 = vector.load %arg8[%c0_25, %c0_26, %c0_27, %c0_28] : memref<2x4x64x16xbf16, #tpu.memory_space<vmem>>, vector<1x1x64x16xbf16>
    %24 = vector.shape_cast %23 : vector<1x1x64x16xbf16> to vector<64x16xbf16>
    %cst_29 = arith.constant dense<0.000000e+00> : vector<8x16xf32>
    %25 = tpu.matmul %7, %24, %cst_29 {dimension_numbers = #tpu.dot_dimension_numbers<[1], [0], [0], [1], [0, 0, 1, 1], [], []>} : vector<8x64xbf16>, vector<64x16xbf16>, vector<8x16xf32> -> vector<8x16xf32>
    %c0_30 = arith.constant 0 : index
    %c0_31 = arith.constant 0 : index
    %c0_32 = arith.constant 0 : index
    %c0_33 = arith.constant 0 : index
    %26 = vector.load %arg9[%c0_30, %c0_31, %c0_32, %c0_33] : memref<2x4x1x16xf32, #tpu.memory_space<vmem>>, vector<1x1x1x16xf32>
    %27 = vector.shape_cast %26 : vector<1x1x1x16xf32> to vector<1x16xf32>
    %28 = vector.broadcast %27 : vector<1x16xf32> to vector<8x16xf32>
    %29 = arith.addf %25, %28 : vector<8x16xf32>
    %30 = arith.truncf %15 : vector<8x16xf32> to vector<8x16xbf16>
    %31 = arith.truncf %22 : vector<8x16xf32> to vector<8x16xbf16>
    %cst_34 = arith.constant dense<0.000000e+00> : vector<8x8xf32>
    %32 = tpu.matmul %30, %31, %cst_34 {dimension_numbers = #tpu.dot_dimension_numbers<[1], [1], [0], [0], [0, 0, 1, 0], [], []>} : vector<8x16xbf16>, vector<8x16xbf16>, vector<8x8xf32> -> vector<8x8xf32>
    %cst_35 = arith.constant dense<0xFF800000> : vector<8xf32>
    %33 = vector.multi_reduction <maximumf>, %32, %cst_35 [1] : vector<8x8xf32> to vector<8xf32>
    %34 = vector.shape_cast %33 : vector<8xf32> to vector<8x1xf32>
    %35 = vector.broadcast %34 : vector<8x1xf32> to vector<8x8xf32>
    %36 = arith.subf %32, %35 : vector<8x8xf32>
    %37 = math.exp %36 : vector<8x8xf32>
    %cst_36 = arith.constant dense<0.000000e+00> : vector<8xf32>
    %38 = vector.multi_reduction <add>, %37, %cst_36 [1] : vector<8x8xf32> to vector<8xf32>
    %39 = vector.shape_cast %38 : vector<8xf32> to vector<8x1xf32>
    %40 = tpu.reciprocal %39 {approx = true} : vector<8x1xf32> -> vector<8x1xf32>
    %41 = vector.broadcast %40 : vector<8x1xf32> to vector<8x8xf32>
    %42 = arith.mulf %37, %41 : vector<8x8xf32>
    %43 = arith.truncf %42 : vector<8x8xf32> to vector<8x8xbf16>
    %44 = arith.truncf %29 : vector<8x16xf32> to vector<8x16xbf16>
    %cst_37 = arith.constant dense<0.000000e+00> : vector<8x16xf32>
    %45 = tpu.matmul %43, %44, %cst_37 {dimension_numbers = #tpu.dot_dimension_numbers<[1], [0], [0], [1], [0, 0, 1, 1], [], []>} : vector<8x8xbf16>, vector<8x16xbf16>, vector<8x16xf32> -> vector<8x16xf32>
    %46 = arith.truncf %45 : vector<8x16xf32> to vector<8x16xbf16>
    %c0_38 = arith.constant 0 : index
    %c0_39 = arith.constant 0 : index
    %c0_40 = arith.constant 0 : index
    %c0_41 = arith.constant 0 : index
    %47 = vector.load %arg10[%c0_38, %c0_39, %c0_40, %c0_41] : memref<2x4x16x64xbf16, #tpu.memory_space<vmem>>, vector<1x1x16x64xbf16>
    %48 = vector.shape_cast %47 : vector<1x1x16x64xbf16> to vector<16x64xbf16>
    %cst_42 = arith.constant dense<0.000000e+00> : vector<8x64xf32>
    %49 = tpu.matmul %46, %48, %cst_42 {dimension_numbers = #tpu.dot_dimension_numbers<[1], [0], [0], [1], [0, 0, 1, 1], [], []>} : vector<8x16xbf16>, vector<16x64xbf16>, vector<8x64xf32> -> vector<8x64xf32>
    %50 = arith.addf %8, %49 : vector<8x64xf32>
    %c0_43 = arith.constant 0 : index
    %c1 = arith.constant 1 : index
    %c0_44 = arith.constant 0 : index
    %c0_45 = arith.constant 0 : index
    %51 = vector.load %arg4[%c0_43, %c1, %c0_44, %c0_45] : memref<2x4x64x16xbf16, #tpu.memory_space<vmem>>, vector<1x1x64x16xbf16>
    %52 = vector.shape_cast %51 : vector<1x1x64x16xbf16> to vector<64x16xbf16>
    %cst_46 = arith.constant dense<0.000000e+00> : vector<8x16xf32>
    %53 = tpu.matmul %7, %52, %cst_46 {dimension_numbers = #tpu.dot_dimension_numbers<[1], [0], [0], [1], [0, 0, 1, 1], [], []>} : vector<8x64xbf16>, vector<64x16xbf16>, vector<8x16xf32> -> vector<8x16xf32>
    %c0_47 = arith.constant 0 : index
    %c1_48 = arith.constant 1 : index
    %c0_49 = arith.constant 0 : index
    %c0_50 = arith.constant 0 : index
    %54 = vector.load %arg5[%c0_47, %c1_48, %c0_49, %c0_50] : memref<2x4x1x16xf32, #tpu.memory_space<vmem>>, vector<1x1x1x16xf32>
    %55 = vector.shape_cast %54 : vector<1x1x1x16xf32> to vector<1x16xf32>
    %56 = vector.broadcast %55 : vector<1x16xf32> to vector<8x16xf32>
    %57 = arith.addf %53, %56 : vector<8x16xf32>
    %c0_51 = arith.constant 0 : index
    %c1_52 = arith.constant 1 : index
    %c0_53 = arith.constant 0 : index
    %c0_54 = arith.constant 0 : index
    %58 = vector.load %arg6[%c0_51, %c1_52, %c0_53, %c0_54] : memref<2x4x64x16xbf16, #tpu.memory_space<vmem>>, vector<1x1x64x16xbf16>
    %59 = vector.shape_cast %58 : vector<1x1x64x16xbf16> to vector<64x16xbf16>
    %cst_55 = arith.constant dense<0.000000e+00> : vector<8x16xf32>
    %60 = tpu.matmul %7, %59, %cst_55 {dimension_numbers = #tpu.dot_dimension_numbers<[1], [0], [0], [1], [0, 0, 1, 1], [], []>} : vector<8x64xbf16>, vector<64x16xbf16>, vector<8x16xf32> -> vector<8x16xf32>
    %c0_56 = arith.constant 0 : index
    %c1_57 = arith.constant 1 : index
    %c0_58 = arith.constant 0 : index
    %c0_59 = arith.constant 0 : index
    %61 = vector.load %arg7[%c0_56, %c1_57, %c0_58, %c0_59] : memref<2x4x1x16xf32, #tpu.memory_space<vmem>>, vector<1x1x1x16xf32>
    %62 = vector.shape_cast %61 : vector<1x1x1x16xf32> to vector<1x16xf32>
    %63 = vector.broadcast %62 : vector<1x16xf32> to vector<8x16xf32>
    %64 = arith.addf %60, %63 : vector<8x16xf32>
    %c0_60 = arith.constant 0 : index
    %c1_61 = arith.constant 1 : index
    %c0_62 = arith.constant 0 : index
    %c0_63 = arith.constant 0 : index
    %65 = vector.load %arg8[%c0_60, %c1_61, %c0_62, %c0_63] : memref<2x4x64x16xbf16, #tpu.memory_space<vmem>>, vector<1x1x64x16xbf16>
    %66 = vector.shape_cast %65 : vector<1x1x64x16xbf16> to vector<64x16xbf16>
    %cst_64 = arith.constant dense<0.000000e+00> : vector<8x16xf32>
    %67 = tpu.matmul %7, %66, %cst_64 {dimension_numbers = #tpu.dot_dimension_numbers<[1], [0], [0], [1], [0, 0, 1, 1], [], []>} : vector<8x64xbf16>, vector<64x16xbf16>, vector<8x16xf32> -> vector<8x16xf32>
    %c0_65 = arith.constant 0 : index
    %c1_66 = arith.constant 1 : index
    %c0_67 = arith.constant 0 : index
    %c0_68 = arith.constant 0 : index
    %68 = vector.load %arg9[%c0_65, %c1_66, %c0_67, %c0_68] : memref<2x4x1x16xf32, #tpu.memory_space<vmem>>, vector<1x1x1x16xf32>
    %69 = vector.shape_cast %68 : vector<1x1x1x16xf32> to vector<1x16xf32>
    %70 = vector.broadcast %69 : vector<1x16xf32> to vector<8x16xf32>
    %71 = arith.addf %67, %70 : vector<8x16xf32>
    %72 = arith.truncf %57 : vector<8x16xf32> to vector<8x16xbf16>
    %73 = arith.truncf %64 : vector<8x16xf32> to vector<8x16xbf16>
    %cst_69 = arith.constant dense<0.000000e+00> : vector<8x8xf32>
    %74 = tpu.matmul %72, %73, %cst_69 {dimension_numbers = #tpu.dot_dimension_numbers<[1], [1], [0], [0], [0, 0, 1, 0], [], []>} : vector<8x16xbf16>, vector<8x16xbf16>, vector<8x8xf32> -> vector<8x8xf32>
    %cst_70 = arith.constant dense<0xFF800000> : vector<8xf32>
    %75 = vector.multi_reduction <maximumf>, %74, %cst_70 [1] : vector<8x8xf32> to vector<8xf32>
    %76 = vector.shape_cast %75 : vector<8xf32> to vector<8x1xf32>
    %77 = vector.broadcast %76 : vector<8x1xf32> to vector<8x8xf32>
    %78 = arith.subf %74, %77 : vector<8x8xf32>
    %79 = math.exp %78 : vector<8x8xf32>
    %cst_71 = arith.constant dense<0.000000e+00> : vector<8xf32>
    %80 = vector.multi_reduction <add>, %79, %cst_71 [1] : vector<8x8xf32> to vector<8xf32>
    %81 = vector.shape_cast %80 : vector<8xf32> to vector<8x1xf32>
    %82 = tpu.reciprocal %81 {approx = true} : vector<8x1xf32> -> vector<8x1xf32>
    %83 = vector.broadcast %82 : vector<8x1xf32> to vector<8x8xf32>
    %84 = arith.mulf %79, %83 : vector<8x8xf32>
    %85 = arith.truncf %84 : vector<8x8xf32> to vector<8x8xbf16>
    %86 = arith.truncf %71 : vector<8x16xf32> to vector<8x16xbf16>
    %cst_72 = arith.constant dense<0.000000e+00> : vector<8x16xf32>
    %87 = tpu.matmul %85, %86, %cst_72 {dimension_numbers = #tpu.dot_dimension_numbers<[1], [0], [0], [1], [0, 0, 1, 1], [], []>} : vector<8x8xbf16>, vector<8x16xbf16>, vector<8x16xf32> -> vector<8x16xf32>
    %88 = arith.truncf %87 : vector<8x16xf32> to vector<8x16xbf16>
    %c0_73 = arith.constant 0 : index
    %c1_74 = arith.constant 1 : index
    %c0_75 = arith.constant 0 : index
    %c0_76 = arith.constant 0 : index
    %89 = vector.load %arg10[%c0_73, %c1_74, %c0_75, %c0_76] : memref<2x4x16x64xbf16, #tpu.memory_space<vmem>>, vector<1x1x16x64xbf16>
    %90 = vector.shape_cast %89 : vector<1x1x16x64xbf16> to vector<16x64xbf16>
    %cst_77 = arith.constant dense<0.000000e+00> : vector<8x64xf32>
    %91 = tpu.matmul %88, %90, %cst_77 {dimension_numbers = #tpu.dot_dimension_numbers<[1], [0], [0], [1], [0, 0, 1, 1], [], []>} : vector<8x16xbf16>, vector<16x64xbf16>, vector<8x64xf32> -> vector<8x64xf32>
    %92 = arith.addf %50, %91 : vector<8x64xf32>
    %c0_78 = arith.constant 0 : index
    %c2 = arith.constant 2 : index
    %c0_79 = arith.constant 0 : index
    %c0_80 = arith.constant 0 : index
    %93 = vector.load %arg4[%c0_78, %c2, %c0_79, %c0_80] : memref<2x4x64x16xbf16, #tpu.memory_space<vmem>>, vector<1x1x64x16xbf16>
    %94 = vector.shape_cast %93 : vector<1x1x64x16xbf16> to vector<64x16xbf16>
    %cst_81 = arith.constant dense<0.000000e+00> : vector<8x16xf32>
    %95 = tpu.matmul %7, %94, %cst_81 {dimension_numbers = #tpu.dot_dimension_numbers<[1], [0], [0], [1], [0, 0, 1, 1], [], []>} : vector<8x64xbf16>, vector<64x16xbf16>, vector<8x16xf32> -> vector<8x16xf32>
    %c0_82 = arith.constant 0 : index
    %c2_83 = arith.constant 2 : index
    %c0_84 = arith.constant 0 : index
    %c0_85 = arith.constant 0 : index
    %96 = vector.load %arg5[%c0_82, %c2_83, %c0_84, %c0_85] : memref<2x4x1x16xf32, #tpu.memory_space<vmem>>, vector<1x1x1x16xf32>
    %97 = vector.shape_cast %96 : vector<1x1x1x16xf32> to vector<1x16xf32>
    %98 = vector.broadcast %97 : vector<1x16xf32> to vector<8x16xf32>
    %99 = arith.addf %95, %98 : vector<8x16xf32>
    %c0_86 = arith.constant 0 : index
    %c2_87 = arith.constant 2 : index
    %c0_88 = arith.constant 0 : index
    %c0_89 = arith.constant 0 : index
    %100 = vector.load %arg6[%c0_86, %c2_87, %c0_88, %c0_89] : memref<2x4x64x16xbf16, #tpu.memory_space<vmem>>, vector<1x1x64x16xbf16>
    %101 = vector.shape_cast %100 : vector<1x1x64x16xbf16> to vector<64x16xbf16>
    %cst_90 = arith.constant dense<0.000000e+00> : vector<8x16xf32>
    %102 = tpu.matmul %7, %101, %cst_90 {dimension_numbers = #tpu.dot_dimension_numbers<[1], [0], [0], [1], [0, 0, 1, 1], [], []>} : vector<8x64xbf16>, vector<64x16xbf16>, vector<8x16xf32> -> vector<8x16xf32>
    %c0_91 = arith.constant 0 : index
    %c2_92 = arith.constant 2 : index
    %c0_93 = arith.constant 0 : index
    %c0_94 = arith.constant 0 : index
    %103 = vector.load %arg7[%c0_91, %c2_92, %c0_93, %c0_94] : memref<2x4x1x16xf32, #tpu.memory_space<vmem>>, vector<1x1x1x16xf32>
    %104 = vector.shape_cast %103 : vector<1x1x1x16xf32> to vector<1x16xf32>
    %105 = vector.broadcast %104 : vector<1x16xf32> to vector<8x16xf32>
    %106 = arith.addf %102, %105 : vector<8x16xf32>
    %c0_95 = arith.constant 0 : index
    %c2_96 = arith.constant 2 : index
    %c0_97 = arith.constant 0 : index
    %c0_98 = arith.constant 0 : index
    %107 = vector.load %arg8[%c0_95, %c2_96, %c0_97, %c0_98] : memref<2x4x64x16xbf16, #tpu.memory_space<vmem>>, vector<1x1x64x16xbf16>
    %108 = vector.shape_cast %107 : vector<1x1x64x16xbf16> to vector<64x16xbf16>
    %cst_99 = arith.constant dense<0.000000e+00> : vector<8x16xf32>
    %109 = tpu.matmul %7, %108, %cst_99 {dimension_numbers = #tpu.dot_dimension_numbers<[1], [0], [0], [1], [0, 0, 1, 1], [], []>} : vector<8x64xbf16>, vector<64x16xbf16>, vector<8x16xf32> -> vector<8x16xf32>
    %c0_100 = arith.constant 0 : index
    %c2_101 = arith.constant 2 : index
    %c0_102 = arith.constant 0 : index
    %c0_103 = arith.constant 0 : index
    %110 = vector.load %arg9[%c0_100, %c2_101, %c0_102, %c0_103] : memref<2x4x1x16xf32, #tpu.memory_space<vmem>>, vector<1x1x1x16xf32>
    %111 = vector.shape_cast %110 : vector<1x1x1x16xf32> to vector<1x16xf32>
    %112 = vector.broadcast %111 : vector<1x16xf32> to vector<8x16xf32>
    %113 = arith.addf %109, %112 : vector<8x16xf32>
    %114 = arith.truncf %99 : vector<8x16xf32> to vector<8x16xbf16>
    %115 = arith.truncf %106 : vector<8x16xf32> to vector<8x16xbf16>
    %cst_104 = arith.constant dense<0.000000e+00> : vector<8x8xf32>
    %116 = tpu.matmul %114, %115, %cst_104 {dimension_numbers = #tpu.dot_dimension_numbers<[1], [1], [0], [0], [0, 0, 1, 0], [], []>} : vector<8x16xbf16>, vector<8x16xbf16>, vector<8x8xf32> -> vector<8x8xf32>
    %cst_105 = arith.constant dense<0xFF800000> : vector<8xf32>
    %117 = vector.multi_reduction <maximumf>, %116, %cst_105 [1] : vector<8x8xf32> to vector<8xf32>
    %118 = vector.shape_cast %117 : vector<8xf32> to vector<8x1xf32>
    %119 = vector.broadcast %118 : vector<8x1xf32> to vector<8x8xf32>
    %120 = arith.subf %116, %119 : vector<8x8xf32>
    %121 = math.exp %120 : vector<8x8xf32>
    %cst_106 = arith.constant dense<0.000000e+00> : vector<8xf32>
    %122 = vector.multi_reduction <add>, %121, %cst_106 [1] : vector<8x8xf32> to vector<8xf32>
    %123 = vector.shape_cast %122 : vector<8xf32> to vector<8x1xf32>
    %124 = tpu.reciprocal %123 {approx = true} : vector<8x1xf32> -> vector<8x1xf32>
    %125 = vector.broadcast %124 : vector<8x1xf32> to vector<8x8xf32>
    %126 = arith.mulf %121, %125 : vector<8x8xf32>
    %127 = arith.truncf %126 : vector<8x8xf32> to vector<8x8xbf16>
    %128 = arith.truncf %113 : vector<8x16xf32> to vector<8x16xbf16>
    %cst_107 = arith.constant dense<0.000000e+00> : vector<8x16xf32>
    %129 = tpu.matmul %127, %128, %cst_107 {dimension_numbers = #tpu.dot_dimension_numbers<[1], [0], [0], [1], [0, 0, 1, 1], [], []>} : vector<8x8xbf16>, vector<8x16xbf16>, vector<8x16xf32> -> vector<8x16xf32>
    %130 = arith.truncf %129 : vector<8x16xf32> to vector<8x16xbf16>
    %c0_108 = arith.constant 0 : index
    %c2_109 = arith.constant 2 : index
    %c0_110 = arith.constant 0 : index
    %c0_111 = arith.constant 0 : index
    %131 = vector.load %arg10[%c0_108, %c2_109, %c0_110, %c0_111] : memref<2x4x16x64xbf16, #tpu.memory_space<vmem>>, vector<1x1x16x64xbf16>
    %132 = vector.shape_cast %131 : vector<1x1x16x64xbf16> to vector<16x64xbf16>
    %cst_112 = arith.constant dense<0.000000e+00> : vector<8x64xf32>
    %133 = tpu.matmul %130, %132, %cst_112 {dimension_numbers = #tpu.dot_dimension_numbers<[1], [0], [0], [1], [0, 0, 1, 1], [], []>} : vector<8x16xbf16>, vector<16x64xbf16>, vector<8x64xf32> -> vector<8x64xf32>
    %134 = arith.addf %92, %133 : vector<8x64xf32>
    %c0_113 = arith.constant 0 : index
    %c3 = arith.constant 3 : index
    %c0_114 = arith.constant 0 : index
    %c0_115 = arith.constant 0 : index
    %135 = vector.load %arg4[%c0_113, %c3, %c0_114, %c0_115] : memref<2x4x64x16xbf16, #tpu.memory_space<vmem>>, vector<1x1x64x16xbf16>
    %136 = vector.shape_cast %135 : vector<1x1x64x16xbf16> to vector<64x16xbf16>
    %cst_116 = arith.constant dense<0.000000e+00> : vector<8x16xf32>
    %137 = tpu.matmul %7, %136, %cst_116 {dimension_numbers = #tpu.dot_dimension_numbers<[1], [0], [0], [1], [0, 0, 1, 1], [], []>} : vector<8x64xbf16>, vector<64x16xbf16>, vector<8x16xf32> -> vector<8x16xf32>
    %c0_117 = arith.constant 0 : index
    %c3_118 = arith.constant 3 : index
    %c0_119 = arith.constant 0 : index
    %c0_120 = arith.constant 0 : index
    %138 = vector.load %arg5[%c0_117, %c3_118, %c0_119, %c0_120] : memref<2x4x1x16xf32, #tpu.memory_space<vmem>>, vector<1x1x1x16xf32>
    %139 = vector.shape_cast %138 : vector<1x1x1x16xf32> to vector<1x16xf32>
    %140 = vector.broadcast %139 : vector<1x16xf32> to vector<8x16xf32>
    %141 = arith.addf %137, %140 : vector<8x16xf32>
    %c0_121 = arith.constant 0 : index
    %c3_122 = arith.constant 3 : index
    %c0_123 = arith.constant 0 : index
    %c0_124 = arith.constant 0 : index
    %142 = vector.load %arg6[%c0_121, %c3_122, %c0_123, %c0_124] : memref<2x4x64x16xbf16, #tpu.memory_space<vmem>>, vector<1x1x64x16xbf16>
    %143 = vector.shape_cast %142 : vector<1x1x64x16xbf16> to vector<64x16xbf16>
    %cst_125 = arith.constant dense<0.000000e+00> : vector<8x16xf32>
    %144 = tpu.matmul %7, %143, %cst_125 {dimension_numbers = #tpu.dot_dimension_numbers<[1], [0], [0], [1], [0, 0, 1, 1], [], []>} : vector<8x64xbf16>, vector<64x16xbf16>, vector<8x16xf32> -> vector<8x16xf32>
    %c0_126 = arith.constant 0 : index
    %c3_127 = arith.constant 3 : index
    %c0_128 = arith.constant 0 : index
    %c0_129 = arith.constant 0 : index
    %145 = vector.load %arg7[%c0_126, %c3_127, %c0_128, %c0_129] : memref<2x4x1x16xf32, #tpu.memory_space<vmem>>, vector<1x1x1x16xf32>
    %146 = vector.shape_cast %145 : vector<1x1x1x16xf32> to vector<1x16xf32>
    %147 = vector.broadcast %146 : vector<1x16xf32> to vector<8x16xf32>
    %148 = arith.addf %144, %147 : vector<8x16xf32>
    %c0_130 = arith.constant 0 : index
    %c3_131 = arith.constant 3 : index
    %c0_132 = arith.constant 0 : index
    %c0_133 = arith.constant 0 : index
    %149 = vector.load %arg8[%c0_130, %c3_131, %c0_132, %c0_133] : memref<2x4x64x16xbf16, #tpu.memory_space<vmem>>, vector<1x1x64x16xbf16>
    %150 = vector.shape_cast %149 : vector<1x1x64x16xbf16> to vector<64x16xbf16>
    %cst_134 = arith.constant dense<0.000000e+00> : vector<8x16xf32>
    %151 = tpu.matmul %7, %150, %cst_134 {dimension_numbers = #tpu.dot_dimension_numbers<[1], [0], [0], [1], [0, 0, 1, 1], [], []>} : vector<8x64xbf16>, vector<64x16xbf16>, vector<8x16xf32> -> vector<8x16xf32>
    %c0_135 = arith.constant 0 : index
    %c3_136 = arith.constant 3 : index
    %c0_137 = arith.constant 0 : index
    %c0_138 = arith.constant 0 : index
    %152 = vector.load %arg9[%c0_135, %c3_136, %c0_137, %c0_138] : memref<2x4x1x16xf32, #tpu.memory_space<vmem>>, vector<1x1x1x16xf32>
    %153 = vector.shape_cast %152 : vector<1x1x1x16xf32> to vector<1x16xf32>
    %154 = vector.broadcast %153 : vector<1x16xf32> to vector<8x16xf32>
    %155 = arith.addf %151, %154 : vector<8x16xf32>
    %156 = arith.truncf %141 : vector<8x16xf32> to vector<8x16xbf16>
    %157 = arith.truncf %148 : vector<8x16xf32> to vector<8x16xbf16>
    %cst_139 = arith.constant dense<0.000000e+00> : vector<8x8xf32>
    %158 = tpu.matmul %156, %157, %cst_139 {dimension_numbers = #tpu.dot_dimension_numbers<[1], [1], [0], [0], [0, 0, 1, 0], [], []>} : vector<8x16xbf16>, vector<8x16xbf16>, vector<8x8xf32> -> vector<8x8xf32>
    %cst_140 = arith.constant dense<0xFF800000> : vector<8xf32>
    %159 = vector.multi_reduction <maximumf>, %158, %cst_140 [1] : vector<8x8xf32> to vector<8xf32>
    %160 = vector.shape_cast %159 : vector<8xf32> to vector<8x1xf32>
    %161 = vector.broadcast %160 : vector<8x1xf32> to vector<8x8xf32>
    %162 = arith.subf %158, %161 : vector<8x8xf32>
    %163 = math.exp %162 : vector<8x8xf32>
    %cst_141 = arith.constant dense<0.000000e+00> : vector<8xf32>
    %164 = vector.multi_reduction <add>, %163, %cst_141 [1] : vector<8x8xf32> to vector<8xf32>
    %165 = vector.shape_cast %164 : vector<8xf32> to vector<8x1xf32>
    %166 = tpu.reciprocal %165 {approx = true} : vector<8x1xf32> -> vector<8x1xf32>
    %167 = vector.broadcast %166 : vector<8x1xf32> to vector<8x8xf32>
    %168 = arith.mulf %163, %167 : vector<8x8xf32>
    %169 = arith.truncf %168 : vector<8x8xf32> to vector<8x8xbf16>
    %170 = arith.truncf %155 : vector<8x16xf32> to vector<8x16xbf16>
    %cst_142 = arith.constant dense<0.000000e+00> : vector<8x16xf32>
    %171 = tpu.matmul %169, %170, %cst_142 {dimension_numbers = #tpu.dot_dimension_numbers<[1], [0], [0], [1], [0, 0, 1, 1], [], []>} : vector<8x8xbf16>, vector<8x16xbf16>, vector<8x16xf32> -> vector<8x16xf32>
    %172 = arith.truncf %171 : vector<8x16xf32> to vector<8x16xbf16>
    %c0_143 = arith.constant 0 : index
    %c3_144 = arith.constant 3 : index
    %c0_145 = arith.constant 0 : index
    %c0_146 = arith.constant 0 : index
    %173 = vector.load %arg10[%c0_143, %c3_144, %c0_145, %c0_146] : memref<2x4x16x64xbf16, #tpu.memory_space<vmem>>, vector<1x1x16x64xbf16>
    %174 = vector.shape_cast %173 : vector<1x1x16x64xbf16> to vector<16x64xbf16>
    %cst_147 = arith.constant dense<0.000000e+00> : vector<8x64xf32>
    %175 = tpu.matmul %172, %174, %cst_147 {dimension_numbers = #tpu.dot_dimension_numbers<[1], [0], [0], [1], [0, 0, 1, 1], [], []>} : vector<8x16xbf16>, vector<16x64xbf16>, vector<8x64xf32> -> vector<8x64xf32>
    %176 = arith.addf %134, %175 : vector<8x64xf32>
    %c0_148 = arith.constant 0 : index
    %c0_149 = arith.constant 0 : index
    %c0_150 = arith.constant 0 : index
    %177 = vector.load %arg11[%c0_148, %c0_149, %c0_150] : memref<2x1x64xf32, #tpu.memory_space<vmem>>, vector<1x1x64xf32>
    %178 = vector.shape_cast %177 : vector<1x1x64xf32> to vector<1x64xf32>
    %179 = vector.broadcast %178 : vector<1x64xf32> to vector<8x64xf32>
    %180 = arith.addf %176, %179 : vector<8x64xf32>
    %181 = arith.addf %6, %180 : vector<8x64xf32>
    %cst_151 = arith.constant dense<0.000000e+00> : vector<8xf32>
    %182 = vector.multi_reduction <add>, %181, %cst_151 [1] : vector<8x64xf32> to vector<8xf32>
    %183 = vector.shape_cast %182 : vector<8xf32> to vector<8x1xf32>
    %cst_152 = arith.constant 6.400000e+01 : f32
    %184 = vector.broadcast %cst_152 : f32 to vector<8x1xf32>
    %185 = arith.divf %183, %184 : vector<8x1xf32>
    %186 = vector.broadcast %185 : vector<8x1xf32> to vector<8x64xf32>
    %187 = arith.subf %181, %186 : vector<8x64xf32>
    %188 = arith.mulf %187, %187 : vector<8x64xf32>
    %cst_153 = arith.constant dense<0.000000e+00> : vector<8xf32>
    %189 = vector.multi_reduction <add>, %188, %cst_153 [1] : vector<8x64xf32> to vector<8xf32>
    %190 = vector.shape_cast %189 : vector<8xf32> to vector<8x1xf32>
    %cst_154 = arith.constant 6.400000e+01 : f32
    %191 = vector.broadcast %cst_154 : f32 to vector<8x1xf32>
    %192 = arith.divf %190, %191 : vector<8x1xf32>
    %193 = vector.broadcast %185 : vector<8x1xf32> to vector<8x64xf32>
    %194 = arith.subf %181, %193 : vector<8x64xf32>
    %cst_155 = arith.constant 9.99999974E-6 : f32
    %195 = vector.broadcast %cst_155 : f32 to vector<8x1xf32>
    %196 = arith.addf %192, %195 : vector<8x1xf32>
    %197 = math.rsqrt %196 : vector<8x1xf32>
    %198 = vector.broadcast %197 : vector<8x1xf32> to vector<8x64xf32>
    %199 = arith.mulf %194, %198 : vector<8x64xf32>
    %c0_156 = arith.constant 0 : index
    %c0_157 = arith.constant 0 : index
    %c0_158 = arith.constant 0 : index
    %200 = vector.load %arg12[%c0_156, %c0_157, %c0_158] : memref<2x1x64xf32, #tpu.memory_space<vmem>>, vector<1x1x64xf32>
    %201 = vector.shape_cast %200 : vector<1x1x64xf32> to vector<1x64xf32>
    %202 = vector.broadcast %201 : vector<1x64xf32> to vector<8x64xf32>
    %203 = arith.mulf %199, %202 : vector<8x64xf32>
    %c0_159 = arith.constant 0 : index
    %c0_160 = arith.constant 0 : index
    %c0_161 = arith.constant 0 : index
    %204 = vector.load %arg13[%c0_159, %c0_160, %c0_161] : memref<2x1x64xf32, #tpu.memory_space<vmem>>, vector<1x1x64xf32>
    %205 = vector.shape_cast %204 : vector<1x1x64xf32> to vector<1x64xf32>
    %206 = vector.broadcast %205 : vector<1x64xf32> to vector<8x64xf32>
    %207 = arith.addf %203, %206 : vector<8x64xf32>
    %208 = arith.truncf %207 : vector<8x64xf32> to vector<8x64xbf16>
    %c0_162 = arith.constant 0 : index
    %c0_163 = arith.constant 0 : index
    %c0_164 = arith.constant 0 : index
    %209 = vector.load %arg14[%c0_162, %c0_163, %c0_164] : memref<2x64x128xbf16, #tpu.memory_space<vmem>>, vector<1x64x128xbf16>
    %210 = vector.shape_cast %209 : vector<1x64x128xbf16> to vector<64x128xbf16>
    %cst_165 = arith.constant dense<0.000000e+00> : vector<8x128xf32>
    %211 = tpu.matmul %208, %210, %cst_165 {dimension_numbers = #tpu.dot_dimension_numbers<[1], [0], [0], [1], [0, 0, 1, 1], [], []>} : vector<8x64xbf16>, vector<64x128xbf16>, vector<8x128xf32> -> vector<8x128xf32>
    %c0_166 = arith.constant 0 : index
    %c0_167 = arith.constant 0 : index
    %c0_168 = arith.constant 0 : index
    %212 = vector.load %arg15[%c0_166, %c0_167, %c0_168] : memref<2x1x128xf32, #tpu.memory_space<vmem>>, vector<1x1x128xf32>
    %213 = vector.shape_cast %212 : vector<1x1x128xf32> to vector<1x128xf32>
    %214 = vector.broadcast %213 : vector<1x128xf32> to vector<8x128xf32>
    %215 = arith.addf %211, %214 : vector<8x128xf32>
    %cst_169 = arith.constant 0.000000e+00 : f32
    %216 = vector.broadcast %cst_169 : f32 to vector<8x128xf32>
    %217 = arith.maximumf %215, %216 : vector<8x128xf32>
    %218 = arith.truncf %217 : vector<8x128xf32> to vector<8x128xbf16>
    %c0_170 = arith.constant 0 : index
    %c0_171 = arith.constant 0 : index
    %c0_172 = arith.constant 0 : index
    %219 = vector.load %arg16[%c0_170, %c0_171, %c0_172] : memref<2x128x64xbf16, #tpu.memory_space<vmem>>, vector<1x128x64xbf16>
    %220 = vector.shape_cast %219 : vector<1x128x64xbf16> to vector<128x64xbf16>
    %cst_173 = arith.constant dense<0.000000e+00> : vector<8x64xf32>
    %221 = tpu.matmul %218, %220, %cst_173 {dimension_numbers = #tpu.dot_dimension_numbers<[1], [0], [0], [1], [0, 0, 1, 1], [], []>} : vector<8x128xbf16>, vector<128x64xbf16>, vector<8x64xf32> -> vector<8x64xf32>
    %c0_174 = arith.constant 0 : index
    %c0_175 = arith.constant 0 : index
    %c0_176 = arith.constant 0 : index
    %222 = vector.load %arg17[%c0_174, %c0_175, %c0_176] : memref<2x1x64xf32, #tpu.memory_space<vmem>>, vector<1x1x64xf32>
    %223 = vector.shape_cast %222 : vector<1x1x64xf32> to vector<1x64xf32>
    %224 = vector.broadcast %223 : vector<1x64xf32> to vector<8x64xf32>
    %225 = arith.addf %221, %224 : vector<8x64xf32>
    %226 = arith.addf %207, %225 : vector<8x64xf32>
    %cst_177 = arith.constant dense<0.000000e+00> : vector<8xf32>
    %227 = vector.multi_reduction <add>, %226, %cst_177 [1] : vector<8x64xf32> to vector<8xf32>
    %228 = vector.shape_cast %227 : vector<8xf32> to vector<8x1xf32>
    %cst_178 = arith.constant 6.400000e+01 : f32
    %229 = vector.broadcast %cst_178 : f32 to vector<8x1xf32>
    %230 = arith.divf %228, %229 : vector<8x1xf32>
    %231 = vector.broadcast %230 : vector<8x1xf32> to vector<8x64xf32>
    %232 = arith.subf %226, %231 : vector<8x64xf32>
    %233 = arith.mulf %232, %232 : vector<8x64xf32>
    %cst_179 = arith.constant dense<0.000000e+00> : vector<8xf32>
    %234 = vector.multi_reduction <add>, %233, %cst_179 [1] : vector<8x64xf32> to vector<8xf32>
    %235 = vector.shape_cast %234 : vector<8xf32> to vector<8x1xf32>
    %cst_180 = arith.constant 6.400000e+01 : f32
    %236 = vector.broadcast %cst_180 : f32 to vector<8x1xf32>
    %237 = arith.divf %235, %236 : vector<8x1xf32>
    %238 = vector.broadcast %230 : vector<8x1xf32> to vector<8x64xf32>
    %239 = arith.subf %226, %238 : vector<8x64xf32>
    %cst_181 = arith.constant 9.99999974E-6 : f32
    %240 = vector.broadcast %cst_181 : f32 to vector<8x1xf32>
    %241 = arith.addf %237, %240 : vector<8x1xf32>
    %242 = math.rsqrt %241 : vector<8x1xf32>
    %243 = vector.broadcast %242 : vector<8x1xf32> to vector<8x64xf32>
    %244 = arith.mulf %239, %243 : vector<8x64xf32>
    %c0_182 = arith.constant 0 : index
    %c0_183 = arith.constant 0 : index
    %c0_184 = arith.constant 0 : index
    %245 = vector.load %arg18[%c0_182, %c0_183, %c0_184] : memref<2x1x64xf32, #tpu.memory_space<vmem>>, vector<1x1x64xf32>
    %246 = vector.shape_cast %245 : vector<1x1x64xf32> to vector<1x64xf32>
    %247 = vector.broadcast %246 : vector<1x64xf32> to vector<8x64xf32>
    %248 = arith.mulf %244, %247 : vector<8x64xf32>
    %c0_185 = arith.constant 0 : index
    %c0_186 = arith.constant 0 : index
    %c0_187 = arith.constant 0 : index
    %249 = vector.load %arg19[%c0_185, %c0_186, %c0_187] : memref<2x1x64xf32, #tpu.memory_space<vmem>>, vector<1x1x64xf32>
    %250 = vector.shape_cast %249 : vector<1x1x64xf32> to vector<1x64xf32>
    %251 = vector.broadcast %250 : vector<1x64xf32> to vector<8x64xf32>
    %252 = arith.addf %248, %251 : vector<8x64xf32>
    %253 = arith.truncf %252 : vector<8x64xf32> to vector<8x64xbf16>
    %cst_188 = arith.constant 0.000000e+00 : f32
    %254 = vector.broadcast %cst_188 : f32 to vector<8x64xf32>
    %c1_189 = arith.constant 1 : index
    %c0_190 = arith.constant 0 : index
    %c0_191 = arith.constant 0 : index
    %c0_192 = arith.constant 0 : index
    %255 = vector.load %arg4[%c1_189, %c0_190, %c0_191, %c0_192] : memref<2x4x64x16xbf16, #tpu.memory_space<vmem>>, vector<1x1x64x16xbf16>
    %256 = vector.shape_cast %255 : vector<1x1x64x16xbf16> to vector<64x16xbf16>
    %cst_193 = arith.constant dense<0.000000e+00> : vector<8x16xf32>
    %257 = tpu.matmul %253, %256, %cst_193 {dimension_numbers = #tpu.dot_dimension_numbers<[1], [0], [0], [1], [0, 0, 1, 1], [], []>} : vector<8x64xbf16>, vector<64x16xbf16>, vector<8x16xf32> -> vector<8x16xf32>
    %c1_194 = arith.constant 1 : index
    %c0_195 = arith.constant 0 : index
    %c0_196 = arith.constant 0 : index
    %c0_197 = arith.constant 0 : index
    %258 = vector.load %arg5[%c1_194, %c0_195, %c0_196, %c0_197] : memref<2x4x1x16xf32, #tpu.memory_space<vmem>>, vector<1x1x1x16xf32>
    %259 = vector.shape_cast %258 : vector<1x1x1x16xf32> to vector<1x16xf32>
    %260 = vector.broadcast %259 : vector<1x16xf32> to vector<8x16xf32>
    %261 = arith.addf %257, %260 : vector<8x16xf32>
    %c1_198 = arith.constant 1 : index
    %c0_199 = arith.constant 0 : index
    %c0_200 = arith.constant 0 : index
    %c0_201 = arith.constant 0 : index
    %262 = vector.load %arg6[%c1_198, %c0_199, %c0_200, %c0_201] : memref<2x4x64x16xbf16, #tpu.memory_space<vmem>>, vector<1x1x64x16xbf16>
    %263 = vector.shape_cast %262 : vector<1x1x64x16xbf16> to vector<64x16xbf16>
    %cst_202 = arith.constant dense<0.000000e+00> : vector<8x16xf32>
    %264 = tpu.matmul %253, %263, %cst_202 {dimension_numbers = #tpu.dot_dimension_numbers<[1], [0], [0], [1], [0, 0, 1, 1], [], []>} : vector<8x64xbf16>, vector<64x16xbf16>, vector<8x16xf32> -> vector<8x16xf32>
    %c1_203 = arith.constant 1 : index
    %c0_204 = arith.constant 0 : index
    %c0_205 = arith.constant 0 : index
    %c0_206 = arith.constant 0 : index
    %265 = vector.load %arg7[%c1_203, %c0_204, %c0_205, %c0_206] : memref<2x4x1x16xf32, #tpu.memory_space<vmem>>, vector<1x1x1x16xf32>
    %266 = vector.shape_cast %265 : vector<1x1x1x16xf32> to vector<1x16xf32>
    %267 = vector.broadcast %266 : vector<1x16xf32> to vector<8x16xf32>
    %268 = arith.addf %264, %267 : vector<8x16xf32>
    %c1_207 = arith.constant 1 : index
    %c0_208 = arith.constant 0 : index
    %c0_209 = arith.constant 0 : index
    %c0_210 = arith.constant 0 : index
    %269 = vector.load %arg8[%c1_207, %c0_208, %c0_209, %c0_210] : memref<2x4x64x16xbf16, #tpu.memory_space<vmem>>, vector<1x1x64x16xbf16>
    %270 = vector.shape_cast %269 : vector<1x1x64x16xbf16> to vector<64x16xbf16>
    %cst_211 = arith.constant dense<0.000000e+00> : vector<8x16xf32>
    %271 = tpu.matmul %253, %270, %cst_211 {dimension_numbers = #tpu.dot_dimension_numbers<[1], [0], [0], [1], [0, 0, 1, 1], [], []>} : vector<8x64xbf16>, vector<64x16xbf16>, vector<8x16xf32> -> vector<8x16xf32>
    %c1_212 = arith.constant 1 : index
    %c0_213 = arith.constant 0 : index
    %c0_214 = arith.constant 0 : index
    %c0_215 = arith.constant 0 : index
    %272 = vector.load %arg9[%c1_212, %c0_213, %c0_214, %c0_215] : memref<2x4x1x16xf32, #tpu.memory_space<vmem>>, vector<1x1x1x16xf32>
    %273 = vector.shape_cast %272 : vector<1x1x1x16xf32> to vector<1x16xf32>
    %274 = vector.broadcast %273 : vector<1x16xf32> to vector<8x16xf32>
    %275 = arith.addf %271, %274 : vector<8x16xf32>
    %276 = arith.truncf %261 : vector<8x16xf32> to vector<8x16xbf16>
    %277 = arith.truncf %268 : vector<8x16xf32> to vector<8x16xbf16>
    %cst_216 = arith.constant dense<0.000000e+00> : vector<8x8xf32>
    %278 = tpu.matmul %276, %277, %cst_216 {dimension_numbers = #tpu.dot_dimension_numbers<[1], [1], [0], [0], [0, 0, 1, 0], [], []>} : vector<8x16xbf16>, vector<8x16xbf16>, vector<8x8xf32> -> vector<8x8xf32>
    %cst_217 = arith.constant dense<0xFF800000> : vector<8xf32>
    %279 = vector.multi_reduction <maximumf>, %278, %cst_217 [1] : vector<8x8xf32> to vector<8xf32>
    %280 = vector.shape_cast %279 : vector<8xf32> to vector<8x1xf32>
    %281 = vector.broadcast %280 : vector<8x1xf32> to vector<8x8xf32>
    %282 = arith.subf %278, %281 : vector<8x8xf32>
    %283 = math.exp %282 : vector<8x8xf32>
    %cst_218 = arith.constant dense<0.000000e+00> : vector<8xf32>
    %284 = vector.multi_reduction <add>, %283, %cst_218 [1] : vector<8x8xf32> to vector<8xf32>
    %285 = vector.shape_cast %284 : vector<8xf32> to vector<8x1xf32>
    %286 = tpu.reciprocal %285 {approx = true} : vector<8x1xf32> -> vector<8x1xf32>
    %287 = vector.broadcast %286 : vector<8x1xf32> to vector<8x8xf32>
    %288 = arith.mulf %283, %287 : vector<8x8xf32>
    %289 = arith.truncf %288 : vector<8x8xf32> to vector<8x8xbf16>
    %290 = arith.truncf %275 : vector<8x16xf32> to vector<8x16xbf16>
    %cst_219 = arith.constant dense<0.000000e+00> : vector<8x16xf32>
    %291 = tpu.matmul %289, %290, %cst_219 {dimension_numbers = #tpu.dot_dimension_numbers<[1], [0], [0], [1], [0, 0, 1, 1], [], []>} : vector<8x8xbf16>, vector<8x16xbf16>, vector<8x16xf32> -> vector<8x16xf32>
    %292 = arith.truncf %291 : vector<8x16xf32> to vector<8x16xbf16>
    %c1_220 = arith.constant 1 : index
    %c0_221 = arith.constant 0 : index
    %c0_222 = arith.constant 0 : index
    %c0_223 = arith.constant 0 : index
    %293 = vector.load %arg10[%c1_220, %c0_221, %c0_222, %c0_223] : memref<2x4x16x64xbf16, #tpu.memory_space<vmem>>, vector<1x1x16x64xbf16>
    %294 = vector.shape_cast %293 : vector<1x1x16x64xbf16> to vector<16x64xbf16>
    %cst_224 = arith.constant dense<0.000000e+00> : vector<8x64xf32>
    %295 = tpu.matmul %292, %294, %cst_224 {dimension_numbers = #tpu.dot_dimension_numbers<[1], [0], [0], [1], [0, 0, 1, 1], [], []>} : vector<8x16xbf16>, vector<16x64xbf16>, vector<8x64xf32> -> vector<8x64xf32>
    %296 = arith.addf %254, %295 : vector<8x64xf32>
    %c1_225 = arith.constant 1 : index
    %c1_226 = arith.constant 1 : index
    %c0_227 = arith.constant 0 : index
    %c0_228 = arith.constant 0 : index
    %297 = vector.load %arg4[%c1_225, %c1_226, %c0_227, %c0_228] : memref<2x4x64x16xbf16, #tpu.memory_space<vmem>>, vector<1x1x64x16xbf16>
    %298 = vector.shape_cast %297 : vector<1x1x64x16xbf16> to vector<64x16xbf16>
    %cst_229 = arith.constant dense<0.000000e+00> : vector<8x16xf32>
    %299 = tpu.matmul %253, %298, %cst_229 {dimension_numbers = #tpu.dot_dimension_numbers<[1], [0], [0], [1], [0, 0, 1, 1], [], []>} : vector<8x64xbf16>, vector<64x16xbf16>, vector<8x16xf32> -> vector<8x16xf32>
    %c1_230 = arith.constant 1 : index
    %c1_231 = arith.constant 1 : index
    %c0_232 = arith.constant 0 : index
    %c0_233 = arith.constant 0 : index
    %300 = vector.load %arg5[%c1_230, %c1_231, %c0_232, %c0_233] : memref<2x4x1x16xf32, #tpu.memory_space<vmem>>, vector<1x1x1x16xf32>
    %301 = vector.shape_cast %300 : vector<1x1x1x16xf32> to vector<1x16xf32>
    %302 = vector.broadcast %301 : vector<1x16xf32> to vector<8x16xf32>
    %303 = arith.addf %299, %302 : vector<8x16xf32>
    %c1_234 = arith.constant 1 : index
    %c1_235 = arith.constant 1 : index
    %c0_236 = arith.constant 0 : index
    %c0_237 = arith.constant 0 : index
    %304 = vector.load %arg6[%c1_234, %c1_235, %c0_236, %c0_237] : memref<2x4x64x16xbf16, #tpu.memory_space<vmem>>, vector<1x1x64x16xbf16>
    %305 = vector.shape_cast %304 : vector<1x1x64x16xbf16> to vector<64x16xbf16>
    %cst_238 = arith.constant dense<0.000000e+00> : vector<8x16xf32>
    %306 = tpu.matmul %253, %305, %cst_238 {dimension_numbers = #tpu.dot_dimension_numbers<[1], [0], [0], [1], [0, 0, 1, 1], [], []>} : vector<8x64xbf16>, vector<64x16xbf16>, vector<8x16xf32> -> vector<8x16xf32>
    %c1_239 = arith.constant 1 : index
    %c1_240 = arith.constant 1 : index
    %c0_241 = arith.constant 0 : index
    %c0_242 = arith.constant 0 : index
    %307 = vector.load %arg7[%c1_239, %c1_240, %c0_241, %c0_242] : memref<2x4x1x16xf32, #tpu.memory_space<vmem>>, vector<1x1x1x16xf32>
    %308 = vector.shape_cast %307 : vector<1x1x1x16xf32> to vector<1x16xf32>
    %309 = vector.broadcast %308 : vector<1x16xf32> to vector<8x16xf32>
    %310 = arith.addf %306, %309 : vector<8x16xf32>
    %c1_243 = arith.constant 1 : index
    %c1_244 = arith.constant 1 : index
    %c0_245 = arith.constant 0 : index
    %c0_246 = arith.constant 0 : index
    %311 = vector.load %arg8[%c1_243, %c1_244, %c0_245, %c0_246] : memref<2x4x64x16xbf16, #tpu.memory_space<vmem>>, vector<1x1x64x16xbf16>
    %312 = vector.shape_cast %311 : vector<1x1x64x16xbf16> to vector<64x16xbf16>
    %cst_247 = arith.constant dense<0.000000e+00> : vector<8x16xf32>
    %313 = tpu.matmul %253, %312, %cst_247 {dimension_numbers = #tpu.dot_dimension_numbers<[1], [0], [0], [1], [0, 0, 1, 1], [], []>} : vector<8x64xbf16>, vector<64x16xbf16>, vector<8x16xf32> -> vector<8x16xf32>
    %c1_248 = arith.constant 1 : index
    %c1_249 = arith.constant 1 : index
    %c0_250 = arith.constant 0 : index
    %c0_251 = arith.constant 0 : index
    %314 = vector.load %arg9[%c1_248, %c1_249, %c0_250, %c0_251] : memref<2x4x1x16xf32, #tpu.memory_space<vmem>>, vector<1x1x1x16xf32>
    %315 = vector.shape_cast %314 : vector<1x1x1x16xf32> to vector<1x16xf32>
    %316 = vector.broadcast %315 : vector<1x16xf32> to vector<8x16xf32>
    %317 = arith.addf %313, %316 : vector<8x16xf32>
    %318 = arith.truncf %303 : vector<8x16xf32> to vector<8x16xbf16>
    %319 = arith.truncf %310 : vector<8x16xf32> to vector<8x16xbf16>
    %cst_252 = arith.constant dense<0.000000e+00> : vector<8x8xf32>
    %320 = tpu.matmul %318, %319, %cst_252 {dimension_numbers = #tpu.dot_dimension_numbers<[1], [1], [0], [0], [0, 0, 1, 0], [], []>} : vector<8x16xbf16>, vector<8x16xbf16>, vector<8x8xf32> -> vector<8x8xf32>
    %cst_253 = arith.constant dense<0xFF800000> : vector<8xf32>
    %321 = vector.multi_reduction <maximumf>, %320, %cst_253 [1] : vector<8x8xf32> to vector<8xf32>
    %322 = vector.shape_cast %321 : vector<8xf32> to vector<8x1xf32>
    %323 = vector.broadcast %322 : vector<8x1xf32> to vector<8x8xf32>
    %324 = arith.subf %320, %323 : vector<8x8xf32>
    %325 = math.exp %324 : vector<8x8xf32>
    %cst_254 = arith.constant dense<0.000000e+00> : vector<8xf32>
    %326 = vector.multi_reduction <add>, %325, %cst_254 [1] : vector<8x8xf32> to vector<8xf32>
    %327 = vector.shape_cast %326 : vector<8xf32> to vector<8x1xf32>
    %328 = tpu.reciprocal %327 {approx = true} : vector<8x1xf32> -> vector<8x1xf32>
    %329 = vector.broadcast %328 : vector<8x1xf32> to vector<8x8xf32>
    %330 = arith.mulf %325, %329 : vector<8x8xf32>
    %331 = arith.truncf %330 : vector<8x8xf32> to vector<8x8xbf16>
    %332 = arith.truncf %317 : vector<8x16xf32> to vector<8x16xbf16>
    %cst_255 = arith.constant dense<0.000000e+00> : vector<8x16xf32>
    %333 = tpu.matmul %331, %332, %cst_255 {dimension_numbers = #tpu.dot_dimension_numbers<[1], [0], [0], [1], [0, 0, 1, 1], [], []>} : vector<8x8xbf16>, vector<8x16xbf16>, vector<8x16xf32> -> vector<8x16xf32>
    %334 = arith.truncf %333 : vector<8x16xf32> to vector<8x16xbf16>
    %c1_256 = arith.constant 1 : index
    %c1_257 = arith.constant 1 : index
    %c0_258 = arith.constant 0 : index
    %c0_259 = arith.constant 0 : index
    %335 = vector.load %arg10[%c1_256, %c1_257, %c0_258, %c0_259] : memref<2x4x16x64xbf16, #tpu.memory_space<vmem>>, vector<1x1x16x64xbf16>
    %336 = vector.shape_cast %335 : vector<1x1x16x64xbf16> to vector<16x64xbf16>
    %cst_260 = arith.constant dense<0.000000e+00> : vector<8x64xf32>
    %337 = tpu.matmul %334, %336, %cst_260 {dimension_numbers = #tpu.dot_dimension_numbers<[1], [0], [0], [1], [0, 0, 1, 1], [], []>} : vector<8x16xbf16>, vector<16x64xbf16>, vector<8x64xf32> -> vector<8x64xf32>
    %338 = arith.addf %296, %337 : vector<8x64xf32>
    %c1_261 = arith.constant 1 : index
    %c2_262 = arith.constant 2 : index
    %c0_263 = arith.constant 0 : index
    %c0_264 = arith.constant 0 : index
    %339 = vector.load %arg4[%c1_261, %c2_262, %c0_263, %c0_264] : memref<2x4x64x16xbf16, #tpu.memory_space<vmem>>, vector<1x1x64x16xbf16>
    %340 = vector.shape_cast %339 : vector<1x1x64x16xbf16> to vector<64x16xbf16>
    %cst_265 = arith.constant dense<0.000000e+00> : vector<8x16xf32>
    %341 = tpu.matmul %253, %340, %cst_265 {dimension_numbers = #tpu.dot_dimension_numbers<[1], [0], [0], [1], [0, 0, 1, 1], [], []>} : vector<8x64xbf16>, vector<64x16xbf16>, vector<8x16xf32> -> vector<8x16xf32>
    %c1_266 = arith.constant 1 : index
    %c2_267 = arith.constant 2 : index
    %c0_268 = arith.constant 0 : index
    %c0_269 = arith.constant 0 : index
    %342 = vector.load %arg5[%c1_266, %c2_267, %c0_268, %c0_269] : memref<2x4x1x16xf32, #tpu.memory_space<vmem>>, vector<1x1x1x16xf32>
    %343 = vector.shape_cast %342 : vector<1x1x1x16xf32> to vector<1x16xf32>
    %344 = vector.broadcast %343 : vector<1x16xf32> to vector<8x16xf32>
    %345 = arith.addf %341, %344 : vector<8x16xf32>
    %c1_270 = arith.constant 1 : index
    %c2_271 = arith.constant 2 : index
    %c0_272 = arith.constant 0 : index
    %c0_273 = arith.constant 0 : index
    %346 = vector.load %arg6[%c1_270, %c2_271, %c0_272, %c0_273] : memref<2x4x64x16xbf16, #tpu.memory_space<vmem>>, vector<1x1x64x16xbf16>
    %347 = vector.shape_cast %346 : vector<1x1x64x16xbf16> to vector<64x16xbf16>
    %cst_274 = arith.constant dense<0.000000e+00> : vector<8x16xf32>
    %348 = tpu.matmul %253, %347, %cst_274 {dimension_numbers = #tpu.dot_dimension_numbers<[1], [0], [0], [1], [0, 0, 1, 1], [], []>} : vector<8x64xbf16>, vector<64x16xbf16>, vector<8x16xf32> -> vector<8x16xf32>
    %c1_275 = arith.constant 1 : index
    %c2_276 = arith.constant 2 : index
    %c0_277 = arith.constant 0 : index
    %c0_278 = arith.constant 0 : index
    %349 = vector.load %arg7[%c1_275, %c2_276, %c0_277, %c0_278] : memref<2x4x1x16xf32, #tpu.memory_space<vmem>>, vector<1x1x1x16xf32>
    %350 = vector.shape_cast %349 : vector<1x1x1x16xf32> to vector<1x16xf32>
    %351 = vector.broadcast %350 : vector<1x16xf32> to vector<8x16xf32>
    %352 = arith.addf %348, %351 : vector<8x16xf32>
    %c1_279 = arith.constant 1 : index
    %c2_280 = arith.constant 2 : index
    %c0_281 = arith.constant 0 : index
    %c0_282 = arith.constant 0 : index
    %353 = vector.load %arg8[%c1_279, %c2_280, %c0_281, %c0_282] : memref<2x4x64x16xbf16, #tpu.memory_space<vmem>>, vector<1x1x64x16xbf16>
    %354 = vector.shape_cast %353 : vector<1x1x64x16xbf16> to vector<64x16xbf16>
    %cst_283 = arith.constant dense<0.000000e+00> : vector<8x16xf32>
    %355 = tpu.matmul %253, %354, %cst_283 {dimension_numbers = #tpu.dot_dimension_numbers<[1], [0], [0], [1], [0, 0, 1, 1], [], []>} : vector<8x64xbf16>, vector<64x16xbf16>, vector<8x16xf32> -> vector<8x16xf32>
    %c1_284 = arith.constant 1 : index
    %c2_285 = arith.constant 2 : index
    %c0_286 = arith.constant 0 : index
    %c0_287 = arith.constant 0 : index
    %356 = vector.load %arg9[%c1_284, %c2_285, %c0_286, %c0_287] : memref<2x4x1x16xf32, #tpu.memory_space<vmem>>, vector<1x1x1x16xf32>
    %357 = vector.shape_cast %356 : vector<1x1x1x16xf32> to vector<1x16xf32>
    %358 = vector.broadcast %357 : vector<1x16xf32> to vector<8x16xf32>
    %359 = arith.addf %355, %358 : vector<8x16xf32>
    %360 = arith.truncf %345 : vector<8x16xf32> to vector<8x16xbf16>
    %361 = arith.truncf %352 : vector<8x16xf32> to vector<8x16xbf16>
    %cst_288 = arith.constant dense<0.000000e+00> : vector<8x8xf32>
    %362 = tpu.matmul %360, %361, %cst_288 {dimension_numbers = #tpu.dot_dimension_numbers<[1], [1], [0], [0], [0, 0, 1, 0], [], []>} : vector<8x16xbf16>, vector<8x16xbf16>, vector<8x8xf32> -> vector<8x8xf32>
    %cst_289 = arith.constant dense<0xFF800000> : vector<8xf32>
    %363 = vector.multi_reduction <maximumf>, %362, %cst_289 [1] : vector<8x8xf32> to vector<8xf32>
    %364 = vector.shape_cast %363 : vector<8xf32> to vector<8x1xf32>
    %365 = vector.broadcast %364 : vector<8x1xf32> to vector<8x8xf32>
    %366 = arith.subf %362, %365 : vector<8x8xf32>
    %367 = math.exp %366 : vector<8x8xf32>
    %cst_290 = arith.constant dense<0.000000e+00> : vector<8xf32>
    %368 = vector.multi_reduction <add>, %367, %cst_290 [1] : vector<8x8xf32> to vector<8xf32>
    %369 = vector.shape_cast %368 : vector<8xf32> to vector<8x1xf32>
    %370 = tpu.reciprocal %369 {approx = true} : vector<8x1xf32> -> vector<8x1xf32>
    %371 = vector.broadcast %370 : vector<8x1xf32> to vector<8x8xf32>
    %372 = arith.mulf %367, %371 : vector<8x8xf32>
    %373 = arith.truncf %372 : vector<8x8xf32> to vector<8x8xbf16>
    %374 = arith.truncf %359 : vector<8x16xf32> to vector<8x16xbf16>
    %cst_291 = arith.constant dense<0.000000e+00> : vector<8x16xf32>
    %375 = tpu.matmul %373, %374, %cst_291 {dimension_numbers = #tpu.dot_dimension_numbers<[1], [0], [0], [1], [0, 0, 1, 1], [], []>} : vector<8x8xbf16>, vector<8x16xbf16>, vector<8x16xf32> -> vector<8x16xf32>
    %376 = arith.truncf %375 : vector<8x16xf32> to vector<8x16xbf16>
    %c1_292 = arith.constant 1 : index
    %c2_293 = arith.constant 2 : index
    %c0_294 = arith.constant 0 : index
    %c0_295 = arith.constant 0 : index
    %377 = vector.load %arg10[%c1_292, %c2_293, %c0_294, %c0_295] : memref<2x4x16x64xbf16, #tpu.memory_space<vmem>>, vector<1x1x16x64xbf16>
    %378 = vector.shape_cast %377 : vector<1x1x16x64xbf16> to vector<16x64xbf16>
    %cst_296 = arith.constant dense<0.000000e+00> : vector<8x64xf32>
    %379 = tpu.matmul %376, %378, %cst_296 {dimension_numbers = #tpu.dot_dimension_numbers<[1], [0], [0], [1], [0, 0, 1, 1], [], []>} : vector<8x16xbf16>, vector<16x64xbf16>, vector<8x64xf32> -> vector<8x64xf32>
    %380 = arith.addf %338, %379 : vector<8x64xf32>
    %c1_297 = arith.constant 1 : index
    %c3_298 = arith.constant 3 : index
    %c0_299 = arith.constant 0 : index
    %c0_300 = arith.constant 0 : index
    %381 = vector.load %arg4[%c1_297, %c3_298, %c0_299, %c0_300] : memref<2x4x64x16xbf16, #tpu.memory_space<vmem>>, vector<1x1x64x16xbf16>
    %382 = vector.shape_cast %381 : vector<1x1x64x16xbf16> to vector<64x16xbf16>
    %cst_301 = arith.constant dense<0.000000e+00> : vector<8x16xf32>
    %383 = tpu.matmul %253, %382, %cst_301 {dimension_numbers = #tpu.dot_dimension_numbers<[1], [0], [0], [1], [0, 0, 1, 1], [], []>} : vector<8x64xbf16>, vector<64x16xbf16>, vector<8x16xf32> -> vector<8x16xf32>
    %c1_302 = arith.constant 1 : index
    %c3_303 = arith.constant 3 : index
    %c0_304 = arith.constant 0 : index
    %c0_305 = arith.constant 0 : index
    %384 = vector.load %arg5[%c1_302, %c3_303, %c0_304, %c0_305] : memref<2x4x1x16xf32, #tpu.memory_space<vmem>>, vector<1x1x1x16xf32>
    %385 = vector.shape_cast %384 : vector<1x1x1x16xf32> to vector<1x16xf32>
    %386 = vector.broadcast %385 : vector<1x16xf32> to vector<8x16xf32>
    %387 = arith.addf %383, %386 : vector<8x16xf32>
    %c1_306 = arith.constant 1 : index
    %c3_307 = arith.constant 3 : index
    %c0_308 = arith.constant 0 : index
    %c0_309 = arith.constant 0 : index
    %388 = vector.load %arg6[%c1_306, %c3_307, %c0_308, %c0_309] : memref<2x4x64x16xbf16, #tpu.memory_space<vmem>>, vector<1x1x64x16xbf16>
    %389 = vector.shape_cast %388 : vector<1x1x64x16xbf16> to vector<64x16xbf16>
    %cst_310 = arith.constant dense<0.000000e+00> : vector<8x16xf32>
    %390 = tpu.matmul %253, %389, %cst_310 {dimension_numbers = #tpu.dot_dimension_numbers<[1], [0], [0], [1], [0, 0, 1, 1], [], []>} : vector<8x64xbf16>, vector<64x16xbf16>, vector<8x16xf32> -> vector<8x16xf32>
    %c1_311 = arith.constant 1 : index
    %c3_312 = arith.constant 3 : index
    %c0_313 = arith.constant 0 : index
    %c0_314 = arith.constant 0 : index
    %391 = vector.load %arg7[%c1_311, %c3_312, %c0_313, %c0_314] : memref<2x4x1x16xf32, #tpu.memory_space<vmem>>, vector<1x1x1x16xf32>
    %392 = vector.shape_cast %391 : vector<1x1x1x16xf32> to vector<1x16xf32>
    %393 = vector.broadcast %392 : vector<1x16xf32> to vector<8x16xf32>
    %394 = arith.addf %390, %393 : vector<8x16xf32>
    %c1_315 = arith.constant 1 : index
    %c3_316 = arith.constant 3 : index
    %c0_317 = arith.constant 0 : index
    %c0_318 = arith.constant 0 : index
    %395 = vector.load %arg8[%c1_315, %c3_316, %c0_317, %c0_318] : memref<2x4x64x16xbf16, #tpu.memory_space<vmem>>, vector<1x1x64x16xbf16>
    %396 = vector.shape_cast %395 : vector<1x1x64x16xbf16> to vector<64x16xbf16>
    %cst_319 = arith.constant dense<0.000000e+00> : vector<8x16xf32>
    %397 = tpu.matmul %253, %396, %cst_319 {dimension_numbers = #tpu.dot_dimension_numbers<[1], [0], [0], [1], [0, 0, 1, 1], [], []>} : vector<8x64xbf16>, vector<64x16xbf16>, vector<8x16xf32> -> vector<8x16xf32>
    %c1_320 = arith.constant 1 : index
    %c3_321 = arith.constant 3 : index
    %c0_322 = arith.constant 0 : index
    %c0_323 = arith.constant 0 : index
    %398 = vector.load %arg9[%c1_320, %c3_321, %c0_322, %c0_323] : memref<2x4x1x16xf32, #tpu.memory_space<vmem>>, vector<1x1x1x16xf32>
    %399 = vector.shape_cast %398 : vector<1x1x1x16xf32> to vector<1x16xf32>
    %400 = vector.broadcast %399 : vector<1x16xf32> to vector<8x16xf32>
    %401 = arith.addf %397, %400 : vector<8x16xf32>
    %402 = arith.truncf %387 : vector<8x16xf32> to vector<8x16xbf16>
    %403 = arith.truncf %394 : vector<8x16xf32> to vector<8x16xbf16>
    %cst_324 = arith.constant dense<0.000000e+00> : vector<8x8xf32>
    %404 = tpu.matmul %402, %403, %cst_324 {dimension_numbers = #tpu.dot_dimension_numbers<[1], [1], [0], [0], [0, 0, 1, 0], [], []>} : vector<8x16xbf16>, vector<8x16xbf16>, vector<8x8xf32> -> vector<8x8xf32>
    %cst_325 = arith.constant dense<0xFF800000> : vector<8xf32>
    %405 = vector.multi_reduction <maximumf>, %404, %cst_325 [1] : vector<8x8xf32> to vector<8xf32>
    %406 = vector.shape_cast %405 : vector<8xf32> to vector<8x1xf32>
    %407 = vector.broadcast %406 : vector<8x1xf32> to vector<8x8xf32>
    %408 = arith.subf %404, %407 : vector<8x8xf32>
    %409 = math.exp %408 : vector<8x8xf32>
    %cst_326 = arith.constant dense<0.000000e+00> : vector<8xf32>
    %410 = vector.multi_reduction <add>, %409, %cst_326 [1] : vector<8x8xf32> to vector<8xf32>
    %411 = vector.shape_cast %410 : vector<8xf32> to vector<8x1xf32>
    %412 = tpu.reciprocal %411 {approx = true} : vector<8x1xf32> -> vector<8x1xf32>
    %413 = vector.broadcast %412 : vector<8x1xf32> to vector<8x8xf32>
    %414 = arith.mulf %409, %413 : vector<8x8xf32>
    %415 = arith.truncf %414 : vector<8x8xf32> to vector<8x8xbf16>
    %416 = arith.truncf %401 : vector<8x16xf32> to vector<8x16xbf16>
    %cst_327 = arith.constant dense<0.000000e+00> : vector<8x16xf32>
    %417 = tpu.matmul %415, %416, %cst_327 {dimension_numbers = #tpu.dot_dimension_numbers<[1], [0], [0], [1], [0, 0, 1, 1], [], []>} : vector<8x8xbf16>, vector<8x16xbf16>, vector<8x16xf32> -> vector<8x16xf32>
    %418 = arith.truncf %417 : vector<8x16xf32> to vector<8x16xbf16>
    %c1_328 = arith.constant 1 : index
    %c3_329 = arith.constant 3 : index
    %c0_330 = arith.constant 0 : index
    %c0_331 = arith.constant 0 : index
    %419 = vector.load %arg10[%c1_328, %c3_329, %c0_330, %c0_331] : memref<2x4x16x64xbf16, #tpu.memory_space<vmem>>, vector<1x1x16x64xbf16>
    %420 = vector.shape_cast %419 : vector<1x1x16x64xbf16> to vector<16x64xbf16>
    %cst_332 = arith.constant dense<0.000000e+00> : vector<8x64xf32>
    %421 = tpu.matmul %418, %420, %cst_332 {dimension_numbers = #tpu.dot_dimension_numbers<[1], [0], [0], [1], [0, 0, 1, 1], [], []>} : vector<8x16xbf16>, vector<16x64xbf16>, vector<8x64xf32> -> vector<8x64xf32>
    %422 = arith.addf %380, %421 : vector<8x64xf32>
    %c1_333 = arith.constant 1 : index
    %c0_334 = arith.constant 0 : index
    %c0_335 = arith.constant 0 : index
    %423 = vector.load %arg11[%c1_333, %c0_334, %c0_335] : memref<2x1x64xf32, #tpu.memory_space<vmem>>, vector<1x1x64xf32>
    %424 = vector.shape_cast %423 : vector<1x1x64xf32> to vector<1x64xf32>
    %425 = vector.broadcast %424 : vector<1x64xf32> to vector<8x64xf32>
    %426 = arith.addf %422, %425 : vector<8x64xf32>
    %427 = arith.addf %252, %426 : vector<8x64xf32>
    %cst_336 = arith.constant dense<0.000000e+00> : vector<8xf32>
    %428 = vector.multi_reduction <add>, %427, %cst_336 [1] : vector<8x64xf32> to vector<8xf32>
    %429 = vector.shape_cast %428 : vector<8xf32> to vector<8x1xf32>
    %cst_337 = arith.constant 6.400000e+01 : f32
    %430 = vector.broadcast %cst_337 : f32 to vector<8x1xf32>
    %431 = arith.divf %429, %430 : vector<8x1xf32>
    %432 = vector.broadcast %431 : vector<8x1xf32> to vector<8x64xf32>
    %433 = arith.subf %427, %432 : vector<8x64xf32>
    %434 = arith.mulf %433, %433 : vector<8x64xf32>
    %cst_338 = arith.constant dense<0.000000e+00> : vector<8xf32>
    %435 = vector.multi_reduction <add>, %434, %cst_338 [1] : vector<8x64xf32> to vector<8xf32>
    %436 = vector.shape_cast %435 : vector<8xf32> to vector<8x1xf32>
    %cst_339 = arith.constant 6.400000e+01 : f32
    %437 = vector.broadcast %cst_339 : f32 to vector<8x1xf32>
    %438 = arith.divf %436, %437 : vector<8x1xf32>
    %439 = vector.broadcast %431 : vector<8x1xf32> to vector<8x64xf32>
    %440 = arith.subf %427, %439 : vector<8x64xf32>
    %cst_340 = arith.constant 9.99999974E-6 : f32
    %441 = vector.broadcast %cst_340 : f32 to vector<8x1xf32>
    %442 = arith.addf %438, %441 : vector<8x1xf32>
    %443 = math.rsqrt %442 : vector<8x1xf32>
    %444 = vector.broadcast %443 : vector<8x1xf32> to vector<8x64xf32>
    %445 = arith.mulf %440, %444 : vector<8x64xf32>
    %c1_341 = arith.constant 1 : index
    %c0_342 = arith.constant 0 : index
    %c0_343 = arith.constant 0 : index
    %446 = vector.load %arg12[%c1_341, %c0_342, %c0_343] : memref<2x1x64xf32, #tpu.memory_space<vmem>>, vector<1x1x64xf32>
    %447 = vector.shape_cast %446 : vector<1x1x64xf32> to vector<1x64xf32>
    %448 = vector.broadcast %447 : vector<1x64xf32> to vector<8x64xf32>
    %449 = arith.mulf %445, %448 : vector<8x64xf32>
    %c1_344 = arith.constant 1 : index
    %c0_345 = arith.constant 0 : index
    %c0_346 = arith.constant 0 : index
    %450 = vector.load %arg13[%c1_344, %c0_345, %c0_346] : memref<2x1x64xf32, #tpu.memory_space<vmem>>, vector<1x1x64xf32>
    %451 = vector.shape_cast %450 : vector<1x1x64xf32> to vector<1x64xf32>
    %452 = vector.broadcast %451 : vector<1x64xf32> to vector<8x64xf32>
    %453 = arith.addf %449, %452 : vector<8x64xf32>
    %454 = arith.truncf %453 : vector<8x64xf32> to vector<8x64xbf16>
    %c1_347 = arith.constant 1 : index
    %c0_348 = arith.constant 0 : index
    %c0_349 = arith.constant 0 : index
    %455 = vector.load %arg14[%c1_347, %c0_348, %c0_349] : memref<2x64x128xbf16, #tpu.memory_space<vmem>>, vector<1x64x128xbf16>
    %456 = vector.shape_cast %455 : vector<1x64x128xbf16> to vector<64x128xbf16>
    %cst_350 = arith.constant dense<0.000000e+00> : vector<8x128xf32>
    %457 = tpu.matmul %454, %456, %cst_350 {dimension_numbers = #tpu.dot_dimension_numbers<[1], [0], [0], [1], [0, 0, 1, 1], [], []>} : vector<8x64xbf16>, vector<64x128xbf16>, vector<8x128xf32> -> vector<8x128xf32>
    %c1_351 = arith.constant 1 : index
    %c0_352 = arith.constant 0 : index
    %c0_353 = arith.constant 0 : index
    %458 = vector.load %arg15[%c1_351, %c0_352, %c0_353] : memref<2x1x128xf32, #tpu.memory_space<vmem>>, vector<1x1x128xf32>
    %459 = vector.shape_cast %458 : vector<1x1x128xf32> to vector<1x128xf32>
    %460 = vector.broadcast %459 : vector<1x128xf32> to vector<8x128xf32>
    %461 = arith.addf %457, %460 : vector<8x128xf32>
    %cst_354 = arith.constant 0.000000e+00 : f32
    %462 = vector.broadcast %cst_354 : f32 to vector<8x128xf32>
    %463 = arith.maximumf %461, %462 : vector<8x128xf32>
    %464 = arith.truncf %463 : vector<8x128xf32> to vector<8x128xbf16>
    %c1_355 = arith.constant 1 : index
    %c0_356 = arith.constant 0 : index
    %c0_357 = arith.constant 0 : index
    %465 = vector.load %arg16[%c1_355, %c0_356, %c0_357] : memref<2x128x64xbf16, #tpu.memory_space<vmem>>, vector<1x128x64xbf16>
    %466 = vector.shape_cast %465 : vector<1x128x64xbf16> to vector<128x64xbf16>
    %cst_358 = arith.constant dense<0.000000e+00> : vector<8x64xf32>
    %467 = tpu.matmul %464, %466, %cst_358 {dimension_numbers = #tpu.dot_dimension_numbers<[1], [0], [0], [1], [0, 0, 1, 1], [], []>} : vector<8x128xbf16>, vector<128x64xbf16>, vector<8x64xf32> -> vector<8x64xf32>
    %c1_359 = arith.constant 1 : index
    %c0_360 = arith.constant 0 : index
    %c0_361 = arith.constant 0 : index
    %468 = vector.load %arg17[%c1_359, %c0_360, %c0_361] : memref<2x1x64xf32, #tpu.memory_space<vmem>>, vector<1x1x64xf32>
    %469 = vector.shape_cast %468 : vector<1x1x64xf32> to vector<1x64xf32>
    %470 = vector.broadcast %469 : vector<1x64xf32> to vector<8x64xf32>
    %471 = arith.addf %467, %470 : vector<8x64xf32>
    %472 = arith.addf %453, %471 : vector<8x64xf32>
    %cst_362 = arith.constant dense<0.000000e+00> : vector<8xf32>
    %473 = vector.multi_reduction <add>, %472, %cst_362 [1] : vector<8x64xf32> to vector<8xf32>
    %474 = vector.shape_cast %473 : vector<8xf32> to vector<8x1xf32>
    %cst_363 = arith.constant 6.400000e+01 : f32
    %475 = vector.broadcast %cst_363 : f32 to vector<8x1xf32>
    %476 = arith.divf %474, %475 : vector<8x1xf32>
    %477 = vector.broadcast %476 : vector<8x1xf32> to vector<8x64xf32>
    %478 = arith.subf %472, %477 : vector<8x64xf32>
    %479 = arith.mulf %478, %478 : vector<8x64xf32>
    %cst_364 = arith.constant dense<0.000000e+00> : vector<8xf32>
    %480 = vector.multi_reduction <add>, %479, %cst_364 [1] : vector<8x64xf32> to vector<8xf32>
    %481 = vector.shape_cast %480 : vector<8xf32> to vector<8x1xf32>
    %cst_365 = arith.constant 6.400000e+01 : f32
    %482 = vector.broadcast %cst_365 : f32 to vector<8x1xf32>
    %483 = arith.divf %481, %482 : vector<8x1xf32>
    %484 = vector.broadcast %476 : vector<8x1xf32> to vector<8x64xf32>
    %485 = arith.subf %472, %484 : vector<8x64xf32>
    %cst_366 = arith.constant 9.99999974E-6 : f32
    %486 = vector.broadcast %cst_366 : f32 to vector<8x1xf32>
    %487 = arith.addf %483, %486 : vector<8x1xf32>
    %488 = math.rsqrt %487 : vector<8x1xf32>
    %489 = vector.broadcast %488 : vector<8x1xf32> to vector<8x64xf32>
    %490 = arith.mulf %485, %489 : vector<8x64xf32>
    %c1_367 = arith.constant 1 : index
    %c0_368 = arith.constant 0 : index
    %c0_369 = arith.constant 0 : index
    %491 = vector.load %arg18[%c1_367, %c0_368, %c0_369] : memref<2x1x64xf32, #tpu.memory_space<vmem>>, vector<1x1x64xf32>
    %492 = vector.shape_cast %491 : vector<1x1x64xf32> to vector<1x64xf32>
    %493 = vector.broadcast %492 : vector<1x64xf32> to vector<8x64xf32>
    %494 = arith.mulf %490, %493 : vector<8x64xf32>
    %c1_370 = arith.constant 1 : index
    %c0_371 = arith.constant 0 : index
    %c0_372 = arith.constant 0 : index
    %495 = vector.load %arg19[%c1_370, %c0_371, %c0_372] : memref<2x1x64xf32, #tpu.memory_space<vmem>>, vector<1x1x64xf32>
    %496 = vector.shape_cast %495 : vector<1x1x64xf32> to vector<1x64xf32>
    %497 = vector.broadcast %496 : vector<1x64xf32> to vector<8x64xf32>
    %498 = arith.addf %494, %497 : vector<8x64xf32>
    %cst_373 = arith.constant dense<0.000000e+00> : vector<64xf32>
    %499 = vector.multi_reduction <add>, %498, %cst_373 [0] : vector<8x64xf32> to vector<64xf32>
    %500 = vector.shape_cast %499 : vector<64xf32> to vector<1x64xf32>
    %cst_374 = arith.constant 8.000000e+00 : f32
    %501 = vector.broadcast %cst_374 : f32 to vector<1x64xf32>
    %502 = arith.divf %500, %501 : vector<1x64xf32>
    %503 = arith.truncf %502 : vector<1x64xf32> to vector<1x64xbf16>
    %c0_375 = arith.constant 0 : index
    %c0_376 = arith.constant 0 : index
    %504 = vector.load %arg20[%c0_375, %c0_376] : memref<64x128xbf16, #tpu.memory_space<vmem>>, vector<64x128xbf16>
    %cst_377 = arith.constant dense<0.000000e+00> : vector<1x128xf32>
    %505 = tpu.matmul %503, %504, %cst_377 {dimension_numbers = #tpu.dot_dimension_numbers<[1], [0], [0], [1], [0, 0, 1, 1], [], []>} : vector<1x64xbf16>, vector<64x128xbf16>, vector<1x128xf32> -> vector<1x128xf32>
    %c0_378 = arith.constant 0 : index
    %c0_379 = arith.constant 0 : index
    %506 = vector.load %arg21[%c0_378, %c0_379] : memref<1x128xf32, #tpu.memory_space<vmem>>, vector<1x128xf32>
    %507 = arith.addf %505, %506 : vector<1x128xf32>
    %c0_380 = arith.constant 0 : index
    %c0_381 = arith.constant 0 : index
    %c0_382 = arith.constant 0 : index
    %508 = vector.load %arg22[%c0_380, %c0_381, %c0_382] : memref<1x1x128xf32, #tpu.memory_space<vmem>>, vector<1x1x128xf32>
    %509 = vector.shape_cast %508 : vector<1x1x128xf32> to vector<1x128xf32>
    %510 = vector.shape_cast %507 : vector<1x128xf32> to vector<1x1x128xf32>
    tpu.vector_store %arg22[%c0_380, %c0_381, %c0_382], %510 {strides = array<i32>} : memref<1x1x128xf32, #tpu.memory_space<vmem>>, vector<1x1x128xf32>,
    return
  }
  func.func @transform_0(%arg0: i32) -> (i32, i32, i32) {
    %c0_i32 = arith.constant 0 : i32
    %c0_i32_0 = arith.constant 0 : i32
    %c0_i32_1 = arith.constant 0 : i32
    return %arg0, %c0_i32, %c0_i32_0 : i32, i32, i32
  }
  func.func @transform_1(%arg0: i32) -> (i32, i32) {
    %c0_i32 = arith.constant 0 : i32
    %c0_i32_0 = arith.constant 0 : i32
    %c0_i32_1 = arith.constant 0 : i32
    return %c0_i32, %c0_i32_0 : i32, i32
  }
  func.func @transform_2(%arg0: i32) -> (i32, i32) {
    %c0_i32 = arith.constant 0 : i32
    %c0_i32_0 = arith.constant 0 : i32
    %c0_i32_1 = arith.constant 0 : i32
    return %c0_i32, %c0_i32_0 : i32, i32
  }
  func.func @transform_3(%arg0: i32) -> (i32, i32, i32, i32) {
    %c0_i32 = arith.constant 0 : i32
    %c0_i32_0 = arith.constant 0 : i32
    %c0_i32_1 = arith.constant 0 : i32
    %c0_i32_2 = arith.constant 0 : i32
    %c0_i32_3 = arith.constant 0 : i32
    return %c0_i32, %c0_i32_0, %c0_i32_1, %c0_i32_2 : i32, i32, i32, i32
  }
  func.func @transform_4(%arg0: i32) -> (i32, i32, i32, i32) {
    %c0_i32 = arith.constant 0 : i32
    %c0_i32_0 = arith.constant 0 : i32
    %c0_i32_1 = arith.constant 0 : i32
    %c0_i32_2 = arith.constant 0 : i32
    %c0_i32_3 = arith.constant 0 : i32
    return %c0_i32, %c0_i32_0, %c0_i32_1, %c0_i32_2 : i32, i32, i32, i32
  }
  func.func @transform_5(%arg0: i32) -> (i32, i32, i32, i32) {
    %c0_i32 = arith.constant 0 : i32
    %c0_i32_0 = arith.constant 0 : i32
    %c0_i32_1 = arith.constant 0 : i32
    %c0_i32_2 = arith.constant 0 : i32
    %c0_i32_3 = arith.constant 0 : i32
    return %c0_i32, %c0_i32_0, %c0_i32_1, %c0_i32_2 : i32, i32, i32, i32
  }
  func.func @transform_6(%arg0: i32) -> (i32, i32, i32, i32) {
    %c0_i32 = arith.constant 0 : i32
    %c0_i32_0 = arith.constant 0 : i32
    %c0_i32_1 = arith.constant 0 : i32
    %c0_i32_2 = arith.constant 0 : i32
    %c0_i32_3 = arith.constant 0 : i32
    return %c0_i32, %c0_i32_0, %c0_i32_1, %c0_i32_2 : i32, i32, i32, i32
  }
  func.func @transform_7(%arg0: i32) -> (i32, i32, i32, i32) {
    %c0_i32 = arith.constant 0 : i32
    %c0_i32_0 = arith.constant 0 : i32
    %c0_i32_1 = arith.constant 0 : i32
    %c0_i32_2 = arith.constant 0 : i32
    %c0_i32_3 = arith.constant 0 : i32
    return %c0_i32, %c0_i32_0, %c0_i32_1, %c0_i32_2 : i32, i32, i32, i32
  }
  func.func @transform_8(%arg0: i32) -> (i32, i32, i32, i32) {
    %c0_i32 = arith.constant 0 : i32
    %c0_i32_0 = arith.constant 0 : i32
    %c0_i32_1 = arith.constant 0 : i32
    %c0_i32_2 = arith.constant 0 : i32
    %c0_i32_3 = arith.constant 0 : i32
    return %c0_i32, %c0_i32_0, %c0_i32_1, %c0_i32_2 : i32, i32, i32, i32
  }
  func.func @transform_9(%arg0: i32) -> (i32, i32, i32, i32) {
    %c0_i32 = arith.constant 0 : i32
    %c0_i32_0 = arith.constant 0 : i32
    %c0_i32_1 = arith.constant 0 : i32
    %c0_i32_2 = arith.constant 0 : i32
    %c0_i32_3 = arith.constant 0 : i32
    return %c0_i32, %c0_i32_0, %c0_i32_1, %c0_i32_2 : i32, i32, i32, i32
  }
  func.func @transform_10(%arg0: i32) -> (i32, i32, i32) {
    %c0_i32 = arith.constant 0 : i32
    %c0_i32_0 = arith.constant 0 : i32
    %c0_i32_1 = arith.constant 0 : i32
    %c0_i32_2 = arith.constant 0 : i32
    return %c0_i32, %c0_i32_0, %c0_i32_1 : i32, i32, i32
  }
  func.func @transform_11(%arg0: i32) -> (i32, i32, i32) {
    %c0_i32 = arith.constant 0 : i32
    %c0_i32_0 = arith.constant 0 : i32
    %c0_i32_1 = arith.constant 0 : i32
    %c0_i32_2 = arith.constant 0 : i32
    return %c0_i32, %c0_i32_0, %c0_i32_1 : i32, i32, i32
  }
  func.func @transform_12(%arg0: i32) -> (i32, i32, i32) {
    %c0_i32 = arith.constant 0 : i32
    %c0_i32_0 = arith.constant 0 : i32
    %c0_i32_1 = arith.constant 0 : i32
    %c0_i32_2 = arith.constant 0 : i32
    return %c0_i32, %c0_i32_0, %c0_i32_1 : i32, i32, i32
  }
  func.func @transform_13(%arg0: i32) -> (i32, i32, i32) {
    %c0_i32 = arith.constant 0 : i32
    %c0_i32_0 = arith.constant 0 : i32
    %c0_i32_1 = arith.constant 0 : i32
    %c0_i32_2 = arith.constant 0 : i32
    return %c0_i32, %c0_i32_0, %c0_i32_1 : i32, i32, i32
  }
  func.func @transform_14(%arg0: i32) -> (i32, i32, i32) {
    %c0_i32 = arith.constant 0 : i32
    %c0_i32_0 = arith.constant 0 : i32
    %c0_i32_1 = arith.constant 0 : i32
    %c0_i32_2 = arith.constant 0 : i32
    return %c0_i32, %c0_i32_0, %c0_i32_1 : i32, i32, i32
  }
  func.func @transform_15(%arg0: i32) -> (i32, i32, i32) {
    %c0_i32 = arith.constant 0 : i32
    %c0_i32_0 = arith.constant 0 : i32
    %c0_i32_1 = arith.constant 0 : i32
    %c0_i32_2 = arith.constant 0 : i32
    return %c0_i32, %c0_i32_0, %c0_i32_1 : i32, i32, i32
  }
  func.func @transform_16(%arg0: i32) -> (i32, i32, i32) {
    %c0_i32 = arith.constant 0 : i32
    %c0_i32_0 = arith.constant 0 : i32
    %c0_i32_1 = arith.constant 0 : i32
    %c0_i32_2 = arith.constant 0 : i32
    return %c0_i32, %c0_i32_0, %c0_i32_1 : i32, i32, i32
  }
  func.func @transform_17(%arg0: i32) -> (i32, i32, i32) {
    %c0_i32 = arith.constant 0 : i32
    %c0_i32_0 = arith.constant 0 : i32
    %c0_i32_1 = arith.constant 0 : i32
    %c0_i32_2 = arith.constant 0 : i32
    return %c0_i32, %c0_i32_0, %c0_i32_1 : i32, i32, i32
  }
  func.func @transform_18(%arg0: i32) -> (i32, i32, i32) {
    %c0_i32 = arith.constant 0 : i32
    %c0_i32_0 = arith.constant 0 : i32
    %c0_i32_1 = arith.constant 0 : i32
    %c0_i32_2 = arith.constant 0 : i32
    return %c0_i32, %c0_i32_0, %c0_i32_1 : i32, i32, i32
  }
  func.func @transform_19(%arg0: i32) -> (i32, i32) {
    %c0_i32 = arith.constant 0 : i32
    %c0_i32_0 = arith.constant 0 : i32
    %c0_i32_1 = arith.constant 0 : i32
    return %c0_i32, %c0_i32_0 : i32, i32
  }
  func.func @transform_20(%arg0: i32) -> (i32, i32) {
    %c0_i32 = arith.constant 0 : i32
    %c0_i32_0 = arith.constant 0 : i32
    %c0_i32_1 = arith.constant 0 : i32
    return %c0_i32, %c0_i32_0 : i32, i32
  }
  func.func @transform_21(%arg0: i32) -> (i32, i32, i32) {
    %c0_i32 = arith.constant 0 : i32
    %c0_i32_0 = arith.constant 0 : i32
    %c0_i32_1 = arith.constant 0 : i32
    return %arg0, %c0_i32, %c0_i32_0 : i32, i32, i32
  }
}

</mosaic_0001>

<bundles_post_ra>
// kernel: forward.1
= control target key start
LH: loop header
LB: loop body
LE: loop exit
PB: predicated region body
PF: predicated region fallthrough
CT: control target
= control target key end

     0   :  { %s7335_s0 = inlined_call_operand.vmem [shape: f32[2,8,128], index: 0, kind: input, shape index: {}]   ;;  %s7336_s1 = inlined_call_operand.vmem [shape: bf16[128,64], index: 1, kind: input, shape index: {}]   ;;  %s7337_s2 = inlined_call_operand.vmem [shape: f32[8,64], index: 2, kind: input, shape index: {}]   ;;  %s7338_s3 = inlined_call_operand.vmem [shape: bf16[2,4,64,16], index: 3, kind: input, shape index: {}]   ;;  %s7339_s4 = inlined_call_operand.vmem [shape: f32[2,4,1,16], index: 4, kind: input, shape index: {}]   ;;  %s7340_s5 = inlined_call_operand.vmem [shape: bf16[2,4,64,16], index: 5, kind: input, shape index: {}]   ;;  %s7341_s6 = inlined_call_operand.vmem [shape: f32[2,4,1,16], index: 6, kind: input, shape index: {}]   ;;  %s7342_s7 = inlined_call_operand.vmem [shape: bf16[2,4,64,16], index: 7, kind: input, shape index: {}]   ;;  %s7343_s8 = inlined_call_operand.vmem [shape: f32[2,4,1,16], index: 8, kind: input, shape index: {}]   ;;  %s7344_s9 = inlined_call_operand.vmem [shape: bf16[2,4,16,64], index: 9, kind: input, shape index: {}]   ;;  %s7345_s10 = inlined_call_operand.vmem [shape: f32[2,1,64], index: 10, kind: input, shape index: {}]   ;;  %s7346_s11 = inlined_call_operand.vmem [shape: f32[2,1,64], index: 11, kind: input, shape index: {}]   ;;  %s7347_s12 = inlined_call_operand.vmem [shape: f32[2,1,64], index: 12, kind: input, shape index: {}]   ;;  %s7348_s13 = inlined_call_operand.vmem [shape: bf16[2,64,128], index: 13, kind: input, shape index: {}]   ;;  %s7349_s14 = inlined_call_operand.vmem [shape: f32[2,1,128], index: 14, kind: input, shape index: {}]   ;;  %s7350_s15 = inlined_call_operand.vmem [shape: bf16[2,128,64], index: 15, kind: input, shape index: {}]   ;;  %s7351_s16 = inlined_call_operand.vmem [shape: f32[2,1,64], index: 16, kind: input, shape index: {}]   ;;  %s7352_s17 = inlined_call_operand.vmem [shape: f32[2,1,64], index: 17, kind: input, shape index: {}]   ;;  %s7353_s18 = inlined_call_operand.vmem [shape: f32[2,1,64], index: 18, kind: input, shape index: {}]   ;;  %s7354_s19 = inlined_call_operand.vmem [shape: bf16[64,128], index: 19, kind: input, shape index: {}]   ;;  %s7355_s20 = inlined_call_operand.vmem [shape: f32[1,128], index: 20, kind: input, shape index: {}]   ;;  %s7356_s21 = inlined_call_operand.hbm [shape: f32[2,1,128], index: 21, kind: output, shape index: {}]  }
   0x1   :  { %7368 = sst [smem:[#allocation11_spill]] %s7335_s0 }
   0x2   :  { %7369 = sst [smem:[#allocation12_spill]] %s7336_s1 }
   0x3   :  { %7370 = sst [smem:[#allocation13_spill]] %s7337_s2 }
   0x4   :  { %7371 = sst [smem:[#allocation14_spill]] %s7338_s3 }
   0x5   :  { %7372 = sst [smem:[#allocation15_spill]] %s7339_s4 }
   0x6   :  { %7373 = sst [smem:[#allocation16_spill]] %s7340_s5 }
   0x7   :  { %7374 = sst [smem:[#allocation17_spill]] %s7341_s6 }
   0x8   :  { %26 = vsyncpa [#allocation3], 0 }
   0x9   :  { %28 = vsyncpa [#allocation3 + $0x1], 0  ;;  %s6292_s2 = smov 0   ;;  %s6294_s25 = smov 0  }
   0xa   :  { %s6296_s26 = smov 0   ;;  %s6298_s27 = smov 0  }
   0xb LB: > { %7375 = sst [smem:[#allocation5_spill]] %s6165_s2  ;;  %s6313_s3 = sadd.s32 4294967295, %s6177_s27   ;;  %s6177_s27 = sphi %s6298_s27, %s7393_s27   ;;  %s6173_s26 = sphi %s6296_s26, %s7395_s26   ;;  %s6169_s25 = sphi %s6294_s25, %s7397_s25   ;;  %s6165_s2 = sphi %s6292_s2, %s7396_s2  }
   0xc   : > { %7376 = sst [smem:[#allocation6_spill]] %s6173_s26  ;;  %s4685_s28 = sadd.s32 4294967294, %s6177_s27  }
   0xd   : > { %7377 = sst [smem:[#allocation7_spill]] %s6177_s27  ;;  %s6317_s29 = sadd.s32 1, %s6177_s27  }
   0xe   : > { %7378 = sst [smem:[#allocation8_spill]] %s6317_s29  ;;  %s487_s0 = sadd.s32 1, %s6173_s26 }
   0xf   : > { %s484_s4 = ssub.s32 %s6177_s27, %s6317_s29  ;;  %p497_p0 = scmp.ne.s32.totalorder %s6173_s26, %s6169_s25 }
  0x10   : > { %p485_p1 = scmp.eq.s32.totalorder %s484_s4, 0  ;;  %p498_p2 = scmp.eq.s32.totalorder %s6313_s3, 1 }
  0x11   : > { %p503_p3 = scmp.ne.s32.totalorder %s6169_s25, %s6165_s2  ;;  %p504_p4 = scmp.eq.s32.totalorder %s4685_s28, 1 }
  0x12   : > { %s6328_s30 = scalar_select %p485_p1, %s6173_s26, %s487_s0  }
  0x13   : > { %p6330_p5 = por %p498_p2, %p497_p0  ;;  %p6334_p6 = por %p504_p4, %p503_p3 }
  0x14   : > { %7379 = sst [smem:[#allocation9_spill]] %s6328_s30  ;;  %p4688_p7 = scmp.ge.s32.totalorder %s6177_s27, 1 }
  0x15   : > { %s7381_s22 = scalar_select %p6334_p6, 1, 0 }
  0x16   : > { %p589_p8 = scmp.lt.s32.totalorder %s6177_s27, 3 }
  0x17   : > { %7382 = sst [smem:[#allocation10_spill]] %s7381_s22 }
  0x18   : > { %p590_p9 = pnand %p4688_p7, %p589_p8 }
  0x19   : > { %s7383_s24 = sld [smem:[#allocation12_spill]] (!%p590_p9)  ;;  %v6179_v1 = vmov (!%p590_p9), 0.0   ;;  %vm6180_vm0 = vmmov (!%p590_p9), 0   ;;  %p647_p10 = scmp.lt.s32.totalorder (!%p590_p9), %s6313_s3, 1  ;;  %v5944_v13 = vld [vmem:[%s7342_s7] sm:$0xff] (!%p590_p9)   ;;  %v5946_v15 = vld [vmem:[%s7342_s7 + $0x8] sm:$0xff] (!%p590_p9)  }
  0x1a   : > { %593 = sbr.rel (%p590_p9) target bundleno = 10498 (0x2902), region = 104  ;;  %5366 = vmatprep.subr.bf16.mxu0 (!%p590_p9), %v6179_v1  ;;  %5386 = vmatprep.subr.bf16.mxu1 (!%p590_p9), %v6179_v1  ;;  %s7384_s0 = sld [smem:[#allocation14_spill]] (!%p590_p9)  ;;  %v5948_v16 = vld [vmem:[%s7342_s7 + $0x10] sm:$0xff] (!%p590_p9)   ;;  %v5950_v18 = vld [vmem:[%s7342_s7 + $0x18] sm:$0xff] (!%p590_p9)   ;;  %vm799_vm1 = vcmask (!%p590_p9), 523264   ;;  %v5959_v34 = vld [vmem:[%s7342_s7 + $0x20] sm:$0xff] (!%p590_p9)  }
  0x1b   : > { %5382 = vmatprep.mubr.msk.bf16.mxu0 (!%p590_p9), %vm6180_vm0, %v6179_v1  ;;  %5394 = vmatprep.mubr.msk.bf16.mxu1 (!%p590_p9), %vm6180_vm0, %v6179_v1  ;;  %s7385_s4 = sld [smem:[#allocation11_spill]] (!%p590_p9)  ;;  %v5960_v35 = vld [vmem:[%s7342_s7 + $0x28] sm:$0xff] (!%p590_p9)   ;;  %v5961_v36 = vld [vmem:[%s7342_s7 + $0x30] sm:$0xff] (!%p590_p9)   ;;  %v5962_v37 = vld [vmem:[%s7342_s7 + $0x38] sm:$0xff] (!%p590_p9)   ;;  %s7388_s6 = sld [smem:[#allocation17_spill]] (!%p590_p9)  ;;  %vm1003_vm2 = vcmask (!%p590_p9), 130048  }
  0x1c   : > { %v4710_v52 = vld [vmem:[%s7343_s8] ss:$0 sm:$0xff] (!%p590_p9)  ;;  %vm1067_vm3 = vcmask (!%p590_p9), 1043456   ;;  %vm1050_vm4 = vcmask (!%p590_p9), 64512   ;;  %s645_s27 = sand.u32 (!%p590_p9), 1, %s6169_s25   ;;  %s5153_s26 = sshll.u32 (!%p590_p9), %s6313_s3, 4 }
  0x1d   : > { %s646_s30 = scalar_lea.vmem (!%p590_p9), [#allocation2], %s645_s27  ;;  %s6181_s28 = smov (!%p590_p9), [#allocation2]  }
  0x1e   : > { %s4630_s2 = sshll.u32 (!%p590_p9), %s646_s30, 4  ;;  %s7295_s2 = int_to_ptr.vmem [resolvable:$true] %s4630_s2 }
  0x1f   : > { %v5935_v0 = vld [vmem:[%s7383_s24] sm:$0xff] (!%p590_p9)   ;;  %v5936_v2 = vld [vmem:[%s7383_s24 + $0x8] sm:$0xff] (!%p590_p9)   ;;  %v5937_v3 = vld [vmem:[%s7383_s24 + $0x10] sm:$0xff] (!%p590_p9)  }
  0x20   : > { %5367 = vmatpush3.bf16.msra.mxu0 (!%p590_p9), %v5935_v0  ;;  %v5943_v4 = vld [vmem:[%s7384_s0] sm:$0xff] (!%p590_p9)   ;;  %v5938_v5 = vld [vmem:[%s7383_s24 + $0x18] sm:$0xff] (!%p590_p9)   ;;  %v5945_v6 = vld [vmem:[%s7384_s0 + $0x8] sm:$0xff] (!%p590_p9)  }
  0x21   : > { %5368 = vmatprep.subr.bf16.mxu0 %v6179_v1  ;;  %s648_s29 = scalar_select %p647_p10, %s6313_s3, 1  ;;  %5387 = vmatpush3.bf16.msra.mxu1 %v5943_v4  ;;  %v5939_v7 = vld [vmem:[%s7383_s24 + $0x20] sm:$0xff]   ;;  %v5947_v8 = vld [vmem:[%s7384_s0 + $0x10] sm:$0xff]   ;;  %v5940_v9 = vld [vmem:[%s7383_s24 + $0x28] sm:$0xff]  }
  0x22   : > { %5388 = vmatprep.subr.bf16.mxu1 %v6179_v1  ;;  %v5941_v10 = vld [vmem:[%s7383_s24 + $0x30] sm:$0xff]   ;;  %v5942_v11 = vld [vmem:[%s7383_s24 + $0x38] sm:$0xff]   ;;  %v5952_v25 = vld [vmem:[%s7384_s0 + $0x20] sm:$0xff]   ;;  %s6115_s3 = scalar_lea.vmem %s7295_s2, 16 }
  0x23   : > { %s4689_s1 = sshll.u32 %s648_s29, 3  ;;  %v5949_v17 = vld [vmem:[%s7384_s0 + $0x18] sm:$0xff]   ;;  %s7387_s29 = sld [smem:[#allocation16_spill]]  ;;  %v5954_v29 = vld [vmem:[%s7384_s0 + $0x28] sm:$0xff]   ;;  %v5956_v31 = vld [vmem:[%s7384_s0 + $0x30] sm:$0xff]  }
  0x24   : > { %5369 = vmatpush3.bf16.msra.mxu0 %v5936_v2  ;;  %s650_s23 = scalar_lea.vmem %s7385_s4, %s4689_s1  ;;  %s7386_s1 = sld [smem:[#allocation13_spill]]  ;;  %v5958_v33 = vld [vmem:[%s7384_s0 + $0x38] sm:$0xff]   ;;  %v4704_v46 = vld [vmem:[%s7388_s6] ss:$0 sm:$0xff] }
  0x25   : > { %5370 = vmatprep.subr.bf16.mxu0 %v6179_v1  ;;  %5389 = vmatpush3.bf16.msra.mxu1 %v5945_v6  ;;  %v652_v12 = vld [vmem:[%s650_s23] sm:$0xff]  ;;  %s7389_s23 = sld [smem:[#allocation15_spill]]  ;;  %s4618_s4 = scalar_lea.sflag [#allocation3], %s645_s27 }
  0x26   : > { %5390 = vmatprep.subr.bf16.mxu1 %v6179_v1  ;;  %v653_v14 = vpack.c.bf16 %v652_v12, %v652_v12  ;;  %p6116_p11 = scmp.ne.s32.totalorder %s7295_s2, %s6115_s3 }
  0x28   : > { %5371 = vmatpush3.bf16.msra.mxu0 %v5937_v3  ;;  %p6117_p12 = pnand %p6116_p11, %p6330_p5 }
  0x29   : > { %5372 = vmatprep.subr.bf16.mxu0 %v6179_v1  ;;  %5391 = vmatpush3.bf16.msra.mxu1 %v5947_v8  ;;  %v5951_v24 = vld [vmem:[%s7387_s29] sm:$0xff]   ;;  %v5953_v28 = vld [vmem:[%s7387_s29 + $0x8] sm:$0xff]   ;;  %v5955_v30 = vld [vmem:[%s7387_s29 + $0x10] sm:$0xff]  }
  0x2a   : > { %5392 = vmatprep.subr.bf16.mxu1 %v6179_v1  ;;  %v670_v19 = vld [vmem:[%s7386_s1] sm:$0xff]  ;;  %v5957_v32 = vld [vmem:[%s7387_s29 + $0x18] sm:$0xff]   ;;  %p6118_p13 = pneg %p6117_p12 }
  0x2b   : > { %v4698_v58 = vld [vmem:[%s7389_s23] ss:$0 sm:$0xff] }
  0x2c   : > { %5373 = vmatpush3.bf16.msra.mxu0 %v5938_v5 }
  0x2d   : > { %5374 = vmatprep.subr.bf16.mxu0 %v6179_v1  ;;  %5393 = vmatpush3.bf16.msra.mxu1 %v5949_v17 }
  0x2e   : > { %5398 = vmatprep.subr.bf16.mxu1 %v6179_v1 }
  0x30   : > { %5375 = vmatpush3.bf16.msra.mxu0 %v5939_v7 }
  0x31   : > { %5376 = vmatprep.subr.bf16.mxu0 %v6179_v1 }
  0x34   : > { %5377 = vmatpush3.bf16.msra.mxu0 %v5940_v9 }
  0x35   : > { %5378 = vmatprep.subr.bf16.mxu0 %v6179_v1 }
  0x38   : > { %5379 = vmatpush3.bf16.msra.mxu0 %v5941_v10 }
  0x39   : > { %5380 = vmatprep.subr.bf16.mxu0 %v6179_v1 }
  0x3c   : > { %5381 = vmatpush3.bf16.msra.mxu0 %v5942_v11 }
  0x3d   : > { %5410 = vmatprep.subr.bf16.mxu0 %v6179_v1 }
  0x3f   : > { %5383 = vmatmul.mubr.bf16.vlgmr.msra.gmra.mrb[0].mxu0 %v653_v14 }
  0x40   : > { %5411 = vmatpush3.bf16.msra.mxu0 %v5944_v13  ;;  %5418 = vmatprep.mubr.msk.bf16.mxu0 %vm6180_vm0, %v6179_v1 }
  0x41   : > { %5412 = vmatprep.subr.bf16.mxu0 %v6179_v1 }
  0x44   : > { %5413 = vmatpush3.bf16.msra.mxu0 %v5946_v15 }
  0x45   : > { %5414 = vmatprep.subr.bf16.mxu0 %v6179_v1 }
  0x48   : > { %5415 = vmatpush3.bf16.msra.mxu0 %v5948_v16 }
  0x49   : > { %5416 = vmatprep.subr.bf16.mxu0 %v6179_v1 }
  0x4c   : > { %5417 = vmatpush3.bf16.msra.mxu0 %v5950_v18 }
  0x4d   : > { %5434 = vmatprep.subr.bf16.mxu0 %v6179_v1 }
 0x112   : > { %v753_v20 = vpop.f32.mrb[0].mxu0 }
 0x113   : > { %v6420_v21 = vadd.f32 %v753_v20, %v670_v19  ;;  %v5384_v22 = vpop.f32.mrb[1].mxu0  ;;  %v5963_v19 = vld [vmem:[%s7387_s29 + $0x20] sm:$0xff]  }
 0x114   : > { %v756_v23 = vpop.f32.mrb[2].mxu0  ;;  %v5964_v22 = vld [vmem:[%s7387_s29 + $0x28] sm:$0xff]  }
 0x115   : > { %v6430_v26 = vpack.c.bf16 %v6420_v21, %v6420_v21  ;;  %v5385_v27 = vpop.f32.mrb[3].mxu0  ;;  %v5965_v23 = vld [vmem:[%s7387_s29 + $0x30] sm:$0xff]  }
 0x117   : > { %5395 = vmatmul.mubr.msk.bf16.vlgmr.msra.gmra.mrb[0].mxu1 %vm799_vm1, %v6430_v26  ;;  %5419 = vmatmul.mubr.msk.bf16.vlgmr.msra.gmra.mrb[4].mxu0 %vm799_vm1, %v6430_v26 }
 0x118   : > { %5399 = vmatpush3.bf16.msra.mxu1 %v5951_v24  ;;  %5435 = vmatpush3.bf16.msra.mxu0 %v5952_v25  ;;  %v5966_v24 = vld [vmem:[%s7387_s29 + $0x38] sm:$0xff]  }
 0x119   : > { %5400 = vmatprep.subr.bf16.mxu1 %v6179_v1  ;;  %5436 = vmatprep.subr.bf16.mxu0 %v6179_v1 }
 0x11a   : > { %5406 = vmatprep.mubr.msk.bf16.mxu1 %vm6180_vm0, %v6179_v1  ;;  %5442 = vmatprep.mubr.msk.bf16.mxu0 %vm6180_vm0, %v6179_v1 }
 0x11c   : > { %5401 = vmatpush3.bf16.msra.mxu1 %v5953_v28  ;;  %5437 = vmatpush3.bf16.msra.mxu0 %v5954_v29 }
 0x11d   : > { %5402 = vmatprep.subr.bf16.mxu1 %v6179_v1  ;;  %5438 = vmatprep.subr.bf16.mxu0 %v6179_v1 }
 0x120   : > { %5403 = vmatpush3.bf16.msra.mxu1 %v5955_v30  ;;  %5439 = vmatpush3.bf16.msra.mxu0 %v5956_v31  ;;  %v4742_v30 = vld [vmem:[%s7388_s6 + $0x1] ss:$0 sm:$0xff] }
 0x121   : > { %5404 = vmatprep.subr.bf16.mxu1 %v6179_v1  ;;  %5440 = vmatprep.subr.bf16.mxu0 %v6179_v1 }
 0x124   : > { %5405 = vmatpush3.bf16.msra.mxu1 %v5957_v32  ;;  %5441 = vmatpush3.bf16.msra.mxu0 %v5958_v33 }
 0x125   : > { %5458 = vmatprep.subr.bf16.mxu0 %v6179_v1  ;;  %5422 = vmatprep.subr.bf16.mxu1 %v6179_v1 }
 0x127   : > { %5407 = vmatmul.mubr.msk.bf16.vlgmr.msra.gmra.mrb[4].mxu1 %vm799_vm1, %v6430_v26  ;;  %5443 = vmatmul.mubr.msk.bf16.vlgmr.msra.gmra.mrb[8].mxu0 %vm799_vm1, %v6430_v26 }
 0x128   : > { %5459 = vmatpush3.bf16.msra.mxu0 %v5959_v34  ;;  %5466 = vmatprep.mubr.msk.bf16.mxu0 %vm6180_vm0, %v6179_v1  ;;  %v4757_v34 = vld [vmem:[%s7343_s8 + $0x1] ss:$0 sm:$0xff] }
 0x129   : > { %5460 = vmatprep.subr.bf16.mxu0 %v6179_v1  ;;  %5424 = vmatprep.mubr.msk.bf16.mxu1 %vm6180_vm0, %v6179_v1 }
 0x12c   : > { %5461 = vmatpush3.bf16.msra.mxu0 %v5960_v35 }
 0x12d   : > { %5462 = vmatprep.subr.bf16.mxu0 %v6179_v1 }
 0x130   : > { %5463 = vmatpush3.bf16.msra.mxu0 %v5961_v36 }
 0x131   : > { %5464 = vmatprep.subr.bf16.mxu0 %v6179_v1 }
 0x134   : > { %5465 = vmatpush3.bf16.msra.mxu0 %v5962_v37 }
 0x135   : > { %5482 = vmatprep.subr.bf16.mxu0 %v6179_v1 }
 0x137   : > { %5467 = vmatmul.mubr.msk.bf16.vlgmr.msra.gmra.mrb[12].mxu0 %vm799_vm1, %v6430_v26 }
 0x138   : > { %5484 = vmatprep.mubr.msk.bf16.mxu0 %vm6180_vm0, %v6179_v1 }
 0x1ea   : > { %v837_v38 = vpop.f32.mrb[0].mxu1  ;;  %v995_v39 = vpop.f32.mrb[4].mxu0 }
 0x1eb   : > { %v5396_v40 = vpop.f32.mrb[1].mxu1  ;;  %v5420_v41 = vpop.f32.mrb[5].mxu0  ;;  %v996_v59 = vadd.f32 %v4710_v52, %v995_v39  ;;  %v838_v61 = vadd.f32 %v4698_v58, %v837_v38  ;;  %v4727_v38 = vld [vmem:[%s7389_s23 + $0x1] ss:$0 sm:$0xff] }
 0x1ec   : > { %v840_v42 = vpop.f32.mrb[2].mxu1  ;;  %v998_v43 = vpop.f32.mrb[6].mxu0 }
 0x1ed   : > { %v5397_v44 = vpop.f32.mrb[3].mxu1  ;;  %v5421_v45 = vpop.f32.mrb[7].mxu0  ;;  %v1063_v62 = vpack.c.bf16 %v996_v59, %v996_v59  ;;  %v1001_v63 = vpack.c.bf16 %v838_v61, %v838_v61  ;;  %v5967_v59 = vld [vmem:[%s7344_s9] sm:$0xff]  }
 0x1ee   : > { %v5968_v61 = vld [vmem:[%s7387_s29 + $0x40] sm:$0xff]  }
 0x1ef   : > { %v1069_v0 = vsel %vm1067_vm3, %v1063_v62, 0 }
 0x1fa   : > { %v916_v47 = vpop.f32.mrb[4].mxu1  ;;  %v6497_v48 = vpop.f32.mrb[8].mxu0 }
 0x1fb   : > { %v917_v49 = vadd.f32 %v4704_v46, %v916_v47  ;;  %v5408_v50 = vpop.f32.mrb[5].mxu1  ;;  %v5444_v51 = vpop.f32.mrb[9].mxu0  ;;  %v1190_v41 = vadd.f32 %v4727_v38, %v6497_v48 }
 0x1fc   : > { %v919_v53 = vpop.f32.mrb[6].mxu1  ;;  %v1192_v54 = vpop.f32.mrb[10].mxu0 }
 0x1fd   : > { %v1002_v55 = vpack.c.bf16 %v917_v49, %v917_v49  ;;  %v5409_v56 = vpop.f32.mrb[7].mxu1  ;;  %v5445_v57 = vpop.f32.mrb[11].mxu0  ;;  %v1357_v43 = vpack.c.bf16 %v1190_v41, %v1190_v41 }
 0x1ff   : > { %v1008_v60 = vsel %vm1003_vm2, %v1002_v55, 0  ;;  %v5972_v55 = vld [vmem:[%s7344_s9 + $0x8] sm:$0xff]  }
 0x200   : > { %5423 = vmatpush3.bf16.xpose.msra.mxu1 %v1008_v60  ;;  %5483 = vmatpush3.bf16.msra.mxu0 %v5972_v55 }
 0x201   : > { %5428 = vmatprep.subr.bf16.mxu1 %v6179_v1  ;;  %5494 = vmatprep.subr.bf16.mxu0 %v6179_v1 }
 0x207   : > { %5425 = vmatmul.mubr.msk.bf16.vlgmr.msra.gmra.mrb[8].mxu1 %vm1003_vm2, %v1001_v63  ;;  %v5969_v63 = vld [vmem:[%s7387_s29 + $0x48] sm:$0xff]  }
 0x208   : > { %5429 = vmatpush3.bf16.msra.mxu1 %v1069_v0  ;;  %5430 = vmatprep.mubr.msk.bf16.mxu1 %vm6180_vm0, %v6179_v1  ;;  %v5970_v0 = vld [vmem:[%s7387_s29 + $0x50] sm:$0xff]  }
 0x209   : > { %5446 = vmatprep.subr.bf16.mxu1 %v6179_v1 }
 0x20a   : > { %v1351_v2 = vpop.f32.mrb[12].mxu0 }
 0x20b   : > { %v5468_v3 = vpop.f32.mrb[13].mxu0  ;;  %v1352_v39 = vadd.f32 %v4757_v34, %v1351_v2  ;;  %v5971_v2 = vld [vmem:[%s7387_s29 + $0x58] sm:$0xff]  }
 0x20c   : > { %v1354_v4 = vpop.f32.mrb[14].mxu0 }
 0x20d   : > { %v5469_v5 = vpop.f32.mrb[15].mxu0  ;;  %v1417_v42 = vpack.c.bf16 %v1352_v39, %v1352_v39  ;;  %v5973_v4 = vld [vmem:[%s7384_s0 + $0x40] sm:$0xff]  }
 0x20f   : > { %v1422_v44 = vsel %vm1067_vm3, %v1417_v42, 0  ;;  %v4810_v42 = vld [vmem:[%s7343_s8 + $0x2] ss:$0 sm:$0xff] }
 0x2da   : > { %v1044_v6 = vpop.f32.mrb[8].mxu1 }
 0x2db   : > { %v5426_v7 = vpop.f32.mrb[9].mxu1  ;;  %v1051_v8 = vsel %vm1050_vm4, %v1044_v6, -inf }
 0x2dc   : > { %1052 = vmax.xlane.f32.xlu0 %v1051_v8  ;;  %v1047_v9 = vpop.f32.mrb[10].mxu1 }
 0x2dd   : > { %v5427_v10 = vpop.f32.mrb[11].mxu1  ;;  %v5974_v9 = vld [vmem:[%s7384_s0 + $0x48] sm:$0xff]  }
 0x369   : > { %v1053_v11 = vpop.xlane.xlu0 %1052 }
 0x36a   : > { %v1054_v12 = vsub.f32 %v1044_v6, %v1053_v11  ;;  %v5975_v11 = vld [vmem:[%s7384_s0 + $0x50] sm:$0xff]  }
 0x36c   : > { %v1055_v13 = vmul.f32 1.442695, %v1054_v12 }
 0x36e   : > { %6075 = vpow2.f32 %v1055_v13 }
 0x378   : > { %v6076_v14 = vpop.eup %6075 }
 0x379   : > { %v1057_v15 = vsel %vm1050_vm4, %v6076_v14, 0.0 }
 0x37a   : > { %1058 = vadd.xlane.f32.xlu0 %v1057_v15  ;;  %v5976_v15 = vld [vmem:[%s7384_s0 + $0x58] sm:$0xff]  }
 0x407   : > { %v1059_v16 = vpop.xlane.xlu0 %1058 }
 0x408   : > { %6077 = vrcp.f32 %v1059_v16  ;;  %v5977_v16 = vld [vmem:[%s7342_s7 + $0x40] sm:$0xff]  }
 0x412   : > { %v6078_v17 = vpop.eup %6077 }
 0x413   : > { %v1061_v18 = vmul.f32 %v6078_v17, %v6076_v14  ;;  %v5978_v17 = vld [vmem:[%s7342_s7 + $0x48] sm:$0xff]  }
 0x415   : > { %v1062_v20 = vpack.c.bf16 %v1061_v18, %v1061_v18  ;;  %v4795_v18 = vld [vmem:[%s7388_s6 + $0x2] ss:$0 sm:$0xff] }
 0x417   : > { %5431 = vmatmul.mubr.msk.bf16.vlgmr.msra.gmra.mrb[12].mxu1 %vm1050_vm4, %v1062_v20  ;;  %v5979_v20 = vld [vmem:[%s7342_s7 + $0x50] sm:$0xff]  }
 0x418   : > { %5447 = vmatpush3.bf16.msra.mxu1 %v5963_v19  ;;  %5454 = vmatprep.mubr.msk.bf16.mxu1 %vm6180_vm0, %v6179_v1 }
 0x419   : > { %5448 = vmatprep.subr.bf16.mxu1 %v6179_v1 }
 0x41c   : > { %5449 = vmatpush3.bf16.msra.mxu1 %v5964_v22 }
 0x41d   : > { %5450 = vmatprep.subr.bf16.mxu1 %v6179_v1 }
 0x420   : > { %5451 = vmatpush3.bf16.msra.mxu1 %v5965_v23 }
 0x421   : > { %5452 = vmatprep.subr.bf16.mxu1 %v6179_v1 }
 0x424   : > { %5453 = vmatpush3.bf16.msra.mxu1 %v5966_v24 }
 0x425   : > { %5470 = vmatprep.subr.bf16.mxu1 %v6179_v1 }
 0x427   : > { %5455 = vmatmul.mubr.msk.bf16.vlgmr.msra.gmra.mrb[16].mxu1 %vm799_vm1, %v6430_v26 }
 0x428   : > { %5472 = vmatprep.mubr.msk.bf16.mxu1 %vm6180_vm0, %v6179_v1 }
 0x4ea   : > { %v1105_v25 = vpop.f32.mrb[12].mxu1 }
 0x4eb   : > { %v5432_v27 = vpop.f32.mrb[13].mxu1  ;;  %v1111_v62 = vpack.c.bf16 %v1105_v25, %v1105_v25 }
 0x4ec   : > { %v1108_v28 = vpop.f32.mrb[14].mxu1 }
 0x4ed   : > { %v5433_v29 = vpop.f32.mrb[15].mxu1  ;;  %v5980_v28 = vld [vmem:[%s7342_s7 + $0x58] sm:$0xff]  }
 0x4fa   : > { %v1270_v31 = vpop.f32.mrb[16].mxu1 }
 0x4fb   : > { %v1271_v32 = vadd.f32 %v4742_v30, %v1270_v31  ;;  %v5456_v33 = vpop.f32.mrb[17].mxu1 }
 0x4fc   : > { %v1273_v35 = vpop.f32.mrb[18].mxu1 }
 0x4fd   : > { %v1358_v36 = vpack.c.bf16 %v1271_v32, %v1271_v32  ;;  %v5457_v37 = vpop.f32.mrb[19].mxu1  ;;  %v4780_v35 = vld [vmem:[%s7389_s23 + $0x2] ss:$0 sm:$0xff] }
 0x4ff   : > { %v1363_v40 = vsel %vm1003_vm2, %v1358_v36, 0 }
 0x500   : > { %5471 = vmatpush3.bf16.xpose.msra.mxu1 %v1363_v40 }
 0x501   : > { %5476 = vmatprep.subr.bf16.mxu1 %v6179_v1 }
 0x507   : > { %5473 = vmatmul.mubr.msk.bf16.vlgmr.msra.gmra.mrb[20].mxu1 %vm1003_vm2, %v1357_v43 }
 0x508   : > { %5477 = vmatpush3.bf16.msra.mxu1 %v1422_v44  ;;  %5478 = vmatprep.mubr.msk.bf16.mxu1 %vm6180_vm0, %v6179_v1 }
 0x509   : > { %5488 = vmatprep.subr.bf16.mxu1 %v6179_v1 }
 0x5da   : > { %v1399_v45 = vpop.f32.mrb[20].mxu1 }
 0x5db   : > { %v5474_v46 = vpop.f32.mrb[21].mxu1  ;;  %v1405_v47 = vsel %vm1050_vm4, %v1399_v45, -inf }
 0x5dc   : > { %1406 = vmax.xlane.f32.xlu1 %v1405_v47  ;;  %v1402_v48 = vpop.f32.mrb[22].mxu1 }
 0x5dd   : > { %v5475_v49 = vpop.f32.mrb[23].mxu1 }
 0x669   : > { %v1407_v50 = vpop.xlane.xlu1 %1406 }
 0x66a   : > { %v1408_v51 = vsub.f32 %v1399_v45, %v1407_v50 }
 0x66c   : > { %v1409_v52 = vmul.f32 1.442695, %v1408_v51 }
 0x66e   : > { %6079 = vpow2.f32 %v1409_v52 }
 0x678   : > { %v6080_v53 = vpop.eup %6079 }
 0x679   : > { %v1411_v54 = vsel %vm1050_vm4, %v6080_v53, 0.0 }
 0x67a   : > { %1412 = vadd.xlane.f32.xlu1 %v1411_v54 }
 0x707   : > { %v1413_v56 = vpop.xlane.xlu1 %1412 }
 0x708   : > { %6081 = vrcp.f32 %v1413_v56 }
 0x712   : > { %v6082_v57 = vpop.eup %6081 }
 0x713   : > { %v1415_v58 = vmul.f32 %v6082_v57, %v6080_v53 }
 0x715   : > { %v1416_v60 = vpack.c.bf16 %v1415_v58, %v1415_v58 }
 0x717   : > { %5479 = vmatmul.mubr.msk.bf16.vlgmr.msra.gmra.mrb[24].mxu1 %vm1050_vm4, %v1416_v60  ;;  %v5989_v60 = vld [vmem:[%s7344_s9 + $0x10] sm:$0xff]  }
 0x718   : > { %5489 = vmatpush3.bf16.msra.mxu1 %v5967_v59  ;;  %5490 = vmatprep.mubr.msk.bf16.mxu1 %vm6180_vm0, %v6179_v1 }
 0x719   : > { %5506 = vmatprep.subr.bf16.mxu1 %v6179_v1 }
 0x71f   : > { %5491 = vmatmul.mubr.msk.bf16.vlgmr.msra.gmra.mrb[28].mxu1 %vm1003_vm2, %v1111_v62 }
 0x720   : > { %5507 = vmatpush3.bf16.msra.mxu1 %v5968_v61  ;;  %5514 = vmatprep.mubr.msk.bf16.mxu1 %vm6180_vm0, %v6179_v1 }
 0x721   : > { %5508 = vmatprep.subr.bf16.mxu1 %v6179_v1 }
 0x724   : > { %5509 = vmatpush3.bf16.msra.mxu1 %v5969_v63 }
 0x725   : > { %5510 = vmatprep.subr.bf16.mxu1 %v6179_v1 }
 0x728   : > { %5511 = vmatpush3.bf16.msra.mxu1 %v5970_v0  ;;  %v5981_v0 = vld [vmem:[%s7384_s0 + $0x60] sm:$0xff]  }
 0x729   : > { %5512 = vmatprep.subr.bf16.mxu1 %v6179_v1 }
 0x72c   : > { %5513 = vmatpush3.bf16.msra.mxu1 %v5971_v2 }
 0x72d   : > { %5530 = vmatprep.subr.bf16.mxu1 %v6179_v1 }
 0x72f   : > { %5515 = vmatmul.mubr.msk.bf16.vlgmr.msra.gmra.mrb[32].mxu1 %vm799_vm1, %v6430_v26 }
 0x730   : > { %5532 = vmatprep.mubr.msk.bf16.mxu1 %vm6180_vm0, %v6179_v1 }
 0x7ea   : > { %v1458_v3 = vpop.f32.mrb[24].mxu1 }
 0x7eb   : > { %v1464_v5 = vpack.c.bf16 %v1458_v3, %v1458_v3  ;;  %v5480_v6 = vpop.f32.mrb[25].mxu1  ;;  %v5982_v3 = vld [vmem:[%s7384_s0 + $0x68] sm:$0xff]  }
 0x7ec   : > { %v1461_v7 = vpop.f32.mrb[26].mxu1  ;;  %v5985_v6 = vld [vmem:[%s7342_s7 + $0x60] sm:$0xff]  }
 0x7ed   : > { %v5481_v8 = vpop.f32.mrb[27].mxu1  ;;  %5485 = vmatmul.mubr.msk.bf16.vlgmr.msra.gmra.mrb[16].mxu0 %vm1003_vm2, %v1464_v5  ;;  %v5984_v5 = vld [vmem:[%s7384_s0 + $0x78] sm:$0xff]   ;;  %v5986_v7 = vld [vmem:[%s7342_s7 + $0x68] sm:$0xff]  }
 0x7ee   : > { %5495 = vmatpush3.bf16.msra.mxu0 %v5973_v4  ;;  %5502 = vmatprep.mubr.msk.bf16.mxu0 %vm6180_vm0, %v6179_v1  ;;  %v5983_v4 = vld [vmem:[%s7384_s0 + $0x70] sm:$0xff]  }
 0x7ef   : > { %5496 = vmatprep.subr.bf16.mxu0 %v6179_v1  ;;  %v5987_v8 = vld [vmem:[%s7342_s7 + $0x70] sm:$0xff]  }
 0x7f2   : > { %5497 = vmatpush3.bf16.msra.mxu0 %v5974_v9  ;;  %v1560_v10 = vpop.f32.mrb[28].mxu1  ;;  %v5988_v9 = vld [vmem:[%s7342_s7 + $0x78] sm:$0xff]  }
 0x7f3   : > { %v5492_v12 = vpop.f32.mrb[29].mxu1  ;;  %5498 = vmatprep.subr.bf16.mxu0 %v6179_v1 }
 0x7f4   : > { %v1563_v13 = vpop.f32.mrb[30].mxu1 }
 0x7f5   : > { %v5493_v14 = vpop.f32.mrb[31].mxu1 }
 0x7f6   : > { %5499 = vmatpush3.bf16.msra.mxu0 %v5975_v11  ;;  %v5990_v11 = vld [vmem:[%s7387_s29 + $0x60] sm:$0xff]  }
 0x7f7   : > { %5500 = vmatprep.subr.bf16.mxu0 %v6179_v1 }
 0x7fa   : > { %5501 = vmatpush3.bf16.msra.mxu0 %v5976_v15 }
 0x7fb   : > { %5518 = vmatprep.subr.bf16.mxu0 %v6179_v1 }
 0x7fd   : > { %5503 = vmatmul.mubr.msk.bf16.vlgmr.msra.gmra.mrb[20].mxu0 %vm799_vm1, %v6430_v26 }
 0x7fe   : > { %5519 = vmatpush3.bf16.msra.mxu0 %v5977_v16  ;;  %5526 = vmatprep.mubr.msk.bf16.mxu0 %vm6180_vm0, %v6179_v1  ;;  %v5991_v16 = vld [vmem:[%s7387_s29 + $0x68] sm:$0xff]  }
 0x7ff   : > { %5520 = vmatprep.subr.bf16.mxu0 %v6179_v1 }
 0x802   : > { %v1722_v19 = vpop.f32.mrb[32].mxu1  ;;  %5521 = vmatpush3.bf16.msra.mxu0 %v5978_v17  ;;  %v5992_v17 = vld [vmem:[%s7387_s29 + $0x70] sm:$0xff]  }
 0x803   : > { %v1723_v22 = vadd.f32 %v4795_v18, %v1722_v19  ;;  %v5516_v23 = vpop.f32.mrb[33].mxu1  ;;  %5522 = vmatprep.subr.bf16.mxu0 %v6179_v1  ;;  %v5993_v18 = vld [vmem:[%s7387_s29 + $0x78] sm:$0xff]  }
 0x804   : > { %v1725_v24 = vpop.f32.mrb[34].mxu1 }
 0x805   : > { %v1810_v25 = vpack.c.bf16 %v1723_v22, %v1723_v22  ;;  %v5517_v27 = vpop.f32.mrb[35].mxu1 }
 0x806   : > { %5523 = vmatpush3.bf16.msra.mxu0 %v5979_v20 }
 0x807   : > { %v1815_v29 = vsel %vm1003_vm2, %v1810_v25, 0  ;;  %5524 = vmatprep.subr.bf16.mxu0 %v6179_v1 }
 0x808   : > { %5531 = vmatpush3.bf16.xpose.msra.mxu1 %v1815_v29 }
 0x809   : > { %5536 = vmatprep.subr.bf16.mxu1 %v6179_v1 }
 0x80a   : > { %5525 = vmatpush3.bf16.msra.mxu0 %v5980_v28 }
 0x80b   : > { %5542 = vmatprep.subr.bf16.mxu0 %v6179_v1 }
 0x80d   : > { %5527 = vmatmul.mubr.msk.bf16.vlgmr.msra.gmra.mrb[24].mxu0 %vm799_vm1, %v6430_v26 }
 0x80e   : > { %5544 = vmatprep.mubr.msk.bf16.mxu0 %vm6180_vm0, %v6179_v1  ;;  %5543 = vmatpush3.bf16.msra.mxu0 %v5989_v60 }
 0x80f   : > { %5560 = vmatprep.subr.bf16.mxu0 %v6179_v1 }
 0x8c0   : > { %v1511_v30 = vpop.f32.mrb[16].mxu0 }
 0x8c1   : > { %v6638_v31 = vadd.f32 %v1560_v10, %v1511_v30  ;;  %v5486_v32 = vpop.f32.mrb[17].mxu0 }
 0x8c2   : > { %v1514_v33 = vpop.f32.mrb[18].mxu0 }
 0x8c3   : > { %v5487_v34 = vpop.f32.mrb[19].mxu0 }
 0x8d0   : > { %v1641_v36 = vpop.f32.mrb[20].mxu0 }
 0x8d1   : > { %v1642_v37 = vadd.f32 %v4780_v35, %v1641_v36  ;;  %v5504_v38 = vpop.f32.mrb[21].mxu0  ;;  %v4846_v35 = vld [vmem:[%s7388_s6 + $0x3] ss:$0 sm:$0xff] }
 0x8d2   : > { %v1644_v39 = vpop.f32.mrb[22].mxu0  ;;  %v4861_v38 = vld [vmem:[%s7343_s8 + $0x3] ss:$0 sm:$0xff] }
 0x8d3   : > { %v1809_v40 = vpack.c.bf16 %v1642_v37, %v1642_v37  ;;  %v5505_v41 = vpop.f32.mrb[23].mxu0 }
 0x8d5   : > { %5533 = vmatmul.mubr.msk.bf16.vlgmr.msra.gmra.mrb[36].mxu1 %vm1003_vm2, %v1809_v40 }
 0x8d6   : > { %5538 = vmatprep.mubr.msk.bf16.mxu1 %vm6180_vm0, %v6179_v1 }
 0x8e0   : > { %v1803_v43 = vpop.f32.mrb[24].mxu0 }
 0x8e1   : > { %v1804_v44 = vadd.f32 %v4810_v42, %v1803_v43  ;;  %v5528_v45 = vpop.f32.mrb[25].mxu0 }
 0x8e2   : > { %v1806_v46 = vpop.f32.mrb[26].mxu0 }
 0x8e3   : > { %v1869_v47 = vpack.c.bf16 %v1804_v44, %v1804_v44  ;;  %v5529_v48 = vpop.f32.mrb[27].mxu0 }
 0x8e5   : > { %v1874_v49 = vsel %vm1067_vm3, %v1869_v47, 0 }
 0x8e6   : > { %5537 = vmatpush3.bf16.msra.mxu1 %v1874_v49 }
 0x8e7   : > { %5548 = vmatprep.subr.bf16.mxu1 %v6179_v1 }
 0x9a8   : > { %v1851_v50 = vpop.f32.mrb[36].mxu1 }
 0x9a9   : > { %v5534_v51 = vpop.f32.mrb[37].mxu1  ;;  %v1857_v52 = vsel %vm1050_vm4, %v1851_v50, -inf }
 0x9aa   : > { %1858 = vmax.xlane.f32.xlu0 %v1857_v52  ;;  %v1854_v53 = vpop.f32.mrb[38].mxu1 }
 0x9ab   : > { %v5535_v54 = vpop.f32.mrb[39].mxu1 }
 0xa37   : > { %v1859_v55 = vpop.xlane.xlu0 %1858 }
 0xa38   : > { %v1860_v56 = vsub.f32 %v1851_v50, %v1859_v55 }
 0xa3a   : > { %v1861_v57 = vmul.f32 1.442695, %v1860_v56 }
 0xa3c   : > { %6083 = vpow2.f32 %v1861_v57 }
 0xa46   : > { %v6084_v58 = vpop.eup %6083 }
 0xa47   : > { %v1863_v59 = vsel %vm1050_vm4, %v6084_v58, 0.0 }
 0xa48   : > { %1864 = vadd.xlane.f32.xlu1 %v1863_v59 }
 0xad5   : > { %v1865_v61 = vpop.xlane.xlu1 %1864 }
 0xad6   : > { %6085 = vrcp.f32 %v1865_v61 }
 0xae0   : > { %v6086_v62 = vpop.eup %6085 }
 0xae1   : > { %v1867_v63 = vmul.f32 %v6086_v62, %v6084_v58  ;;  %v5994_v58 = vld [vmem:[%s7344_s9 + $0x18] sm:$0xff]  }
 0xae3   : > { %v1868_v2 = vpack.c.bf16 %v1867_v63, %v1867_v63 }
 0xae5   : > { %5539 = vmatmul.mubr.msk.bf16.vlgmr.msra.gmra.mrb[40].mxu1 %vm1050_vm4, %v1868_v2 }
 0xae6   : > { %5549 = vmatpush3.bf16.msra.mxu1 %v5981_v0  ;;  %5556 = vmatprep.mubr.msk.bf16.mxu1 %vm6180_vm0, %v6179_v1 }
 0xae7   : > { %5550 = vmatprep.subr.bf16.mxu1 %v6179_v1 }
 0xaea   : > { %5551 = vmatpush3.bf16.msra.mxu1 %v5982_v3 }
 0xaeb   : > { %5552 = vmatprep.subr.bf16.mxu1 %v6179_v1 }
 0xaee   : > { %5553 = vmatpush3.bf16.msra.mxu1 %v5983_v4 }
 0xaef   : > { %5554 = vmatprep.subr.bf16.mxu1 %v6179_v1 }
 0xaf2   : > { %5555 = vmatpush3.bf16.msra.mxu1 %v5984_v5 }
 0xaf3   : > { %5572 = vmatprep.subr.bf16.mxu1 %v6179_v1 }
 0xaf5   : > { %5557 = vmatmul.mubr.msk.bf16.vlgmr.msra.gmra.mrb[44].mxu1 %vm799_vm1, %v6430_v26 }
 0xaf6   : > { %5573 = vmatpush3.bf16.msra.mxu1 %v5985_v6  ;;  %5580 = vmatprep.mubr.msk.bf16.mxu1 %vm6180_vm0, %v6179_v1  ;;  %v4873_v6 = vld [vmem:[%s7345_s10] ss:$0 sm:$0xff] }
 0xaf7   : > { %5574 = vmatprep.subr.bf16.mxu1 %v6179_v1 }
 0xafa   : > { %5575 = vmatpush3.bf16.msra.mxu1 %v5986_v7 }
 0xafb   : > { %5576 = vmatprep.subr.bf16.mxu1 %v6179_v1 }
 0xafe   : > { %5577 = vmatpush3.bf16.msra.mxu1 %v5987_v8 }
 0xaff   : > { %5578 = vmatprep.subr.bf16.mxu1 %v6179_v1 }
 0xb02   : > { %5579 = vmatpush3.bf16.msra.mxu1 %v5988_v9 }
 0xb03   : > { %5596 = vmatprep.subr.bf16.mxu1 %v6179_v1 }
 0xb05   : > { %5581 = vmatmul.mubr.msk.bf16.vlgmr.msra.gmra.mrb[48].mxu1 %vm799_vm1, %v6430_v26 }
 0xb06   : > { %5598 = vmatprep.mubr.msk.bf16.mxu1 %vm6180_vm0, %v6179_v1  ;;  %5597 = vmatpush3.bf16.msra.mxu1 %v5994_v58 }
 0xb07   : > { %5614 = vmatprep.subr.bf16.mxu1 %v6179_v1 }
 0xbb8   : > { %v1910_v10 = vpop.f32.mrb[40].mxu1 }
 0xbb9   : > { %v1916_v12 = vpack.c.bf16 %v1910_v10, %v1910_v10  ;;  %v5540_v13 = vpop.f32.mrb[41].mxu1 }
 0xbba   : > { %v1913_v14 = vpop.f32.mrb[42].mxu1 }
 0xbbb   : > { %v5541_v15 = vpop.f32.mrb[43].mxu1  ;;  %5545 = vmatmul.mubr.msk.bf16.vlgmr.msra.gmra.mrb[28].mxu0 %vm1003_vm2, %v1916_v12 }
 0xbbc   : > { %5561 = vmatpush3.bf16.msra.mxu0 %v5990_v11  ;;  %5568 = vmatprep.mubr.msk.bf16.mxu0 %vm6180_vm0, %v6179_v1 }
 0xbbd   : > { %5562 = vmatprep.subr.bf16.mxu0 %v6179_v1 }
 0xbc0   : > { %5563 = vmatpush3.bf16.msra.mxu0 %v5991_v16 }
 0xbc1   : > { %5564 = vmatprep.subr.bf16.mxu0 %v6179_v1 }
 0xbc4   : > { %5565 = vmatpush3.bf16.msra.mxu0 %v5992_v17 }
 0xbc5   : > { %5566 = vmatprep.subr.bf16.mxu0 %v6179_v1 }
 0xbc8   : > { %v2045_v19 = vpop.f32.mrb[44].mxu1  ;;  %5567 = vmatpush3.bf16.msra.mxu0 %v5993_v18 }
 0xbc9   : > { %v5558_v20 = vpop.f32.mrb[45].mxu1  ;;  %5584 = vmatprep.subr.bf16.mxu0 %v6179_v1 }
 0xbca   : > { %v2048_v22 = vpop.f32.mrb[46].mxu1  ;;  %v5997_v20 = vld [vmem:[%s7348_s13 + $0x10] sm:$0xff]  }
 0xbcb   : > { %v5559_v23 = vpop.f32.mrb[47].mxu1  ;;  %5569 = vmatmul.mubr.msk.bf16.vlgmr.msra.gmra.mrb[32].mxu0 %vm799_vm1, %v6430_v26  ;;  %v5998_v22 = vld [vmem:[%s7348_s13 + $0x18] sm:$0xff]  }
 0xbcc   : > { %5586 = vmatprep.mubr.msk.bf16.mxu0 %vm6180_vm0, %v6179_v1  ;;  %v5999_v23 = vld [vmem:[%s7350_s15] sm:$0xff]  }
 0xbd8   : > { %v2207_v24 = vpop.f32.mrb[48].mxu1 }
 0xbd9   : > { %v5582_v25 = vpop.f32.mrb[49].mxu1  ;;  %v2208_v42 = vadd.f32 %v4861_v38, %v2207_v24  ;;  %v6000_v24 = vld [vmem:[%s7350_s15 + $0x8] sm:$0xff]  }
 0xbda   : > { %v2210_v27 = vpop.f32.mrb[50].mxu1  ;;  %v6001_v25 = vld [vmem:[%s7350_s15 + $0x10] sm:$0xff]  }
 0xbdb   : > { %v5583_v28 = vpop.f32.mrb[51].mxu1  ;;  %v2273_v45 = vpack.c.bf16 %v2208_v42, %v2208_v42  ;;  %v6002_v27 = vld [vmem:[%s7350_s15 + $0x18] sm:$0xff]  }
 0xbdc   : > { %v6003_v28 = vld [vmem:[%s7350_s15 + $0x20] sm:$0xff]  }
 0xbdd   : > { %v2278_v47 = vsel %vm1067_vm3, %v2273_v45, 0 }
 0xc8e   : > { %v1963_v29 = vpop.f32.mrb[28].mxu0 }
 0xc8f   : > { %v1969_v30 = vadd.f32 %v1963_v29, %v6638_v31  ;;  %v5546_v32 = vpop.f32.mrb[29].mxu0  ;;  %v4831_v31 = vld [vmem:[%s7389_s23 + $0x3] ss:$0 sm:$0xff]  ;;  %v6004_v29 = vld [vmem:[%s7350_s15 + $0x28] sm:$0xff]  }
 0xc90   : > { %v1966_v33 = vpop.f32.mrb[30].mxu0  ;;  %v2046_v44 = vadd.f32 %v4831_v31, %v2045_v19  ;;  %v5995_v19 = vld [vmem:[%s7348_s13] sm:$0xff]  }
 0xc91   : > { %v5547_v34 = vpop.f32.mrb[31].mxu0  ;;  %v4876_v31 = vld [vmem:[%s7349_s14] ss:$0 sm:$0xff] }
 0xc92   : > { %v2213_v46 = vpack.c.bf16 %v2046_v44, %v2046_v44 }
 0xc9e   : > { %v2126_v36 = vpop.f32.mrb[32].mxu0 }
 0xc9f   : > { %v2127_v37 = vadd.f32 %v4846_v35, %v2126_v36  ;;  %v5570_v26 = vpop.f32.mrb[33].mxu0  ;;  %v4874_v35 = vld [vmem:[%s7346_s11] ss:$0 sm:$0xff] }
 0xca0   : > { %v2129_v39 = vpop.f32.mrb[34].mxu0 }
 0xca1   : > { %v2214_v40 = vpack.c.bf16 %v2127_v37, %v2127_v37  ;;  %v5571_v41 = vpop.f32.mrb[35].mxu0  ;;  %v4875_v37 = vld [vmem:[%s7347_s12] ss:$0 sm:$0xff] }
 0xca2   : > { %v6006_v41 = vld [vmem:[%s7350_s15 + $0x38] sm:$0xff]  }
 0xca3   : > { %v2219_v43 = vsel %vm1003_vm2, %v2214_v40, 0  ;;  %v6005_v40 = vld [vmem:[%s7350_s15 + $0x30] sm:$0xff]  }
 0xca4   : > { %5585 = vmatpush3.bf16.xpose.msra.mxu0 %v2219_v43 }
 0xca5   : > { %5590 = vmatprep.subr.bf16.mxu0 %v6179_v1 }
 0xcab   : > { %5587 = vmatmul.mubr.msk.bf16.vlgmr.msra.gmra.mrb[36].mxu0 %vm1003_vm2, %v2213_v46 }
 0xcac   : > { %5591 = vmatpush3.bf16.msra.mxu0 %v2278_v47  ;;  %5592 = vmatprep.mubr.msk.bf16.mxu0 %vm6180_vm0, %v6179_v1 }
 0xcad   : > { %5602 = vmatprep.subr.bf16.mxu0 %v6179_v1 }
 0xd7e   : > { %v2255_v48 = vpop.f32.mrb[36].mxu0 }
 0xd7f   : > { %v5588_v49 = vpop.f32.mrb[37].mxu0  ;;  %v2261_v50 = vsel %vm1050_vm4, %v2255_v48, -inf }
 0xd80   : > { %2262 = vmax.xlane.f32.xlu0 %v2261_v50  ;;  %v2258_v51 = vpop.f32.mrb[38].mxu0  ;;  %v4882_v49 = vld [vmem:[%s7351_s16] ss:$0 sm:$0xff] }
 0xd81   : > { %v5589_v52 = vpop.f32.mrb[39].mxu0 }
 0xe0d   : > { %v2263_v53 = vpop.xlane.xlu0 %2262 }
 0xe0e   : > { %v2264_v54 = vsub.f32 %v2255_v48, %v2263_v53 }
 0xe10   : > { %v2265_v55 = vmul.f32 1.442695, %v2264_v54 }
 0xe12   : > { %6087 = vpow2.f32 %v2265_v55 }
 0xe1c   : > { %v6088_v56 = vpop.eup %6087 }
 0xe1d   : > { %v2267_v57 = vsel %vm1050_vm4, %v6088_v56, 0.0 }
 0xe1e   : > { %2268 = vadd.xlane.f32.xlu1 %v2267_v57 }
 0xeab   : > { %v2269_v59 = vpop.xlane.xlu1 %2268 }
 0xeac   : > { %6089 = vrcp.f32 %v2269_v59 }
 0xeb6   : > { %v6090_v60 = vpop.eup %6089 }
 0xeb7   : > { %v2271_v61 = vmul.f32 %v6090_v60, %v6088_v56 }
 0xeb9   : > { %v2272_v62 = vpack.c.bf16 %v2271_v61, %v2271_v61 }
 0xebb   : > { %5593 = vmatmul.mubr.msk.bf16.vlgmr.msra.gmra.mrb[40].mxu0 %vm1050_vm4, %v2272_v62  ;;  %v6007_v62 = vld [vmem:[%s7384_s0 + $0x80] sm:$0xff]  }
 0xebc   : > { %5610 = vmatprep.mubr.msk.bf16.mxu0 %vm6180_vm0, %v6179_v1  ;;  %5603 = vmatpush3.bf16.msra.mxu0 %v5995_v19  ;;  %v6017_v19 = vld [vmem:[%s7387_s29 + $0x90] sm:$0xff]  }
 0xebd   : > { %5604 = vmatprep.subr.bf16.mxu0 %v6179_v1 }
 0xf8e   : > { %v2314_v63 = vpop.f32.mrb[40].mxu0 }
 0xf8f   : > { %v2320_v0 = vpack.c.bf16 %v2314_v63, %v2314_v63  ;;  %v5594_v2 = vpop.f32.mrb[41].mxu0  ;;  %v6008_v63 = vld [vmem:[%s7342_s7 + $0x80] sm:$0xff]  }
 0xf90   : > { %v2317_v3 = vpop.f32.mrb[42].mxu0  ;;  %v6010_v2 = vld [vmem:[%s7342_s7 + $0x88] sm:$0xff]  }
 0xf91   : > { %v5595_v4 = vpop.f32.mrb[43].mxu0  ;;  %5599 = vmatmul.mubr.msk.bf16.vlgmr.msra.gmra.mrb[52].mxu1 %vm1003_vm2, %v2320_v0  ;;  %v6009_v0 = vld [vmem:[%s7384_s0 + $0x88] sm:$0xff]   ;;  %v6011_v3 = vld [vmem:[%s7384_s0 + $0x90] sm:$0xff]  }
 0xf92   : > { %5630 = vmatprep.mubr.msk.bf16.mxu1 %vm6180_vm0, %v6179_v1  ;;  %5615 = vmatpush3.bf16.msra.mxu1 %v5999_v23  ;;  %v6012_v4 = vld [vmem:[%s7342_s7 + $0x90] sm:$0xff]  }
 0xf93   : > { %5616 = vmatprep.subr.bf16.mxu1 %v6179_v1 }
 0xf96   : > { %5617 = vmatpush3.bf16.msra.mxu1 %v6000_v24 }
 0xf97   : > { %5618 = vmatprep.subr.bf16.mxu1 %v6179_v1 }
 0xf9a   : > { %5619 = vmatpush3.bf16.msra.mxu1 %v6001_v25 }
 0xf9b   : > { %5620 = vmatprep.subr.bf16.mxu1 %v6179_v1 }
 0xf9e   : > { %5621 = vmatpush3.bf16.msra.mxu1 %v6002_v27 }
 0xf9f   : > { %5622 = vmatprep.subr.bf16.mxu1 %v6179_v1 }
 0xfa2   : > { %5623 = vmatpush3.bf16.msra.mxu1 %v6003_v28 }
 0xfa3   : > { %5624 = vmatprep.subr.bf16.mxu1 %v6179_v1 }
 0xfa6   : > { %5625 = vmatpush3.bf16.msra.mxu1 %v6004_v29 }
 0xfa7   : > { %5626 = vmatprep.subr.bf16.mxu1 %v6179_v1 }
 0xfaa   : > { %5627 = vmatpush3.bf16.msra.mxu1 %v6005_v40 }
 0xfab   : > { %5628 = vmatprep.subr.bf16.mxu1 %v6179_v1 }
 0xfae   : > { %5629 = vmatpush3.bf16.msra.mxu1 %v6006_v41  ;;  %v4902_v41 = vld [vmem:[%s7389_s23 + $0x4] ss:$0 sm:$0xff] }
 0xfaf   : > { %5658 = vmatprep.subr.bf16.mxu1 %v6179_v1 }
0x1064   : > { %v2367_v5 = vpop.f32.mrb[52].mxu1 }
0x1065   : > { %v2373_v7 = vadd.f32 %v2367_v5, %v1969_v30  ;;  %v5600_v8 = vpop.f32.mrb[53].mxu1  ;;  %v6013_v5 = vld [vmem:[%s7384_s0 + $0x98] sm:$0xff]  }
0x1066   : > { %v2370_v9 = vpop.f32.mrb[54].mxu1 }
0x1067   : > { %v2381_v10 = vadd.f32 %v4873_v6, %v2373_v7  ;;  %v5601_v11 = vpop.f32.mrb[55].mxu1  ;;  %v6014_v6 = vld [vmem:[%s7342_s7 + $0x98] sm:$0xff]  }
0x1068   : > { %v4891_v11 = vld [vmem:[%s7352_s17] ss:$0 sm:$0xff] }
0x1069   : > { %v2382_v12 = vadd.f32 %v2381_v10, %v6420_v21  ;;  %v5996_v21 = vld [vmem:[%s7348_s13 + $0x8] sm:$0xff]  }
0x106a   : > { %5605 = vmatpush3.bf16.msra.mxu0 %v5996_v21  ;;  %v6018_v21 = vld [vmem:[%s7387_s29 + $0x98] sm:$0xff]  }
0x106b   : > { %v2383_v13 = vsel %vm799_vm1, %v2382_v12, 0.0  ;;  %5606 = vmatprep.subr.bf16.mxu0 %v6179_v1 }
0x106c   : > { %2384 = vadd.xlane.f32.xlu0 %v2383_v13  ;;  %v4892_v13 = vld [vmem:[%s7353_s18] ss:$0 sm:$0xff] }
0x106e   : > { %5607 = vmatpush3.bf16.msra.mxu0 %v5997_v20  ;;  %v4932_v20 = vld [vmem:[%s7343_s8 + $0x4] ss:$0 sm:$0xff] }
0x106f   : > { %5608 = vmatprep.subr.bf16.mxu0 %v6179_v1 }
0x1072   : > { %5609 = vmatpush3.bf16.msra.mxu0 %v5998_v22 }
0x1073   : > { %5634 = vmatprep.subr.bf16.mxu0 %v6179_v1 }
0x10f9   : > { %v2385_v14 = vpop.xlane.xlu0 %2384 }
0x10fa   : > { %v2387_v15 = vmul.f32 0.015625, %v2385_v14 }
0x10fc   : > { %v2388_v16 = vsub.f32 %v2382_v12, %v2387_v15 }
0x10fe   : > { %v2389_v17 = vmul.f32 %v2388_v16, %v2388_v16 }
0x1100   : > { %v2390_v18 = vsel %vm799_vm1, %v2389_v17, 0.0 }
0x1101   : > { %2391 = vadd.xlane.f32.xlu1 %v2390_v18  ;;  %v6016_v18 = vld [vmem:[%s7387_s29 + $0x88] sm:$0xff]  }
0x118e   : > { %v2392_v30 = vpop.xlane.xlu1 %2391 }
0x118f   : > { %v2393_v32 = vmul.f32 0.015625, %v2392_v30 }
0x1191   : > { %v2394_v33 = vadd.f32 1e-05, %v2393_v32 }
0x1193   : > { %6091 = vrsqrt.f32 %v2394_v33 }
0x119d   : > { %v6092_v34 = vpop.eup %6091 }
0x119e   : > { %v2396_v36 = vmul.f32 %v6092_v34, %v2388_v16  ;;  %v6015_v16 = vld [vmem:[%s7387_s29 + $0x80] sm:$0xff]  }
0x11a0   : > { %v2404_v26 = vmul.f32 %v4874_v35, %v2396_v36  ;;  %v4917_v35 = vld [vmem:[%s7388_s6 + $0x4] ss:$0 sm:$0xff] }
0x11a2   : > { %v2412_v38 = vadd.f32 %v4875_v37, %v2404_v26 }
0x11a4   : > { %v2413_v39 = vpack.c.bf16 %v2412_v38, %v2412_v38 }
0x11a6   : > { %5611 = vmatmul.mubr.msk.bf16.vlgmr.msra.gmra.mrb[44].mxu0 %vm799_vm1, %v2413_v39 }
0x11a7   : > { %5642 = vmatprep.mubr.msk.bf16.mxu0 %vm6180_vm0, %v6179_v1  ;;  %5635 = vmatpush3.bf16.msra.mxu0 %v6007_v62 }
0x11a8   : > { %5636 = vmatprep.subr.bf16.mxu0 %v6179_v1 }
0x11ab   : > { %5637 = vmatpush3.bf16.msra.mxu0 %v6009_v0 }
0x11ac   : > { %5638 = vmatprep.subr.bf16.mxu0 %v6179_v1 }
0x11af   : > { %5639 = vmatpush3.bf16.msra.mxu0 %v6011_v3 }
0x11b0   : > { %5640 = vmatprep.subr.bf16.mxu0 %v6179_v1 }
0x11b3   : > { %5641 = vmatpush3.bf16.msra.mxu0 %v6013_v5 }
0x11b4   : > { %5646 = vmatprep.subr.bf16.mxu0 %v6179_v1 }
0x1279   : > { %v2490_v42 = vpop.f32.mrb[44].mxu0 }
0x127a   : > { %v2491_v43 = vadd.f32 %v4876_v31, %v2490_v42  ;;  %v5612_v44 = vpop.f32.mrb[45].mxu0 }
0x127b   : > { %v2493_v45 = vpop.f32.mrb[46].mxu0 }
0x127c   : > { %v2496_v46 = vmax.f32 %v2491_v43, 0.0  ;;  %v5613_v47 = vpop.f32.mrb[47].mxu0  ;;  %v6019_v43 = vld [vmem:[%s7384_s0 + $0xa0] sm:$0xff]   ;;  %v6020_v45 = vld [vmem:[%s7384_s0 + $0xa8] sm:$0xff]  }
0x127d   : > { %v6022_v47 = vld [vmem:[%s7384_s0 + $0xb8] sm:$0xff]  }
0x127e   : > { %v2497_v48 = vpack.c.bf16 %v2496_v46, %v2496_v46  ;;  %v6021_v46 = vld [vmem:[%s7384_s0 + $0xb0] sm:$0xff]  }
0x1280   : > { %5631 = vmatmul.mubr.bf16.vlgmr.msra.gmra.mrb[56].mxu1 %v2497_v48  ;;  %v6023_v48 = vld [vmem:[%s7342_s7 + $0xa0] sm:$0xff]  }
0x1281   : > { %5666 = vmatprep.mubr.msk.bf16.mxu1 %vm6180_vm0, %v6179_v1  ;;  %5659 = vmatpush3.bf16.msra.mxu1 %v6008_v63 }
0x1282   : > { %5660 = vmatprep.subr.bf16.mxu1 %v6179_v1 }
0x1285   : > { %5661 = vmatpush3.bf16.msra.mxu1 %v6010_v2 }
0x1286   : > { %5662 = vmatprep.subr.bf16.mxu1 %v6179_v1 }
0x1289   : > { %5663 = vmatpush3.bf16.msra.mxu1 %v6012_v4 }
0x128a   : > { %5664 = vmatprep.subr.bf16.mxu1 %v6179_v1 }
0x128d   : > { %5665 = vmatpush3.bf16.msra.mxu1 %v6014_v6 }
0x128e   : > { %5676 = vmatprep.subr.bf16.mxu1 %v6179_v1 }
0x1353   : > { %v2603_v50 = vpop.f32.mrb[56].mxu1 }
0x1354   : > { %v2604_v51 = vadd.f32 %v4882_v49, %v2603_v50  ;;  %v5632_v52 = vpop.f32.mrb[57].mxu1  ;;  %v6024_v49 = vld [vmem:[%s7342_s7 + $0xa8] sm:$0xff]   ;;  %v6025_v50 = vld [vmem:[%s7342_s7 + $0xb0] sm:$0xff]  }
0x1355   : > { %v2606_v53 = vpop.f32.mrb[58].mxu1 }
0x1356   : > { %v5633_v54 = vpop.f32.mrb[59].mxu1  ;;  %v2609_v55 = vadd.f32 %v2604_v51, %v2412_v38  ;;  %v6026_v51 = vld [vmem:[%s7342_s7 + $0xb8] sm:$0xff]  }
0x1358   : > { %v2610_v56 = vsel %vm799_vm1, %v2609_v55, 0.0 }
0x1359   : > { %2611 = vadd.xlane.f32.xlu0 %v2610_v56 }
0x13e6   : > { %v2612_v57 = vpop.xlane.xlu0 %2611 }
0x13e7   : > { %v2613_v58 = vmul.f32 0.015625, %v2612_v57 }
0x13e9   : > { %v2614_v59 = vsub.f32 %v2609_v55, %v2613_v58 }
0x13eb   : > { %v2615_v60 = vmul.f32 %v2614_v59, %v2614_v59 }
0x13ed   : > { %v2616_v61 = vsel %vm799_vm1, %v2615_v60, 0.0 }
0x13ee   : > { %2617 = vadd.xlane.f32.xlu1 %v2616_v61 }
0x147b   : > { %v2618_v7 = vpop.xlane.xlu1 %2617 }
0x147c   : > { %v2619_v8 = vmul.f32 0.015625, %v2618_v7 }
0x147e   : > { %v2620_v9 = vadd.f32 1e-05, %v2619_v8 }
0x1480   : > { %6093 = vrsqrt.f32 %v2620_v9 }
0x148a   : > { %v6094_v10 = vpop.eup %6093 }
0x148b   : > { %v2622_v12 = vmul.f32 %v6094_v10, %v2614_v59  ;;  %v6027_v10 = vld [vmem:[%s7387_s29 + $0xa0] sm:$0xff]  }
0x148d   : > { %v2630_v14 = vmul.f32 %v4891_v11, %v2622_v12  ;;  %v6028_v12 = vld [vmem:[%s7387_s29 + $0xa8] sm:$0xff]  }
0x148f   : > { %v6863_v15 = vadd.f32 %v4892_v13, %v2630_v14  ;;  %v6029_v13 = vld [vmem:[%s7387_s29 + $0xb0] sm:$0xff]   ;;  %v6030_v14 = vld [vmem:[%s7387_s29 + $0xb8] sm:$0xff]  }
0x1491   : > { %v6870_v17 = vpack.c.bf16 %v6863_v15, %v6863_v15 }
0x1493   : > { %5643 = vmatmul.mubr.msk.bf16.vlgmr.msra.gmra.mrb[48].mxu0 %vm799_vm1, %v6870_v17  ;;  %5667 = vmatmul.mubr.msk.bf16.vlgmr.msra.gmra.mrb[60].mxu1 %vm799_vm1, %v6870_v17 }
0x1494   : > { %5647 = vmatpush3.bf16.msra.mxu0 %v6015_v16  ;;  %5654 = vmatprep.mubr.msk.bf16.mxu0 %vm6180_vm0, %v6179_v1 }
0x1495   : > { %5648 = vmatprep.subr.bf16.mxu0 %v6179_v1  ;;  %5678 = vmatprep.mubr.msk.bf16.mxu1 %vm6180_vm0, %v6179_v1 }
0x1498   : > { %5649 = vmatpush3.bf16.msra.mxu0 %v6016_v18 }
0x1499   : > { %5650 = vmatprep.subr.bf16.mxu0 %v6179_v1 }
0x149c   : > { %5651 = vmatpush3.bf16.msra.mxu0 %v6017_v19 }
0x149d   : > { %5652 = vmatprep.subr.bf16.mxu0 %v6179_v1 }
0x14a0   : > { %5653 = vmatpush3.bf16.msra.mxu0 %v6018_v21 }
0x14a1   : > { %5670 = vmatprep.subr.bf16.mxu0 %v6179_v1 }
0x14a3   : > { %5655 = vmatmul.mubr.msk.bf16.vlgmr.msra.gmra.mrb[52].mxu0 %vm799_vm1, %v6870_v17 }
0x14a4   : > { %5672 = vmatprep.mubr.msk.bf16.mxu0 %vm6180_vm0, %v6179_v1 }
0x1566   : > { %v2718_v22 = vpop.f32.mrb[48].mxu0  ;;  %v2880_v23 = vpop.f32.mrb[60].mxu1 }
0x1567   : > { %v2881_v24 = vadd.f32 %v4932_v20, %v2880_v23  ;;  %v5644_v25 = vpop.f32.mrb[49].mxu0  ;;  %v5668_v27 = vpop.f32.mrb[61].mxu1  ;;  %v2719_v42 = vadd.f32 %v4902_v41, %v2718_v22  ;;  %v4966_v20 = vld [vmem:[%s7388_s6 + $0x5] ss:$0 sm:$0xff] }
0x1568   : > { %v2721_v28 = vpop.f32.mrb[50].mxu0  ;;  %v2883_v29 = vpop.f32.mrb[62].mxu1  ;;  %v4981_v25 = vld [vmem:[%s7343_s8 + $0x5] ss:$0 sm:$0xff] }
0x1569   : > { %v2946_v30 = vpack.c.bf16 %v2881_v24, %v2881_v24  ;;  %v5645_v32 = vpop.f32.mrb[51].mxu0  ;;  %v5669_v33 = vpop.f32.mrb[63].mxu1  ;;  %v2886_v44 = vpack.c.bf16 %v2719_v42, %v2719_v42 }
0x156b   : > { %v2951_v34 = vsel %vm1067_vm3, %v2946_v30, 0  ;;  %v4951_v30 = vld [vmem:[%s7389_s23 + $0x5] ss:$0 sm:$0xff] }
0x156c   : > { %5677 = vmatpush3.bf16.msra.mxu1 %v2951_v34 }
0x156d   : > { %5694 = vmatprep.subr.bf16.mxu1 %v6179_v1 }
0x1576   : > { %v2799_v36 = vpop.f32.mrb[52].mxu0 }
0x1577   : > { %v2800_v37 = vadd.f32 %v4917_v35, %v2799_v36  ;;  %v5656_v26 = vpop.f32.mrb[53].mxu0 }
0x1578   : > { %v2802_v38 = vpop.f32.mrb[54].mxu0 }
0x1579   : > { %v2887_v39 = vpack.c.bf16 %v2800_v37, %v2800_v37  ;;  %v5657_v40 = vpop.f32.mrb[55].mxu0 }
0x157b   : > { %v2892_v31 = vsel %vm1003_vm2, %v2887_v39, 0 }
0x157c   : > { %5671 = vmatpush3.bf16.xpose.msra.mxu0 %v2892_v31 }
0x157d   : > { %5682 = vmatprep.subr.bf16.mxu0 %v6179_v1 }
0x1583   : > { %5673 = vmatmul.mubr.msk.bf16.vlgmr.msra.gmra.mrb[56].mxu0 %vm1003_vm2, %v2886_v44 }
0x1584   : > { %5683 = vmatpush3.bf16.msra.mxu0 %v6019_v43  ;;  %5690 = vmatprep.mubr.msk.bf16.mxu0 %vm6180_vm0, %v6179_v1 }
0x1585   : > { %5684 = vmatprep.subr.bf16.mxu0 %v6179_v1 }
0x1588   : > { %5685 = vmatpush3.bf16.msra.mxu0 %v6020_v45 }
0x1589   : > { %5686 = vmatprep.subr.bf16.mxu0 %v6179_v1 }
0x158c   : > { %5687 = vmatpush3.bf16.msra.mxu0 %v6021_v46  ;;  %v6036_v46 = vld [vmem:[%s7344_s9 + $0x28] sm:$0xff]  }
0x158d   : > { %5688 = vmatprep.subr.bf16.mxu0 %v6179_v1 }
0x1590   : > { %5689 = vmatpush3.bf16.msra.mxu0 %v6022_v47 }
0x1591   : > { %5706 = vmatprep.subr.bf16.mxu0 %v6179_v1 }
0x1593   : > { %5691 = vmatmul.mubr.msk.bf16.vlgmr.msra.gmra.mrb[60].mxu0 %vm799_vm1, %v6870_v17 }
0x1594   : > { %5707 = vmatpush3.bf16.msra.mxu0 %v6023_v48  ;;  %5714 = vmatprep.mubr.msk.bf16.mxu0 %vm6180_vm0, %v6179_v1 }
0x1595   : > { %5708 = vmatprep.subr.bf16.mxu0 %v6179_v1 }
0x1598   : > { %5709 = vmatpush3.bf16.msra.mxu0 %v6024_v49 }
0x1599   : > { %5710 = vmatprep.subr.bf16.mxu0 %v6179_v1 }
0x159c   : > { %5711 = vmatpush3.bf16.msra.mxu0 %v6025_v50  ;;  %v6031_v50 = vld [vmem:[%s7344_s9 + $0x20] sm:$0xff]  }
0x159d   : > { %5712 = vmatprep.subr.bf16.mxu0 %v6179_v1 }
0x15a0   : > { %5713 = vmatpush3.bf16.msra.mxu0 %v6026_v51 }
0x15a1   : > { %5730 = vmatprep.subr.bf16.mxu0 %v6179_v1 }
0x15a3   : > { %5715 = vmatmul.mubr.msk.bf16.vlgmr.msra.gmra.mrb[64].mxu0 %vm799_vm1, %v6870_v17 }
0x15a4   : > { %5732 = vmatprep.mubr.msk.bf16.mxu0 %vm6180_vm0, %v6179_v1  ;;  %5731 = vmatpush3.bf16.msra.mxu0 %v6036_v46 }
0x15a5   : > { %5742 = vmatprep.subr.bf16.mxu0 %v6179_v1 }
0x1656   : > { %v2928_v52 = vpop.f32.mrb[56].mxu0 }
0x1657   : > { %v5674_v53 = vpop.f32.mrb[57].mxu0  ;;  %v2934_v54 = vsel %vm1050_vm4, %v2928_v52, -inf }
0x1658   : > { %2935 = vmax.xlane.f32.xlu0 %v2934_v54  ;;  %v2931_v55 = vpop.f32.mrb[58].mxu0  ;;  %v6033_v54 = vld [vmem:[%s7387_s29 + $0xc8] sm:$0xff]  }
0x1659   : > { %v5675_v56 = vpop.f32.mrb[59].mxu0  ;;  %v6034_v55 = vld [vmem:[%s7387_s29 + $0xd0] sm:$0xff]  }
0x165a   : > { %v6035_v56 = vld [vmem:[%s7387_s29 + $0xd8] sm:$0xff]  }
0x1666   : > { %v3072_v57 = vpop.f32.mrb[60].mxu0 }
0x1667   : > { %v5692_v58 = vpop.f32.mrb[61].mxu0  ;;  %v3073_v34 = vadd.f32 %v4951_v30, %v3072_v57 }
0x1668   : > { %v3075_v59 = vpop.f32.mrb[62].mxu0  ;;  %v6037_v58 = vld [vmem:[%s7384_s0 + $0xc0] sm:$0xff]  }
0x1669   : > { %v5693_v60 = vpop.f32.mrb[63].mxu0  ;;  %v3240_v36 = vpack.c.bf16 %v3073_v34, %v3073_v34 }
0x1676   : > { %v3234_v61 = vpop.f32.mrb[64].mxu0 }
0x1677   : > { %v5716_v62 = vpop.f32.mrb[65].mxu0  ;;  %v3235_v32 = vadd.f32 %v4981_v25, %v3234_v61 }
0x1678   : > { %v3237_v63 = vpop.f32.mrb[66].mxu0 }
0x1679   : > { %v5717_v0 = vpop.f32.mrb[67].mxu0  ;;  %v3300_v35 = vpack.c.bf16 %v3235_v32, %v3235_v32  ;;  %v6038_v63 = vld [vmem:[%s7384_s0 + $0xc8] sm:$0xff]  }
0x167b   : > { %v3305_v37 = vsel %vm1067_vm3, %v3300_v35, 0  ;;  %v5034_v35 = vld [vmem:[%s7343_s8 + $0x6] ss:$0 sm:$0xff] }
0x16e5   : > { %v2936_v2 = vpop.xlane.xlu0 %2935 }
0x16e6   : > { %v2937_v3 = vsub.f32 %v2928_v52, %v2936_v2  ;;  %v6032_v52 = vld [vmem:[%s7387_s29 + $0xc0] sm:$0xff]   ;;  %v6039_v2 = vld [vmem:[%s7384_s0 + $0xd0] sm:$0xff]  }
0x16e8   : > { %v2938_v4 = vmul.f32 1.442695, %v2937_v3 }
0x16ea   : > { %6095 = vpow2.f32 %v2938_v4 }
0x16f4   : > { %v6096_v5 = vpop.eup %6095 }
0x16f5   : > { %v2940_v6 = vsel %vm1050_vm4, %v6096_v5, 0.0 }
0x16f6   : > { %2941 = vadd.xlane.f32.xlu1 %v2940_v6  ;;  %v6040_v6 = vld [vmem:[%s7384_s0 + $0xd8] sm:$0xff]  }
0x1783   : > { %v2942_v7 = vpop.xlane.xlu1 %2941 }
0x1784   : > { %6097 = vrcp.f32 %v2942_v7  ;;  %v6041_v7 = vld [vmem:[%s7342_s7 + $0xc0] sm:$0xff]  }
0x178e   : > { %v6098_v8 = vpop.eup %6097 }
0x178f   : > { %v2944_v9 = vmul.f32 %v6098_v8, %v6096_v5  ;;  %v6042_v8 = vld [vmem:[%s7342_s7 + $0xc8] sm:$0xff]  }
0x1791   : > { %v2945_v11 = vpack.c.bf16 %v2944_v9, %v2944_v9  ;;  %v5019_v9 = vld [vmem:[%s7388_s6 + $0x6] ss:$0 sm:$0xff] }
0x1793   : > { %5679 = vmatmul.mubr.msk.bf16.vlgmr.msra.gmra.mrb[64].mxu1 %vm1050_vm4, %v2945_v11  ;;  %v6043_v11 = vld [vmem:[%s7342_s7 + $0xd0] sm:$0xff]  }
0x1794   : > { %5695 = vmatpush3.bf16.msra.mxu1 %v6027_v10  ;;  %5702 = vmatprep.mubr.msk.bf16.mxu1 %vm6180_vm0, %v6179_v1 }
0x1795   : > { %5696 = vmatprep.subr.bf16.mxu1 %v6179_v1 }
0x1798   : > { %5697 = vmatpush3.bf16.msra.mxu1 %v6028_v12 }
0x1799   : > { %5698 = vmatprep.subr.bf16.mxu1 %v6179_v1 }
0x179c   : > { %5699 = vmatpush3.bf16.msra.mxu1 %v6029_v13 }
0x179d   : > { %5700 = vmatprep.subr.bf16.mxu1 %v6179_v1 }
0x17a0   : > { %5701 = vmatpush3.bf16.msra.mxu1 %v6030_v14 }
0x17a1   : > { %5718 = vmatprep.subr.bf16.mxu1 %v6179_v1 }
0x17a3   : > { %5703 = vmatmul.mubr.msk.bf16.vlgmr.msra.gmra.mrb[68].mxu1 %vm799_vm1, %v6870_v17 }
0x17a4   : > { %5720 = vmatprep.mubr.msk.bf16.mxu1 %vm6180_vm0, %v6179_v1 }
0x1866   : > { %v2987_v16 = vpop.f32.mrb[64].mxu1 }
0x1867   : > { %v5680_v18 = vpop.f32.mrb[65].mxu1  ;;  %v2993_v53 = vpack.c.bf16 %v2987_v16, %v2987_v16 }
0x1868   : > { %v2990_v19 = vpop.f32.mrb[66].mxu1 }
0x1869   : > { %v5681_v21 = vpop.f32.mrb[67].mxu1  ;;  %v6044_v19 = vld [vmem:[%s7342_s7 + $0xd8] sm:$0xff]  }
0x1876   : > { %v3153_v22 = vpop.f32.mrb[68].mxu1 }
0x1877   : > { %v3154_v23 = vadd.f32 %v4966_v20, %v3153_v22  ;;  %v5704_v24 = vpop.f32.mrb[69].mxu1 }
0x1878   : > { %v3156_v27 = vpop.f32.mrb[70].mxu1 }
0x1879   : > { %v3241_v28 = vpack.c.bf16 %v3154_v23, %v3154_v23  ;;  %v5705_v29 = vpop.f32.mrb[71].mxu1  ;;  %v5004_v27 = vld [vmem:[%s7389_s23 + $0x6] ss:$0 sm:$0xff] }
0x187b   : > { %v3246_v33 = vsel %vm1003_vm2, %v3241_v28, 0 }
0x187c   : > { %5719 = vmatpush3.bf16.xpose.msra.mxu1 %v3246_v33 }
0x187d   : > { %5724 = vmatprep.subr.bf16.mxu1 %v6179_v1 }
0x1883   : > { %5721 = vmatmul.mubr.msk.bf16.vlgmr.msra.gmra.mrb[72].mxu1 %vm1003_vm2, %v3240_v36 }
0x1884   : > { %5725 = vmatpush3.bf16.msra.mxu1 %v3305_v37  ;;  %5726 = vmatprep.mubr.msk.bf16.mxu1 %vm6180_vm0, %v6179_v1 }
0x1885   : > { %5736 = vmatprep.subr.bf16.mxu1 %v6179_v1 }
0x1956   : > { %v3282_v26 = vpop.f32.mrb[72].mxu1 }
0x1957   : > { %v5722_v38 = vpop.f32.mrb[73].mxu1  ;;  %v3288_v39 = vsel %vm1050_vm4, %v3282_v26, -inf }
0x1958   : > { %3289 = vmax.xlane.f32.xlu0 %v3288_v39  ;;  %v3285_v40 = vpop.f32.mrb[74].mxu1 }
0x1959   : > { %v5723_v41 = vpop.f32.mrb[75].mxu1 }
0x19e5   : > { %v3290_v31 = vpop.xlane.xlu0 %3289 }
0x19e6   : > { %v3291_v42 = vsub.f32 %v3282_v26, %v3290_v31 }
0x19e8   : > { %v3292_v43 = vmul.f32 1.442695, %v3291_v42 }
0x19ea   : > { %6099 = vpow2.f32 %v3292_v43 }
0x19f4   : > { %v6100_v44 = vpop.eup %6099 }
0x19f5   : > { %v3294_v45 = vsel %vm1050_vm4, %v6100_v44, 0.0 }
0x19f6   : > { %3295 = vadd.xlane.f32.xlu1 %v3294_v45 }
0x1a83   : > { %v3296_v47 = vpop.xlane.xlu1 %3295 }
0x1a84   : > { %6101 = vrcp.f32 %v3296_v47 }
0x1a8e   : > { %v6102_v48 = vpop.eup %6101 }
0x1a8f   : > { %v3298_v49 = vmul.f32 %v6102_v48, %v6100_v44 }
0x1a91   : > { %v3299_v51 = vpack.c.bf16 %v3298_v49, %v3298_v49 }
0x1a93   : > { %5727 = vmatmul.mubr.msk.bf16.vlgmr.msra.gmra.mrb[76].mxu1 %vm1050_vm4, %v3299_v51  ;;  %v6053_v51 = vld [vmem:[%s7344_s9 + $0x30] sm:$0xff]  }
0x1a94   : > { %5737 = vmatpush3.bf16.msra.mxu1 %v6031_v50  ;;  %5738 = vmatprep.mubr.msk.bf16.mxu1 %vm6180_vm0, %v6179_v1 }
0x1a95   : > { %5754 = vmatprep.subr.bf16.mxu1 %v6179_v1 }
0x1a9b   : > { %5739 = vmatmul.mubr.msk.bf16.vlgmr.msra.gmra.mrb[80].mxu1 %vm1003_vm2, %v2993_v53 }
0x1a9c   : > { %5755 = vmatpush3.bf16.msra.mxu1 %v6032_v52  ;;  %5762 = vmatprep.mubr.msk.bf16.mxu1 %vm6180_vm0, %v6179_v1 }
0x1a9d   : > { %5756 = vmatprep.subr.bf16.mxu1 %v6179_v1 }
0x1aa0   : > { %5757 = vmatpush3.bf16.msra.mxu1 %v6033_v54 }
0x1aa1   : > { %5758 = vmatprep.subr.bf16.mxu1 %v6179_v1 }
0x1aa4   : > { %5759 = vmatpush3.bf16.msra.mxu1 %v6034_v55  ;;  %v6045_v55 = vld [vmem:[%s7384_s0 + $0xe0] sm:$0xff]  }
0x1aa5   : > { %5760 = vmatprep.subr.bf16.mxu1 %v6179_v1 }
0x1aa8   : > { %5761 = vmatpush3.bf16.msra.mxu1 %v6035_v56 }
0x1aa9   : > { %5778 = vmatprep.subr.bf16.mxu1 %v6179_v1 }
0x1aab   : > { %5763 = vmatmul.mubr.msk.bf16.vlgmr.msra.gmra.mrb[84].mxu1 %vm799_vm1, %v6870_v17 }
0x1aac   : > { %5780 = vmatprep.mubr.msk.bf16.mxu1 %vm6180_vm0, %v6179_v1 }
0x1b66   : > { %v3341_v57 = vpop.f32.mrb[76].mxu1 }
0x1b67   : > { %v3347_v59 = vpack.c.bf16 %v3341_v57, %v3341_v57  ;;  %v5728_v60 = vpop.f32.mrb[77].mxu1  ;;  %v6046_v57 = vld [vmem:[%s7384_s0 + $0xe8] sm:$0xff]  }
0x1b68   : > { %v3344_v61 = vpop.f32.mrb[78].mxu1  ;;  %v6049_v60 = vld [vmem:[%s7342_s7 + $0xe0] sm:$0xff]  }
0x1b69   : > { %v5729_v62 = vpop.f32.mrb[79].mxu1  ;;  %5733 = vmatmul.mubr.msk.bf16.vlgmr.msra.gmra.mrb[68].mxu0 %vm1003_vm2, %v3347_v59  ;;  %v6048_v59 = vld [vmem:[%s7384_s0 + $0xf8] sm:$0xff]   ;;  %v6050_v61 = vld [vmem:[%s7342_s7 + $0xe8] sm:$0xff]  }
0x1b6a   : > { %5743 = vmatpush3.bf16.msra.mxu0 %v6037_v58  ;;  %5750 = vmatprep.mubr.msk.bf16.mxu0 %vm6180_vm0, %v6179_v1  ;;  %v6047_v58 = vld [vmem:[%s7384_s0 + $0xf0] sm:$0xff]   ;;  %s7293_s0 = scalar_lea.hbm %s7356_s21, %s5153_s26 }
0x1b6b   : > { %5744 = vmatprep.subr.bf16.mxu0 %v6179_v1  ;;  %v6051_v62 = vld [vmem:[%s7342_s7 + $0xf0] sm:$0xff]  }
0x1b6e   : > { %5745 = vmatpush3.bf16.msra.mxu0 %v6038_v63  ;;  %v3443_v0 = vpop.f32.mrb[80].mxu1  ;;  %v6052_v63 = vld [vmem:[%s7342_s7 + $0xf8] sm:$0xff]  }
0x1b6f   : > { %v5740_v3 = vpop.f32.mrb[81].mxu1  ;;  %5746 = vmatprep.subr.bf16.mxu0 %v6179_v1 }
0x1b70   : > { %v3446_v4 = vpop.f32.mrb[82].mxu1 }
0x1b71   : > { %v5741_v5 = vpop.f32.mrb[83].mxu1 }
0x1b72   : > { %5747 = vmatpush3.bf16.msra.mxu0 %v6039_v2  ;;  %v6054_v2 = vld [vmem:[%s7387_s29 + $0xe0] sm:$0xff]  }
0x1b73   : > { %5748 = vmatprep.subr.bf16.mxu0 %v6179_v1 }
0x1b76   : > { %5749 = vmatpush3.bf16.msra.mxu0 %v6040_v6 }
0x1b77   : > { %5766 = vmatprep.subr.bf16.mxu0 %v6179_v1 }
0x1b79   : > { %5751 = vmatmul.mubr.msk.bf16.vlgmr.msra.gmra.mrb[72].mxu0 %vm799_vm1, %v6870_v17 }
0x1b7a   : > { %5767 = vmatpush3.bf16.msra.mxu0 %v6041_v7  ;;  %5774 = vmatprep.mubr.msk.bf16.mxu0 %vm6180_vm0, %v6179_v1  ;;  %v6055_v7 = vld [vmem:[%s7387_s29 + $0xe8] sm:$0xff]  }
0x1b7b   : > { %5768 = vmatprep.subr.bf16.mxu0 %v6179_v1 }
0x1b7e   : > { %v3605_v10 = vpop.f32.mrb[84].mxu1  ;;  %5769 = vmatpush3.bf16.msra.mxu0 %v6042_v8  ;;  %v6056_v8 = vld [vmem:[%s7387_s29 + $0xf0] sm:$0xff]  }
0x1b7f   : > { %v3606_v12 = vadd.f32 %v5019_v9, %v3605_v10  ;;  %v5764_v13 = vpop.f32.mrb[85].mxu1  ;;  %5770 = vmatprep.subr.bf16.mxu0 %v6179_v1  ;;  %v6057_v9 = vld [vmem:[%s7387_s29 + $0xf8] sm:$0xff]  }
0x1b80   : > { %v3608_v14 = vpop.f32.mrb[86].mxu1 }
0x1b81   : > { %v3693_v16 = vpack.c.bf16 %v3606_v12, %v3606_v12  ;;  %v5765_v18 = vpop.f32.mrb[87].mxu1 }
0x1b82   : > { %5771 = vmatpush3.bf16.msra.mxu0 %v6043_v11 }
0x1b83   : > { %v3698_v21 = vsel %vm1003_vm2, %v3693_v16, 0  ;;  %5772 = vmatprep.subr.bf16.mxu0 %v6179_v1 }
0x1b84   : > { %5779 = vmatpush3.bf16.xpose.msra.mxu1 %v3698_v21 }
0x1b85   : > { %5784 = vmatprep.subr.bf16.mxu1 %v6179_v1 }
0x1b86   : > { %5773 = vmatpush3.bf16.msra.mxu0 %v6044_v19 }
0x1b87   : > { %5790 = vmatprep.subr.bf16.mxu0 %v6179_v1 }
0x1b89   : > { %5775 = vmatmul.mubr.msk.bf16.vlgmr.msra.gmra.mrb[76].mxu0 %vm799_vm1, %v6870_v17 }
0x1b8a   : > { %5792 = vmatprep.mubr.msk.bf16.mxu0 %vm6180_vm0, %v6179_v1  ;;  %5791 = vmatpush3.bf16.msra.mxu0 %v6053_v51 }
0x1b8b   : > { %5808 = vmatprep.subr.bf16.mxu0 %v6179_v1 }
0x1c3c   : > { %v3394_v20 = vpop.f32.mrb[68].mxu0 }
0x1c3d   : > { %v7078_v22 = vadd.f32 %v3443_v0, %v3394_v20  ;;  %v5734_v23 = vpop.f32.mrb[69].mxu0 }
0x1c3e   : > { %v3397_v24 = vpop.f32.mrb[70].mxu0 }
0x1c3f   : > { %v5735_v25 = vpop.f32.mrb[71].mxu0 }
0x1c4c   : > { %v3524_v28 = vpop.f32.mrb[72].mxu0 }
0x1c4d   : > { %v3525_v29 = vadd.f32 %v5004_v27, %v3524_v28  ;;  %v5752_v30 = vpop.f32.mrb[73].mxu0  ;;  %v5070_v27 = vld [vmem:[%s7388_s6 + $0x7] ss:$0 sm:$0xff]  ;;  %s6119_s6 = sshll.u32 %s6181_s28, 4  ;;  %s6120_s6 = int_to_ptr.vmem [resolvable:$false] %s6119_s6 }
0x1c4e   : > { %v3527_v32 = vpop.f32.mrb[74].mxu0  ;;  %v5085_v30 = vld [vmem:[%s7343_s8 + $0x7] ss:$0 sm:$0xff]  ;;  %s6121_s1 = scalar_lea.vmem %s6120_s6, 32  ;;  %p6122_p0 = scmp.lt.s32.totalorder %s7295_s2, %s6120_s6 }
0x1c4f   : > { %v3692_v33 = vpack.c.bf16 %v3525_v29, %v3525_v29  ;;  %v5753_v34 = vpop.f32.mrb[75].mxu0  ;;  %p6123_p1 = scmp.lt.s32.totalorder %s6121_s1, %s6115_s3 }
0x1c51   : > { %5781 = vmatmul.mubr.msk.bf16.vlgmr.msra.gmra.mrb[88].mxu1 %vm1003_vm2, %v3692_v33  ;;  %p6124_p2 = por %p6123_p1, %p6122_p0 }
0x1c52   : > { %5786 = vmatprep.mubr.msk.bf16.mxu1 %vm6180_vm0, %v6179_v1 }
0x1c53   : > { %p6125_p3 = pnand %p6124_p2, %p6118_p13 }
0x1c5c   : > { %v3686_v36 = vpop.f32.mrb[76].mxu0 }
0x1c5d   : > { %v3687_v37 = vadd.f32 %v5034_v35, %v3686_v36  ;;  %v5776_v26 = vpop.f32.mrb[77].mxu0 }
0x1c5e   : > { %v3689_v38 = vpop.f32.mrb[78].mxu0 }
0x1c5f   : > { %v3752_v39 = vpack.c.bf16 %v3687_v37, %v3687_v37  ;;  %v5777_v40 = vpop.f32.mrb[79].mxu0 }
0x1c61   : > { %v3757_v41 = vsel %vm1067_vm3, %v3752_v39, 0 }
0x1c62   : > { %5785 = vmatpush3.bf16.msra.mxu1 %v3757_v41 }
0x1c63   : > { %5796 = vmatprep.subr.bf16.mxu1 %v6179_v1 }
0x1d24   : > { %v3734_v31 = vpop.f32.mrb[88].mxu1 }
0x1d25   : > { %v5782_v42 = vpop.f32.mrb[89].mxu1  ;;  %v3740_v43 = vsel %vm1050_vm4, %v3734_v31, -inf }
0x1d26   : > { %3741 = vmax.xlane.f32.xlu0 %v3740_v43  ;;  %v3737_v44 = vpop.f32.mrb[90].mxu1 }
0x1d27   : > { %v5783_v45 = vpop.f32.mrb[91].mxu1 }
0x1db3   : > { %v3742_v46 = vpop.xlane.xlu0 %3741 }
0x1db4   : > { %v3743_v47 = vsub.f32 %v3734_v31, %v3742_v46 }
0x1db6   : > { %v3744_v48 = vmul.f32 1.442695, %v3743_v47 }
0x1db8   : > { %6103 = vpow2.f32 %v3744_v48 }
0x1dc2   : > { %v6104_v49 = vpop.eup %6103 }
0x1dc3   : > { %v3746_v50 = vsel %vm1050_vm4, %v6104_v49, 0.0 }
0x1dc4   : > { %3747 = vadd.xlane.f32.xlu1 %v3746_v50 }
0x1e51   : > { %v3748_v52 = vpop.xlane.xlu1 %3747 }
0x1e52   : > { %6105 = vrcp.f32 %v3748_v52 }
0x1e5c   : > { %v6106_v53 = vpop.eup %6105 }
0x1e5d   : > { %v3750_v54 = vmul.f32 %v6106_v53, %v6104_v49  ;;  %v6058_v49 = vld [vmem:[%s7344_s9 + $0x38] sm:$0xff]  }
0x1e5f   : > { %v3751_v56 = vpack.c.bf16 %v3750_v54, %v3750_v54 }
0x1e61   : > { %5787 = vmatmul.mubr.msk.bf16.vlgmr.msra.gmra.mrb[92].mxu1 %vm1050_vm4, %v3751_v56 }
0x1e62   : > { %5797 = vmatpush3.bf16.msra.mxu1 %v6045_v55  ;;  %5804 = vmatprep.mubr.msk.bf16.mxu1 %vm6180_vm0, %v6179_v1 }
0x1e63   : > { %5798 = vmatprep.subr.bf16.mxu1 %v6179_v1 }
0x1e66   : > { %5799 = vmatpush3.bf16.msra.mxu1 %v6046_v57 }
0x1e67   : > { %5800 = vmatprep.subr.bf16.mxu1 %v6179_v1 }
0x1e6a   : > { %5801 = vmatpush3.bf16.msra.mxu1 %v6047_v58 }
0x1e6b   : > { %5802 = vmatprep.subr.bf16.mxu1 %v6179_v1 }
0x1e6e   : > { %5803 = vmatpush3.bf16.msra.mxu1 %v6048_v59 }
0x1e6f   : > { %5820 = vmatprep.subr.bf16.mxu1 %v6179_v1 }
0x1e71   : > { %5805 = vmatmul.mubr.msk.bf16.vlgmr.msra.gmra.mrb[96].mxu1 %vm799_vm1, %v6870_v17 }
0x1e72   : > { %5821 = vmatpush3.bf16.msra.mxu1 %v6049_v60  ;;  %5828 = vmatprep.mubr.msk.bf16.mxu1 %vm6180_vm0, %v6179_v1  ;;  %v5098_v60 = vld [vmem:[%s7345_s10 + $0x1] ss:$0 sm:$0xff] }
0x1e73   : > { %5822 = vmatprep.subr.bf16.mxu1 %v6179_v1 }
0x1e76   : > { %5823 = vmatpush3.bf16.msra.mxu1 %v6050_v61 }
0x1e77   : > { %5824 = vmatprep.subr.bf16.mxu1 %v6179_v1 }
0x1e7a   : > { %5825 = vmatpush3.bf16.msra.mxu1 %v6051_v62 }
0x1e7b   : > { %5826 = vmatprep.subr.bf16.mxu1 %v6179_v1 }
0x1e7e   : > { %5827 = vmatpush3.bf16.msra.mxu1 %v6052_v63 }
0x1e7f   : > { %5844 = vmatprep.subr.bf16.mxu1 %v6179_v1 }
0x1e81   : > { %5829 = vmatmul.mubr.msk.bf16.vlgmr.msra.gmra.mrb[100].mxu1 %vm799_vm1, %v6870_v17 }
0x1e82   : > { %5846 = vmatprep.mubr.msk.bf16.mxu1 %vm6180_vm0, %v6179_v1  ;;  %5845 = vmatpush3.bf16.msra.mxu1 %v6058_v49 }
0x1e83   : > { %5862 = vmatprep.subr.bf16.mxu1 %v6179_v1 }
0x1f34   : > { %v3793_v0 = vpop.f32.mrb[92].mxu1 }
0x1f35   : > { %v3799_v3 = vpack.c.bf16 %v3793_v0, %v3793_v0  ;;  %v5788_v4 = vpop.f32.mrb[93].mxu1 }
0x1f36   : > { %v3796_v5 = vpop.f32.mrb[94].mxu1 }
0x1f37   : > { %v5789_v6 = vpop.f32.mrb[95].mxu1  ;;  %5793 = vmatmul.mubr.msk.bf16.vlgmr.msra.gmra.mrb[80].mxu0 %vm1003_vm2, %v3799_v3 }
0x1f38   : > { %5809 = vmatpush3.bf16.msra.mxu0 %v6054_v2  ;;  %5816 = vmatprep.mubr.msk.bf16.mxu0 %vm6180_vm0, %v6179_v1 }
0x1f39   : > { %5810 = vmatprep.subr.bf16.mxu0 %v6179_v1 }
0x1f3c   : > { %5811 = vmatpush3.bf16.msra.mxu0 %v6055_v7 }
0x1f3d   : > { %5812 = vmatprep.subr.bf16.mxu0 %v6179_v1 }
0x1f40   : > { %5813 = vmatpush3.bf16.msra.mxu0 %v6056_v8 }
0x1f41   : > { %5814 = vmatprep.subr.bf16.mxu0 %v6179_v1 }
0x1f44   : > { %v3928_v10 = vpop.f32.mrb[96].mxu1  ;;  %5815 = vmatpush3.bf16.msra.mxu0 %v6057_v9 }
0x1f45   : > { %v5806_v11 = vpop.f32.mrb[97].mxu1  ;;  %5832 = vmatprep.subr.bf16.mxu0 %v6179_v1 }
0x1f46   : > { %v3931_v12 = vpop.f32.mrb[98].mxu1  ;;  %v6061_v11 = vld [vmem:[%s7348_s13 + $0x30] sm:$0xff]  }
0x1f47   : > { %v5807_v13 = vpop.f32.mrb[99].mxu1  ;;  %5817 = vmatmul.mubr.msk.bf16.vlgmr.msra.gmra.mrb[84].mxu0 %vm799_vm1, %v6870_v17  ;;  %v6062_v12 = vld [vmem:[%s7348_s13 + $0x38] sm:$0xff]  }
0x1f48   : > { %5834 = vmatprep.mubr.msk.bf16.mxu0 %vm6180_vm0, %v6179_v1  ;;  %v6063_v13 = vld [vmem:[%s7350_s15 + $0x40] sm:$0xff]  }
0x1f54   : > { %v4090_v14 = vpop.f32.mrb[100].mxu1 }
0x1f55   : > { %v5830_v16 = vpop.f32.mrb[101].mxu1  ;;  %v4091_v35 = vadd.f32 %v5085_v30, %v4090_v14  ;;  %v6064_v14 = vld [vmem:[%s7350_s15 + $0x48] sm:$0xff]  }
0x1f56   : > { %v4093_v18 = vpop.f32.mrb[102].mxu1  ;;  %v6065_v16 = vld [vmem:[%s7350_s15 + $0x50] sm:$0xff]  }
0x1f57   : > { %v5831_v19 = vpop.f32.mrb[103].mxu1  ;;  %v4156_v26 = vpack.c.bf16 %v4091_v35, %v4091_v35  ;;  %v6066_v18 = vld [vmem:[%s7350_s15 + $0x58] sm:$0xff]  }
0x1f58   : > { %v6067_v19 = vld [vmem:[%s7350_s15 + $0x60] sm:$0xff]  }
0x1f59   : > { %v4161_v39 = vsel %vm1067_vm3, %v4156_v26, 0 }
0x200a   : > { %v3846_v21 = vpop.f32.mrb[80].mxu0 }
0x200b   : > { %v3852_v20 = vadd.f32 %v3846_v21, %v7078_v22  ;;  %v5794_v23 = vpop.f32.mrb[81].mxu0  ;;  %v5055_v22 = vld [vmem:[%s7389_s23 + $0x7] ss:$0 sm:$0xff]  ;;  %v6068_v21 = vld [vmem:[%s7350_s15 + $0x68] sm:$0xff]  }
0x200c   : > { %v3849_v24 = vpop.f32.mrb[82].mxu0  ;;  %v3929_v37 = vadd.f32 %v5055_v22, %v3928_v10  ;;  %v6059_v10 = vld [vmem:[%s7348_s13 + $0x20] sm:$0xff]  }
0x200d   : > { %v5795_v25 = vpop.f32.mrb[83].mxu0  ;;  %v5112_v22 = vld [vmem:[%s7349_s14 + $0x1] ss:$0 sm:$0xff] }
0x200e   : > { %v4096_v38 = vpack.c.bf16 %v3929_v37, %v3929_v37 }
0x201a   : > { %v4009_v28 = vpop.f32.mrb[84].mxu0 }
0x201b   : > { %v4010_v29 = vadd.f32 %v5070_v27, %v4009_v28  ;;  %v5818_v17 = vpop.f32.mrb[85].mxu0  ;;  %v5100_v27 = vld [vmem:[%s7346_s11 + $0x1] ss:$0 sm:$0xff] }
0x201c   : > { %v4012_v32 = vpop.f32.mrb[86].mxu0 }
0x201d   : > { %v4097_v33 = vpack.c.bf16 %v4010_v29, %v4010_v29  ;;  %v5819_v34 = vpop.f32.mrb[87].mxu0  ;;  %v5102_v29 = vld [vmem:[%s7347_s12 + $0x1] ss:$0 sm:$0xff] }
0x201e   : > { %v6070_v34 = vld [vmem:[%s7350_s15 + $0x78] sm:$0xff]  }
0x201f   : > { %v4102_v36 = vsel %vm1003_vm2, %v4097_v33, 0  ;;  %v6069_v33 = vld [vmem:[%s7350_s15 + $0x70] sm:$0xff]  }
0x2020   : > { %5833 = vmatpush3.bf16.xpose.msra.mxu0 %v4102_v36 }
0x2021   : > { %5838 = vmatprep.subr.bf16.mxu0 %v6179_v1 }
0x2027   : > { %5835 = vmatmul.mubr.msk.bf16.vlgmr.msra.gmra.mrb[88].mxu0 %vm1003_vm2, %v4096_v38 }
0x2028   : > { %5839 = vmatpush3.bf16.msra.mxu0 %v4161_v39  ;;  %5840 = vmatprep.mubr.msk.bf16.mxu0 %vm6180_vm0, %v6179_v1 }
0x2029   : > { %5850 = vmatprep.subr.bf16.mxu0 %v6179_v1 }
0x20fa   : > { %v4138_v40 = vpop.f32.mrb[88].mxu0 }
0x20fb   : > { %v5836_v41 = vpop.f32.mrb[89].mxu0  ;;  %v4144_v31 = vsel %vm1050_vm4, %v4138_v40, -inf }
0x20fc   : > { %4145 = vmax.xlane.f32.xlu0 %v4144_v31  ;;  %v4141_v42 = vpop.f32.mrb[90].mxu0  ;;  %v5135_v41 = vld [vmem:[%s7351_s16 + $0x1] ss:$0 sm:$0xff] }
0x20fd   : > { %v5837_v43 = vpop.f32.mrb[91].mxu0 }
0x2189   : > { %v4146_v44 = vpop.xlane.xlu0 %4145 }
0x218a   : > { %v4147_v45 = vsub.f32 %v4138_v40, %v4146_v44 }
0x218c   : > { %v4148_v46 = vmul.f32 1.442695, %v4147_v45 }
0x218e   : > { %6107 = vpow2.f32 %v4148_v46 }
0x2198   : > { %v6108_v47 = vpop.eup %6107 }
0x2199   : > { %v4150_v48 = vsel %vm1050_vm4, %v6108_v47, 0.0 }
0x219a   : > { %4151 = vadd.xlane.f32.xlu1 %v4150_v48 }
0x2227   : > { %v4152_v50 = vpop.xlane.xlu1 %4151 }
0x2228   : > { %6109 = vrcp.f32 %v4152_v50 }
0x2232   : > { %v6110_v51 = vpop.eup %6109 }
0x2233   : > { %v4154_v52 = vmul.f32 %v6110_v51, %v6108_v47 }
0x2235   : > { %v4155_v53 = vpack.c.bf16 %v4154_v52, %v4154_v52 }
0x2237   : > { %5841 = vmatmul.mubr.msk.bf16.vlgmr.msra.gmra.mrb[92].mxu0 %vm1050_vm4, %v4155_v53  ;;  %v6071_v53 = vld [vmem:[%s7354_s19] sm:$0xff]  }
0x2238   : > { %5858 = vmatprep.mubr.msk.bf16.mxu0 %vm6180_vm0, %v6179_v1  ;;  %5851 = vmatpush3.bf16.msra.mxu0 %v6059_v10 }
0x2239   : > { %5852 = vmatprep.subr.bf16.mxu0 %v6179_v1 }
0x230a   : > { %v4197_v54 = vpop.f32.mrb[92].mxu0 }
0x230b   : > { %v4203_v55 = vpack.c.bf16 %v4197_v54, %v4197_v54  ;;  %v5842_v56 = vpop.f32.mrb[93].mxu0  ;;  %v6072_v54 = vld [vmem:[%s7354_s19 + $0x8] sm:$0xff]  }
0x230c   : > { %v4200_v57 = vpop.f32.mrb[94].mxu0  ;;  %v6074_v56 = vld [vmem:[%s7354_s19 + $0x18] sm:$0xff]  }
0x230d   : > { %v5843_v58 = vpop.f32.mrb[95].mxu0  ;;  %5847 = vmatmul.mubr.msk.bf16.vlgmr.msra.gmra.mrb[104].mxu1 %vm1003_vm2, %v4203_v55  ;;  %v6073_v55 = vld [vmem:[%s7354_s19 + $0x10] sm:$0xff]  }
0x230e   : > { %5878 = vmatprep.mubr.msk.bf16.mxu1 %vm6180_vm0, %v6179_v1  ;;  %5863 = vmatpush3.bf16.msra.mxu1 %v6063_v13 }
0x230f   : > { %5864 = vmatprep.subr.bf16.mxu1 %v6179_v1 }
0x2312   : > { %5865 = vmatpush3.bf16.msra.mxu1 %v6064_v14 }
0x2313   : > { %5866 = vmatprep.subr.bf16.mxu1 %v6179_v1 }
0x2316   : > { %5867 = vmatpush3.bf16.msra.mxu1 %v6065_v16 }
0x2317   : > { %5868 = vmatprep.subr.bf16.mxu1 %v6179_v1 }
0x231a   : > { %5869 = vmatpush3.bf16.msra.mxu1 %v6066_v18 }
0x231b   : > { %5870 = vmatprep.subr.bf16.mxu1 %v6179_v1 }
0x231e   : > { %5871 = vmatpush3.bf16.msra.mxu1 %v6067_v19 }
0x231f   : > { %5872 = vmatprep.subr.bf16.mxu1 %v6179_v1 }
0x2322   : > { %5873 = vmatpush3.bf16.msra.mxu1 %v6068_v21 }
0x2323   : > { %5874 = vmatprep.subr.bf16.mxu1 %v6179_v1 }
0x2326   : > { %5875 = vmatpush3.bf16.msra.mxu1 %v6069_v33 }
0x2327   : > { %5876 = vmatprep.subr.bf16.mxu1 %v6179_v1 }
0x232a   : > { %5877 = vmatpush3.bf16.msra.mxu1 %v6070_v34 }
0x23e0   : > { %v4250_v59 = vpop.f32.mrb[104].mxu1 }
0x23e1   : > { %v4256_v61 = vadd.f32 %v4250_v59, %v3852_v20  ;;  %v5848_v62 = vpop.f32.mrb[105].mxu1 }
0x23e2   : > { %v4253_v63 = vpop.f32.mrb[106].mxu1 }
0x23e3   : > { %v4265_v0 = vadd.f32 %v5098_v60, %v4256_v61  ;;  %v5849_v2 = vpop.f32.mrb[107].mxu1  ;;  %v5145_v61 = vld [vmem:[%s7352_s17 + $0x1] ss:$0 sm:$0xff] }
0x23e4   : > { %v5147_v63 = vld [vmem:[%s7353_s18 + $0x1] ss:$0 sm:$0xff] }
0x23e5   : > { %v4266_v3 = vadd.f32 %v4265_v0, %v6863_v15  ;;  %v6060_v15 = vld [vmem:[%s7348_s13 + $0x28] sm:$0xff]  }
0x23e6   : > { %5853 = vmatpush3.bf16.msra.mxu0 %v6060_v15  ;;  %v4548_v15 = vld [vmem:[%s7355_s20] sm:$0x1] }
0x23e7   : > { %v4267_v4 = vsel %vm799_vm1, %v4266_v3, 0.0  ;;  %5854 = vmatprep.subr.bf16.mxu0 %v6179_v1 }
0x23e8   : > { %4268 = vadd.xlane.f32.xlu0 %v4267_v4 }
0x23ea   : > { %5855 = vmatpush3.bf16.msra.mxu0 %v6061_v11 }
0x23eb   : > { %5856 = vmatprep.subr.bf16.mxu0 %v6179_v1 }
0x23ee   : > { %5857 = vmatpush3.bf16.msra.mxu0 %v6062_v12 }
0x23ef   : > { %5882 = vmatprep.subr.bf16.mxu0 %v6179_v1 }
0x2475   : > { %v4269_v5 = vpop.xlane.xlu0 %4268 }
0x2476   : > { %v4270_v6 = vmul.f32 0.015625, %v4269_v5 }
0x2478   : > { %v4271_v7 = vsub.f32 %v4266_v3, %v4270_v6 }
0x247a   : > { %v4272_v8 = vmul.f32 %v4271_v7, %v4271_v7 }
0x247c   : > { %v4273_v9 = vsel %vm799_vm1, %v4272_v8, 0.0 }
0x247d   : > { %4274 = vadd.xlane.f32.xlu1 %v4273_v9 }
0x250a   : > { %v4275_v20 = vpop.xlane.xlu1 %4274 }
0x250b   : > { %v4276_v23 = vmul.f32 0.015625, %v4275_v20 }
0x250d   : > { %v4277_v24 = vadd.f32 1e-05, %v4276_v23 }
0x250f   : > { %6111 = vrsqrt.f32 %v4277_v24 }
0x2519   : > { %v6112_v25 = vpop.eup %6111 }
0x251a   : > { %v4279_v28 = vmul.f32 %v6112_v25, %v4271_v7 }
0x251c   : > { %v4288_v17 = vmul.f32 %v5100_v27, %v4279_v28 }
0x251e   : > { %v4297_v30 = vadd.f32 %v5102_v29, %v4288_v17 }
0x2520   : > { %v4298_v32 = vpack.c.bf16 %v4297_v30, %v4297_v30 }
0x2522   : > { %5859 = vmatmul.mubr.msk.bf16.vlgmr.msra.gmra.mrb[96].mxu0 %vm799_vm1, %v4298_v32 }
0x2523   : > { %5890 = vmatprep.mubr.msk.bf16.mxu0 %vm6180_vm0, %v6179_v1  ;;  %5883 = vmatpush3.bf16.msra.mxu0 %v6071_v53 }
0x2524   : > { %5884 = vmatprep.subr.bf16.mxu0 %v6179_v1 }
0x2527   : > { %5885 = vmatpush3.bf16.msra.mxu0 %v6072_v54 }
0x2528   : > { %5886 = vmatprep.subr.bf16.mxu0 %v6179_v1 }
0x252b   : > { %5887 = vmatpush3.bf16.msra.mxu0 %v6073_v55 }
0x252c   : > { %5888 = vmatprep.subr.bf16.mxu0 %v6179_v1 }
0x252f   : > { %5889 = vmatpush3.bf16.msra.mxu0 %v6074_v56 }
0x25f5   : > { %v4377_v35 = vpop.f32.mrb[96].mxu0 }
0x25f6   : > { %v4378_v36 = vadd.f32 %v5112_v22, %v4377_v35  ;;  %v5860_v37 = vpop.f32.mrb[97].mxu0 }
0x25f7   : > { %v4380_v26 = vpop.f32.mrb[98].mxu0 }
0x25f8   : > { %v4383_v38 = vmax.f32 %v4378_v36, 0.0  ;;  %v5861_v39 = vpop.f32.mrb[99].mxu0 }
0x25fa   : > { %v4384_v40 = vpack.c.bf16 %v4383_v38, %v4383_v38 }
0x25fc   : > { %5879 = vmatmul.mubr.bf16.vlgmr.msra.gmra.mrb[108].mxu1 %v4384_v40 }
0x26cf   : > { %v4492_v31 = vpop.f32.mrb[108].mxu1 }
0x26d0   : > { %v4493_v42 = vadd.f32 %v5135_v41, %v4492_v31  ;;  %v5880_v43 = vpop.f32.mrb[109].mxu1 }
0x26d1   : > { %v4495_v44 = vpop.f32.mrb[110].mxu1 }
0x26d2   : > { %v5881_v45 = vpop.f32.mrb[111].mxu1  ;;  %v4498_v46 = vadd.f32 %v4493_v42, %v4297_v30 }
0x26d4   : > { %v4499_v47 = vsel %vm799_vm1, %v4498_v46, 0.0 }
0x26d5   : > { %4500 = vadd.xlane.f32.xlu0 %v4499_v47 }
0x2762   : > { %v4501_v48 = vpop.xlane.xlu0 %4500 }
0x2763   : > { %v4502_v49 = vmul.f32 0.015625, %v4501_v48 }
0x2765   : > { %v4503_v50 = vsub.f32 %v4498_v46, %v4502_v49 }
0x2767   : > { %v4504_v51 = vmul.f32 %v4503_v50, %v4503_v50 }
0x2769   : > { %v4505_v52 = vsel %vm799_vm1, %v4504_v51, 0.0 }
0x276a   : > { %4506 = vadd.xlane.f32.xlu1 %v4505_v52 }
0x27f7   : > { %v4507_v57 = vpop.xlane.xlu1 %4506 }
0x27f8   : > { %v4508_v58 = vmul.f32 0.015625, %v4507_v57 }
0x27fa   : > { %v4509_v59 = vadd.f32 1e-05, %v4508_v58 }
0x27fc   : > { %6113 = vrsqrt.f32 %v4509_v59 }
0x2806   : > { %v6114_v60 = vpop.eup %6113 }
0x2807   : > { %v4511_v62 = vmul.f32 %v6114_v60, %v4503_v50 }
0x2809   : > { %v4520_v0 = vmul.f32 %v5145_v61, %v4511_v62 }
0x280b   : > { %v4529_v2 = vadd.f32 %v5147_v63, %v4520_v0 }
0x280d   : > { %v4530_v1 = vsel %vm799_vm1, %v4529_v2, 0.0 }
0x280e   : > { %v4531_v3 = vrot.slane %v4530_v1, 4 }
0x2810   : > { %v4532_v4 = vadd.f32 %v4531_v3, %v4530_v1 }
0x2812   : > { %v4533_v5 = vrot.slane %v4532_v4, 2 }
0x2814   : > { %v4534_v6 = vadd.f32 %v4533_v5, %v4532_v4 }
0x2816   : > { %v4535_v7 = vrot.slane %v4534_v6, 1 }
0x2818   : > { %v4536_v8 = vadd.f32 %v4535_v7, %v4534_v6 }
0x281a   : > { %v4538_v9 = vmul.f32 0.125, %v4536_v8 }
0x281c   : > { %v4539_v10 = vpack.c.bf16 %v4538_v9, %v4538_v9 }
0x281e   : > { %5891 = vmatmul.mubr.msk.bf16.vlgmr.msra.gmra.mrb[100].mxu0 %vm799_vm1, %v4539_v10 }
0x28f1   : > { %v4610_v11 = vpop.f32.mrb[100].mxu0 }
0x28f2   : > { %v4611_v12 = vadd.f32 %v4610_v11, %v4548_v15  ;;  %v5892_v13 = vpop.f32.mrb[101].mxu0 }
0x28f3   : > { %v4613_v14 = vpop.f32.mrb[102].mxu0 }
0x28f4   : > { %4616 = vst [vmem:[%s646_s30] sm:$0x1] %v4611_v12  ;;  %v5893_v16 = vpop.f32.mrb[103].mxu0 }
0x28f5   : > { %6128 = shalt.err (!%p6125_p3)
}
0x28f6   : > { %s6129_s27 = scalar_lea.hbm %s7293_s0, 16  ;;  %s6133_s22 = scalar_lea.hbm %s7356_s21, 32 }
0x28f7   : > { %p6130_p4 = scmp.ne.s32.totalorder %s7293_s0, %s6129_s27  ;;  %p6134_p9 = scmp.lt.u32.totalorder %s7293_s0, %s7356_s21 }
0x28f8   : > { %p6135_p10 = scmp.lt.u32.totalorder %s6133_s22, %s6129_s27  ;;  %p6137_p12 = scmp.lt.u32.totalorder %s6129_s27, %s7293_s0 }
0x28f9   : > { %p6131_p7 = pnand %p6130_p4, %p6330_p5 }
0x28fa   : > { %p6136_p11 = por %p6135_p10, %p6134_p9 }
0x28fb   : > { %p6132_p8 = pneg %p6131_p7 }
0x28fc   : > { %p6138_p13 = por %p6137_p12, %p6136_p11 }
0x28fe   : > { %p6139_p0 = pnand %p6138_p13, %p6132_p8 }
0x2900   : > { %6142 = shalt.err (!%p6139_p0)
}
0x2901   : > { %5894 = dma.vmem_to_hbm [thread:$0]  (%p6330_p5), %s7295_s2, 16, %s7293_s0, %s4618_s4  }
0x2902 PF: > { %s7390_s3 = sld [smem:[#allocation7_spill]]  ;;  %s7391_s1 = sld [smem:[#allocation5_spill]] }
0x2908   : > { %p5900_p1 = scmp.ge.s32.totalorder %s7390_s3, 2  ;;  %s4642_s30 = sand.u32 1, %s7391_s1  }
0x2909   : > { %s4643_s28 = scalar_lea.sflag [#allocation3], %s4642_s30 }
0x290a   : > { %p5897_p2 = pnand %p5900_p1, %p6334_p6 }
0x290c   : > { %6160 = dma.done.wait (!%p5897_p2), %s4643_s28, 16  }
0x290d   : > { %6162 = vsyncadd (!%p5897_p2), %s4643_s28, 4294967280  ;;  %s7393_s27 = sld [smem:[#allocation8_spill]]  ;;  %s7394_s22 = sld [smem:[#allocation6_spill]] }
0x290e   : > { %s7395_s26 = sld [smem:[#allocation9_spill]]  ;;  %s7396_s2 = smov %s6169_s25 }
0x2913   : > { %p31_p3 = scmp.ge.s32.totalorder %s7393_s27, 4   ;;  %s7397_s25 = smov %s7394_s22 }
0x2915   :  { %33 = sbr.rel (!%p31_p3) target bundleno = 11 (0xb), region = 197 }
0x291c   :  { %4647 = vsyncpa [#allocation3], 1 }
0x291d   :  { %4649 = vsyncpa [#allocation3 + $0x1], 1 }

</bundles_post_ra>
